<compile_context>
chip_gen: v7x
topology: tpu7x:2x2x1
jax: 0.10.0
libtpu: 0.0.40
codegen_flags: <defaults>
</compile_context>

<pallas_src>
import functools

import jax
import jax.numpy as jnp
from jax.experimental import pallas as pl
from jax.experimental.pallas import tpu as pltpu

F32 = jnp.float32
BF16 = jnp.bfloat16


# ----------------------------------------------------------------------------
# Fused Pallas kernel: GRU stack + dense head
# ----------------------------------------------------------------------------

def fused_rnn_kernel(*refs, num_layers, B, T, Hpad):
    idx = 0
    x_ref = refs[idx]; idx += 1                               # (T*B, Fpad) f32
    gru_refs = refs[idx: idx + 4 * num_layers]; idx += 4 * num_layers
    head_b_refs = refs[idx: idx + 4]; idx += 4                # VMEM biases
    head_w_hbm = refs[idx: idx + 4]; idx += 4                 # ANY (HBM) weights
    out_ref = refs[idx]; idx += 1                             # (B, 13) f32
    head_w_vmem = refs[idx: idx + 4]; idx += 4                # VMEM scratch
    dma_sem = refs[idx]                                       # DMA sems (4,)

    # Kick off dense-head weight DMA (HBM -> VMEM); overlaps the recurrence.
    head_copies = []
    for i in range(4):
        cp = pltpu.make_async_copy(head_w_hbm[i], head_w_vmem[i], dma_sem.at[i])
        cp.start()
        head_copies.append(cp)

    layer_in = x_ref[...].astype(BF16)          # bf16 MXU LHS, (T*B, Fpad)
    h = jnp.zeros((B, Hpad), F32)
    for l in range(num_layers):
        wih_ref, whh_ref, bgi_ref, bhn_ref = gru_refs[4 * l: 4 * (l + 1)]
        whh = whh_ref[...]                      # bf16 (Hpad, 3*Hpad), loop-invariant
        bhn = bhn_ref[...]                      # f32  (1, Hpad)
        is_last = (l == num_layers - 1)

        # Hoisted input projection for the whole sequence: ONE MXU matmul.
        # Result stays in vregs (~6 vregs for T*B=16, 3*Hpad=384).
        gi = (jnp.dot(layer_in, wih_ref[...],
                      preferred_element_type=jnp.float32)
              + bgi_ref[...])                                   # (T*B, 3*Hpad) f32

        h = jnp.zeros((B, Hpad), F32)
        h_steps = []
        for t in range(T):                      # static unrolled serial recurrence
            gi_t = gi[t * B:(t + 1) * B, :]                     # (B, 3*Hpad)
            gh = jnp.dot(h.astype(BF16), whh,
                         preferred_element_type=jnp.float32)    # (B, 3*Hpad)
            r = jax.nn.sigmoid(gi_t[:, 0:Hpad] + gh[:, 0:Hpad])
            z = jax.nn.sigmoid(gi_t[:, Hpad:2 * Hpad] + gh[:, Hpad:2 * Hpad])
            n = jnp.tanh(gi_t[:, 2 * Hpad:] + r * (gh[:, 2 * Hpad:] + bhn))
            h = (1.0 - z) * n + z * h
            if not is_last:
                h_steps.append(h)
        if not is_last:
            # Next layer's hoisted-matmul LHS, built directly from registers.
            layer_in = jnp.concatenate(h_steps, axis=0).astype(BF16)

    # Block on head-weight DMA only now, after the recurrence hid it.
    for cp in head_copies:
        cp.wait()

    # Dense head: bf16 weight streaming, f32 MXU accumulation, f32 epilogue.
    def dense(a, w_ref, b_ref, relu):
        y = (jnp.dot(a.astype(w_ref.dtype), w_ref[...],
                     preferred_element_type=jnp.float32) + b_ref[...])
        return jnp.maximum(y, 0.0) if relu else y

    y = dense(h, head_w_vmem[0], head_b_refs[0], True)     # (B, 1024)
    y = dense(y, head_w_vmem[1], head_b_refs[1], True)     # (B, 512)
    y = dense(y, head_w_vmem[2], head_b_refs[2], True)     # (B, 128)
    y = dense(y, head_w_vmem[3], head_b_refs[3], False)    # (B, 13)
    out_ref[...] = y.astype(out_ref.dtype)


# ----------------------------------------------------------------------------
# One-time parameter packing (hoisted out of the per-call path)
# ----------------------------------------------------------------------------

def _ceil_to(x, m):
    return -(-x // m) * m


def _pad_gate_cols(w_t, H, Hpad, dtype):
    """(in, 3H) with gate order [r|z|n] along columns -> (in, 3*Hpad)."""
    parts = []
    for g in range(3):
        blk = w_t[:, g * H:(g + 1) * H]
        parts.append(jnp.pad(blk, ((0, 0), (0, Hpad - H))))
    return jnp.concatenate(parts, axis=1).astype(dtype)


def _pad_gate_vec(b, H, Hpad):
    parts = [jnp.pad(b[g * H:(g + 1) * H], (0, Hpad - H)) for g in range(3)]
    return jnp.concatenate(parts).reshape(1, 3 * Hpad).astype(F32)


def pack_params(params):
    """Transpose / pad / cast all weights once. Call OUTSIDE the jitted path."""
    H = params["gru"][0]["w_hh"].shape[1]
    F_in = params["gru"][0]["w_ih"].shape[1]
    Hpad = _ceil_to(H, 128)
    Fpad = _ceil_to(F_in, 128)

    gru = []
    for l, g in enumerate(params["gru"]):
        w_ih_t = jnp.asarray(g["w_ih"], F32).T            # (in, 3H)
        w_hh_t = jnp.asarray(g["w_hh"], F32).T            # (H, 3H)
        in_pad = Fpad if l == 0 else Hpad
        w_ih_t = jnp.pad(w_ih_t, ((0, in_pad - w_ih_t.shape[0]), (0, 0)))
        w_hh_t = jnp.pad(w_hh_t, ((0, Hpad - H), (0, 0)))
        wih = _pad_gate_cols(w_ih_t, H, Hpad, BF16)       # (in_pad, 3*Hpad) bf16
        whh = _pad_gate_cols(w_hh_t, H, Hpad, BF16)       # (Hpad, 3*Hpad) bf16
        b_ih = jnp.asarray(g["b_ih"], F32)
        b_hh = jnp.asarray(g["b_hh"], F32)
        # Fold b_hh into the hoisted bias for the r and z gates only.
        b_fold = jnp.concatenate([b_ih[:H] + b_hh[:H],
                                  b_ih[H:2 * H] + b_hh[H:2 * H],
                                  b_ih[2 * H:]], axis=0)
        bgi = _pad_gate_vec(b_fold, H, Hpad)              # (1, 3*Hpad) f32
        bhn = jnp.pad(b_hh[2 * H:], (0, Hpad - H)).reshape(1, Hpad).astype(F32)
        gru.append((wih, whh, bgi, bhn))

    def pad_w(w_t, rows, cols):
        return jnp.pad(jnp.asarray(w_t, F32),
                       ((0, rows - w_t.shape[0]),
                        (0, cols - w_t.shape[1]))).astype(BF16)

    def pad_b(b, cols):
        return jnp.pad(jnp.asarray(b, F32),
                       (0, cols - b.shape[0])).reshape(1, cols).astype(F32)

    link_out = _ceil_to(params["link_w"].shape[0], 128)   # 1000 -> 1024
    d1_out = _ceil_to(params["d1_w"].shape[0], 128)       # 500  -> 512
    d2_out = _ceil_to(params["d2_w"].shape[0], 128)       # 100  -> 128
    n_out = params["d3_w"].shape[0]                       # 13 (kept unpadded)

    head_w = (pad_w(params["link_w"].T, Hpad, link_out),
              pad_w(params["d1_w"].T, link_out, d1_out),
              pad_w(params["d2_w"].T, d1_out, d2_out),
              pad_w(params["d3_w"].T, d2_out, n_out))
    head_b = (pad_b(params["link_b"], link_out),
              pad_b(params["d1_b"], d1_out),
              pad_b(params["d2_b"], d2_out),
              pad_b(params["d3_b"], n_out))

    return {"gru": gru, "head_w": head_w, "head_b": head_b}


# ----------------------------------------------------------------------------
# Wrapper: per-call glue + pallas_call
# ----------------------------------------------------------------------------

def rnn_forward(packed, x):
    B, T, F_in = x.shape
    gru = packed["gru"]
    L = len(gru)
    Hpad = gru[0][1].shape[0]            # whh rows
    Fpad = gru[0][0].shape[0]            # layer-0 wih rows
    head_w = list(packed["head_w"])
    head_b = list(packed["head_b"])
    n_out = head_b[3].shape[1]

    # glue: time-major flatten so step t owns rows [t*B, (t+1)*B); lane-pad F.
    x2d = jnp.transpose(x, (1, 0, 2)).reshape(T * B, F_in).astype(F32)
    x2d = jnp.pad(x2d, ((0, 0), (0, Fpad - F_in)))

    gru_args = [a for layer in gru for a in layer]
    args = [x2d] + gru_args + head_b + head_w

    vmem = pl.BlockSpec(memory_space=pltpu.MemorySpace.VMEM)
    anyspace = pl.BlockSpec(memory_space=pl.ANY)
    in_specs = [vmem] * (1 + 4 * L + 4) + [anyspace] * 4

    kernel = functools.partial(fused_rnn_kernel,
                               num_layers=L, B=B, T=T, Hpad=Hpad)
    return pl.pallas_call(
        kernel,
        out_shape=jax.ShapeDtypeStruct((B, n_out), F32),
        in_specs=in_specs,
        out_specs=vmem,
        scratch_shapes=[pltpu.VMEM(w.shape, w.dtype) for w in head_w]
                       + [pltpu.SemaphoreType.DMA((4,))],
    )(*args)


# ----------------------------------------------------------------------------
# Pure-JAX reference (PyTorch semantics) for a correctness check
# ----------------------------------------------------------------------------

def rnn_forward_ref(params, x):
    B, T, _ = x.shape
    seq = x
    h = None
    for g in params["gru"]:
        H = g["w_hh"].shape[1]
        h = jnp.zeros((B, H), F32)
        outs = []
        for t in range(T):
            xt = seq[:, t, :]
            gi = xt @ g["w_ih"].T + g["b_ih"]
            gh = h @ g["w_hh"].T + g["b_hh"]
            r = jax.nn.sigmoid(gi[:, :H] + gh[:, :H])
            z = jax.nn.sigmoid(gi[:, H:2 * H] + gh[:, H:2 * H])
            n = jnp.tanh(gi[:, 2 * H:] + r * gh[:, 2 * H:])
            h = (1.0 - z) * n + z * h
            outs.append(h)
        seq = jnp.stack(outs, axis=1)
    feat = seq[:, -1, :]

    def lin(a, w, b, relu):
        y = a @ w.T + b
        return jnp.maximum(y, 0.0) if relu else y

    y = lin(feat, params["link_w"], params["link_b"], True)
    y = lin(y, params["d1_w"], params["d1_b"], True)
    y = lin(y, params["d2_w"], params["d2_b"], True)
    return lin(y, params["d3_w"], params["d3_b"], False)


# ----------------------------------------------------------------------------
# Deterministic parameter construction
# ----------------------------------------------------------------------------

class _Keys:
    def __init__(self, seed):
        self._key = jax.random.PRNGKey(seed)

    def __call__(self):
        self._key, sub = jax.random.split(self._key)
        return sub


def _randn(kg, shape, scale=0.05):
    return scale * jax.random.normal(kg(), shape, F32)


def init_params(kg, num_features, hidden_size, num_layers):
    gru = []
    in_size = num_features
    for _ in range(num_layers):
        gru.append({"w_ih": _randn(kg, (3 * hidden_size, in_size), 0.2),
                    "w_hh": _randn(kg, (3 * hidden_size, hidden_size), 0.2),
                    "b_ih": _randn(kg, (3 * hidden_size,), 0.2),
                    "b_hh": _randn(kg, (3 * hidden_size,), 0.2)})
        in_size = hidden_size
    return {"gru": gru,
            "link_w": _randn(kg, (1000, hidden_size)), "link_b": _randn(kg, (1000,)),
            "d1_w": _randn(kg, (500, 1000)), "d1_b": _randn(kg, (500,)),
            "d2_w": _randn(kg, (100, 500)), "d2_b": _randn(kg, (100,)),
            "d3_w": _randn(kg, (13, 100)), "d3_b": _randn(kg, (13,))}


if __name__ == "__main__":
    num_features, num_rows, batch_size, hidden_size, num_layers = 16, 8, 2, 32, 2

    kg = _Keys(0)
    params = init_params(kg, num_features, hidden_size, num_layers)

    x = jax.random.normal(jax.random.PRNGKey(0),
                          (batch_size, num_rows, num_features), F32)

    # Pack (transpose/pad/cast) all weights ONCE, outside the jitted path.
    packed = pack_params(params)
    packed = jax.tree_util.tree_map(jax.block_until_ready, packed)

    out = jax.jit(rnn_forward)(packed, x)
    out = jax.block_until_ready(out)

    assert out.shape == (batch_size, 13) and out.dtype == jnp.float32
    assert bool(jnp.all(jnp.isfinite(out)))

    ref = jax.jit(rnn_forward_ref)(params, x)
    # bf16 GRU + dense-head weights -> loose tolerance vs the f32 reference.
    assert bool(jnp.allclose(out, ref, rtol=1e-1, atol=2e-2)), (
        "max abs diff %g" % float(jnp.max(jnp.abs(out - ref))))

    print("KERNEL_OK")
</pallas_src>

<mosaic_0001>
module attributes {stable_mosaic.version = 11 : i64} {
  func.func @fused_rnn_kernel(%arg0: memref<16x128xf32, #tpu.memory_space<vmem>>, %arg1: memref<128x384xbf16, #tpu.memory_space<vmem>>, %arg2: memref<128x384xbf16, #tpu.memory_space<vmem>>, %arg3: memref<1x384xf32, #tpu.memory_space<vmem>>, %arg4: memref<1x128xf32, #tpu.memory_space<vmem>>, %arg5: memref<128x384xbf16, #tpu.memory_space<vmem>>, %arg6: memref<128x384xbf16, #tpu.memory_space<vmem>>, %arg7: memref<1x384xf32, #tpu.memory_space<vmem>>, %arg8: memref<1x128xf32, #tpu.memory_space<vmem>>, %arg9: memref<1x1024xf32, #tpu.memory_space<vmem>>, %arg10: memref<1x512xf32, #tpu.memory_space<vmem>>, %arg11: memref<1x128xf32, #tpu.memory_space<vmem>>, %arg12: memref<1x13xf32, #tpu.memory_space<vmem>>, %arg13: memref<128x1024xbf16, #tpu.memory_space<any>>, %arg14: memref<1024x512xbf16, #tpu.memory_space<any>>, %arg15: memref<512x128xbf16, #tpu.memory_space<any>>, %arg16: memref<128x13xbf16, #tpu.memory_space<any>>, %arg17: memref<2x13xf32, #tpu.memory_space<vmem>>, %arg18: memref<128x1024xbf16, #tpu.memory_space<vmem>>, %arg19: memref<1024x512xbf16, #tpu.memory_space<vmem>>, %arg20: memref<512x128xbf16, #tpu.memory_space<vmem>>, %arg21: memref<128x13xbf16, #tpu.memory_space<vmem>>, %arg22: memref<4x!tpu.dma_semaphore, #tpu.memory_space<semaphore_mem>>) attributes {dimension_semantics = [], scalar_prefetch = 0 : i64, scratch_operands = 5 : i64, tpu.core_type = #tpu.core_type<tc>} {
    %c0_i32 = arith.constant 0 : i32
    %0 = tpu.memref_slice %arg22[%c0_i32] : memref<4x!tpu.dma_semaphore, #tpu.memory_space<semaphore_mem>> -> memref<1x!tpu.dma_semaphore, #tpu.memory_space<semaphore_mem>>
    %1 = tpu.memref_squeeze %0 : memref<1x!tpu.dma_semaphore, #tpu.memory_space<semaphore_mem>> -> memref<!tpu.dma_semaphore, #tpu.memory_space<semaphore_mem>>
    tpu.enqueue_dma source(%arg13 : memref<128x1024xbf16, #tpu.memory_space<any>>) target(%arg18 : memref<128x1024xbf16, #tpu.memory_space<vmem>>) target_semaphore(%1 : memref<!tpu.dma_semaphore, #tpu.memory_space<semaphore_mem>>)
    %c1_i32 = arith.constant 1 : i32
    %2 = tpu.memref_slice %arg22[%c1_i32] : memref<4x!tpu.dma_semaphore, #tpu.memory_space<semaphore_mem>> -> memref<1x!tpu.dma_semaphore, #tpu.memory_space<semaphore_mem>>
    %3 = tpu.memref_squeeze %2 : memref<1x!tpu.dma_semaphore, #tpu.memory_space<semaphore_mem>> -> memref<!tpu.dma_semaphore, #tpu.memory_space<semaphore_mem>>
    tpu.enqueue_dma source(%arg14 : memref<1024x512xbf16, #tpu.memory_space<any>>) target(%arg19 : memref<1024x512xbf16, #tpu.memory_space<vmem>>) target_semaphore(%3 : memref<!tpu.dma_semaphore, #tpu.memory_space<semaphore_mem>>)
    %c2_i32 = arith.constant 2 : i32
    %4 = tpu.memref_slice %arg22[%c2_i32] : memref<4x!tpu.dma_semaphore, #tpu.memory_space<semaphore_mem>> -> memref<1x!tpu.dma_semaphore, #tpu.memory_space<semaphore_mem>>
    %5 = tpu.memref_squeeze %4 : memref<1x!tpu.dma_semaphore, #tpu.memory_space<semaphore_mem>> -> memref<!tpu.dma_semaphore, #tpu.memory_space<semaphore_mem>>
    tpu.enqueue_dma source(%arg15 : memref<512x128xbf16, #tpu.memory_space<any>>) target(%arg20 : memref<512x128xbf16, #tpu.memory_space<vmem>>) target_semaphore(%5 : memref<!tpu.dma_semaphore, #tpu.memory_space<semaphore_mem>>)
    %c3_i32 = arith.constant 3 : i32
    %6 = tpu.memref_slice %arg22[%c3_i32] : memref<4x!tpu.dma_semaphore, #tpu.memory_space<semaphore_mem>> -> memref<1x!tpu.dma_semaphore, #tpu.memory_space<semaphore_mem>>
    %7 = tpu.memref_squeeze %6 : memref<1x!tpu.dma_semaphore, #tpu.memory_space<semaphore_mem>> -> memref<!tpu.dma_semaphore, #tpu.memory_space<semaphore_mem>>
    tpu.enqueue_dma source(%arg16 : memref<128x13xbf16, #tpu.memory_space<any>>) target(%arg21 : memref<128x13xbf16, #tpu.memory_space<vmem>>) target_semaphore(%7 : memref<!tpu.dma_semaphore, #tpu.memory_space<semaphore_mem>>)
    %c0 = arith.constant 0 : index
    %c0_0 = arith.constant 0 : index
    %8 = vector.load %arg0[%c0, %c0_0] : memref<16x128xf32, #tpu.memory_space<vmem>>, vector<16x128xf32>
    %9 = arith.truncf %8 : vector<16x128xf32> to vector<16x128xbf16>
    %c0_1 = arith.constant 0 : index
    %c0_2 = arith.constant 0 : index
    %10 = vector.load %arg2[%c0_1, %c0_2] : memref<128x384xbf16, #tpu.memory_space<vmem>>, vector<128x384xbf16>
    %c0_3 = arith.constant 0 : index
    %c0_4 = arith.constant 0 : index
    %11 = vector.load %arg4[%c0_3, %c0_4] : memref<1x128xf32, #tpu.memory_space<vmem>>, vector<1x128xf32>
    %c0_5 = arith.constant 0 : index
    %c0_6 = arith.constant 0 : index
    %12 = vector.load %arg1[%c0_5, %c0_6] : memref<128x384xbf16, #tpu.memory_space<vmem>>, vector<128x384xbf16>
    %cst = arith.constant dense<0.000000e+00> : vector<16x384xf32>
    %13 = tpu.matmul %9, %12, %cst {dimension_numbers = #tpu.dot_dimension_numbers<[1], [0], [0], [1], [0, 0, 1, 1], [], []>} : vector<16x128xbf16>, vector<128x384xbf16>, vector<16x384xf32> -> vector<16x384xf32>
    %c0_7 = arith.constant 0 : index
    %c0_8 = arith.constant 0 : index
    %14 = vector.load %arg3[%c0_7, %c0_8] : memref<1x384xf32, #tpu.memory_space<vmem>>, vector<1x384xf32>
    %15 = vector.broadcast %14 : vector<1x384xf32> to vector<16x384xf32>
    %16 = arith.addf %13, %15 : vector<16x384xf32>
    %cst_9 = arith.constant 0.000000e+00 : f32
    %17 = vector.broadcast %cst_9 : f32 to vector<2x128xf32>
    %18 = vector.extract_strided_slice %16 {offsets = [0, 0], sizes = [2, 384], strides = [1, 1]} : vector<16x384xf32> to vector<2x384xf32>
    %19 = arith.truncf %17 : vector<2x128xf32> to vector<2x128xbf16>
    %cst_10 = arith.constant dense<0.000000e+00> : vector<2x384xf32>
    %20 = tpu.matmul %19, %10, %cst_10 {dimension_numbers = #tpu.dot_dimension_numbers<[1], [0], [0], [1], [0, 0, 1, 1], [], []>} : vector<2x128xbf16>, vector<128x384xbf16>, vector<2x384xf32> -> vector<2x384xf32>
    %21 = vector.extract_strided_slice %18 {offsets = [0, 0], sizes = [2, 128], strides = [1, 1]} : vector<2x384xf32> to vector<2x128xf32>
    %22 = vector.extract_strided_slice %20 {offsets = [0, 0], sizes = [2, 128], strides = [1, 1]} : vector<2x384xf32> to vector<2x128xf32>
    %23 = arith.addf %21, %22 : vector<2x128xf32>
    %24 = arith.negf %23 : vector<2x128xf32>
    %25 = math.exp %24 : vector<2x128xf32>
    %cst_11 = arith.constant 1.000000e+00 : f32
    %26 = vector.broadcast %cst_11 : f32 to vector<2x128xf32>
    %27 = arith.addf %26, %25 : vector<2x128xf32>
    %28 = arith.divf %26, %27 : vector<2x128xf32>
    %29 = vector.extract_strided_slice %18 {offsets = [0, 128], sizes = [2, 128], strides = [1, 1]} : vector<2x384xf32> to vector<2x128xf32>
    %30 = vector.extract_strided_slice %20 {offsets = [0, 128], sizes = [2, 128], strides = [1, 1]} : vector<2x384xf32> to vector<2x128xf32>
    %31 = arith.addf %29, %30 : vector<2x128xf32>
    %32 = arith.negf %31 : vector<2x128xf32>
    %33 = math.exp %32 : vector<2x128xf32>
    %cst_12 = arith.constant 1.000000e+00 : f32
    %34 = vector.broadcast %cst_12 : f32 to vector<2x128xf32>
    %35 = arith.addf %34, %33 : vector<2x128xf32>
    %36 = arith.divf %34, %35 : vector<2x128xf32>
    %37 = vector.extract_strided_slice %18 {offsets = [0, 256], sizes = [2, 128], strides = [1, 1]} : vector<2x384xf32> to vector<2x128xf32>
    %38 = vector.extract_strided_slice %20 {offsets = [0, 256], sizes = [2, 128], strides = [1, 1]} : vector<2x384xf32> to vector<2x128xf32>
    %39 = vector.broadcast %11 : vector<1x128xf32> to vector<2x128xf32>
    %40 = arith.addf %38, %39 : vector<2x128xf32>
    %41 = arith.mulf %28, %40 : vector<2x128xf32>
    %42 = arith.addf %37, %41 : vector<2x128xf32>
    %43 = math.tanh %42 : vector<2x128xf32>
    %cst_13 = arith.constant 1.000000e+00 : f32
    %44 = vector.broadcast %cst_13 : f32 to vector<2x128xf32>
    %45 = arith.subf %44, %36 : vector<2x128xf32>
    %46 = arith.mulf %45, %43 : vector<2x128xf32>
    %47 = arith.mulf %36, %17 : vector<2x128xf32>
    %48 = arith.addf %46, %47 : vector<2x128xf32>
    %49 = vector.extract_strided_slice %16 {offsets = [2, 0], sizes = [2, 384], strides = [1, 1]} : vector<16x384xf32> to vector<2x384xf32>
    %50 = arith.truncf %48 : vector<2x128xf32> to vector<2x128xbf16>
    %cst_14 = arith.constant dense<0.000000e+00> : vector<2x384xf32>
    %51 = tpu.matmul %50, %10, %cst_14 {dimension_numbers = #tpu.dot_dimension_numbers<[1], [0], [0], [1], [0, 0, 1, 1], [], []>} : vector<2x128xbf16>, vector<128x384xbf16>, vector<2x384xf32> -> vector<2x384xf32>
    %52 = vector.extract_strided_slice %49 {offsets = [0, 0], sizes = [2, 128], strides = [1, 1]} : vector<2x384xf32> to vector<2x128xf32>
    %53 = vector.extract_strided_slice %51 {offsets = [0, 0], sizes = [2, 128], strides = [1, 1]} : vector<2x384xf32> to vector<2x128xf32>
    %54 = arith.addf %52, %53 : vector<2x128xf32>
    %55 = arith.negf %54 : vector<2x128xf32>
    %56 = math.exp %55 : vector<2x128xf32>
    %cst_15 = arith.constant 1.000000e+00 : f32
    %57 = vector.broadcast %cst_15 : f32 to vector<2x128xf32>
    %58 = arith.addf %57, %56 : vector<2x128xf32>
    %59 = arith.divf %57, %58 : vector<2x128xf32>
    %60 = vector.extract_strided_slice %49 {offsets = [0, 128], sizes = [2, 128], strides = [1, 1]} : vector<2x384xf32> to vector<2x128xf32>
    %61 = vector.extract_strided_slice %51 {offsets = [0, 128], sizes = [2, 128], strides = [1, 1]} : vector<2x384xf32> to vector<2x128xf32>
    %62 = arith.addf %60, %61 : vector<2x128xf32>
    %63 = arith.negf %62 : vector<2x128xf32>
    %64 = math.exp %63 : vector<2x128xf32>
    %cst_16 = arith.constant 1.000000e+00 : f32
    %65 = vector.broadcast %cst_16 : f32 to vector<2x128xf32>
    %66 = arith.addf %65, %64 : vector<2x128xf32>
    %67 = arith.divf %65, %66 : vector<2x128xf32>
    %68 = vector.extract_strided_slice %49 {offsets = [0, 256], sizes = [2, 128], strides = [1, 1]} : vector<2x384xf32> to vector<2x128xf32>
    %69 = vector.extract_strided_slice %51 {offsets = [0, 256], sizes = [2, 128], strides = [1, 1]} : vector<2x384xf32> to vector<2x128xf32>
    %70 = vector.broadcast %11 : vector<1x128xf32> to vector<2x128xf32>
    %71 = arith.addf %69, %70 : vector<2x128xf32>
    %72 = arith.mulf %59, %71 : vector<2x128xf32>
    %73 = arith.addf %68, %72 : vector<2x128xf32>
    %74 = math.tanh %73 : vector<2x128xf32>
    %cst_17 = arith.constant 1.000000e+00 : f32
    %75 = vector.broadcast %cst_17 : f32 to vector<2x128xf32>
    %76 = arith.subf %75, %67 : vector<2x128xf32>
    %77 = arith.mulf %76, %74 : vector<2x128xf32>
    %78 = arith.mulf %67, %48 : vector<2x128xf32>
    %79 = arith.addf %77, %78 : vector<2x128xf32>
    %80 = vector.extract_strided_slice %16 {offsets = [4, 0], sizes = [2, 384], strides = [1, 1]} : vector<16x384xf32> to vector<2x384xf32>
    %81 = arith.truncf %79 : vector<2x128xf32> to vector<2x128xbf16>
    %cst_18 = arith.constant dense<0.000000e+00> : vector<2x384xf32>
    %82 = tpu.matmul %81, %10, %cst_18 {dimension_numbers = #tpu.dot_dimension_numbers<[1], [0], [0], [1], [0, 0, 1, 1], [], []>} : vector<2x128xbf16>, vector<128x384xbf16>, vector<2x384xf32> -> vector<2x384xf32>
    %83 = vector.extract_strided_slice %80 {offsets = [0, 0], sizes = [2, 128], strides = [1, 1]} : vector<2x384xf32> to vector<2x128xf32>
    %84 = vector.extract_strided_slice %82 {offsets = [0, 0], sizes = [2, 128], strides = [1, 1]} : vector<2x384xf32> to vector<2x128xf32>
    %85 = arith.addf %83, %84 : vector<2x128xf32>
    %86 = arith.negf %85 : vector<2x128xf32>
    %87 = math.exp %86 : vector<2x128xf32>
    %cst_19 = arith.constant 1.000000e+00 : f32
    %88 = vector.broadcast %cst_19 : f32 to vector<2x128xf32>
    %89 = arith.addf %88, %87 : vector<2x128xf32>
    %90 = arith.divf %88, %89 : vector<2x128xf32>
    %91 = vector.extract_strided_slice %80 {offsets = [0, 128], sizes = [2, 128], strides = [1, 1]} : vector<2x384xf32> to vector<2x128xf32>
    %92 = vector.extract_strided_slice %82 {offsets = [0, 128], sizes = [2, 128], strides = [1, 1]} : vector<2x384xf32> to vector<2x128xf32>
    %93 = arith.addf %91, %92 : vector<2x128xf32>
    %94 = arith.negf %93 : vector<2x128xf32>
    %95 = math.exp %94 : vector<2x128xf32>
    %cst_20 = arith.constant 1.000000e+00 : f32
    %96 = vector.broadcast %cst_20 : f32 to vector<2x128xf32>
    %97 = arith.addf %96, %95 : vector<2x128xf32>
    %98 = arith.divf %96, %97 : vector<2x128xf32>
    %99 = vector.extract_strided_slice %80 {offsets = [0, 256], sizes = [2, 128], strides = [1, 1]} : vector<2x384xf32> to vector<2x128xf32>
    %100 = vector.extract_strided_slice %82 {offsets = [0, 256], sizes = [2, 128], strides = [1, 1]} : vector<2x384xf32> to vector<2x128xf32>
    %101 = vector.broadcast %11 : vector<1x128xf32> to vector<2x128xf32>
    %102 = arith.addf %100, %101 : vector<2x128xf32>
    %103 = arith.mulf %90, %102 : vector<2x128xf32>
    %104 = arith.addf %99, %103 : vector<2x128xf32>
    %105 = math.tanh %104 : vector<2x128xf32>
    %cst_21 = arith.constant 1.000000e+00 : f32
    %106 = vector.broadcast %cst_21 : f32 to vector<2x128xf32>
    %107 = arith.subf %106, %98 : vector<2x128xf32>
    %108 = arith.mulf %107, %105 : vector<2x128xf32>
    %109 = arith.mulf %98, %79 : vector<2x128xf32>
    %110 = arith.addf %108, %109 : vector<2x128xf32>
    %111 = vector.extract_strided_slice %16 {offsets = [6, 0], sizes = [2, 384], strides = [1, 1]} : vector<16x384xf32> to vector<2x384xf32>
    %112 = arith.truncf %110 : vector<2x128xf32> to vector<2x128xbf16>
    %cst_22 = arith.constant dense<0.000000e+00> : vector<2x384xf32>
    %113 = tpu.matmul %112, %10, %cst_22 {dimension_numbers = #tpu.dot_dimension_numbers<[1], [0], [0], [1], [0, 0, 1, 1], [], []>} : vector<2x128xbf16>, vector<128x384xbf16>, vector<2x384xf32> -> vector<2x384xf32>
    %114 = vector.extract_strided_slice %111 {offsets = [0, 0], sizes = [2, 128], strides = [1, 1]} : vector<2x384xf32> to vector<2x128xf32>
    %115 = vector.extract_strided_slice %113 {offsets = [0, 0], sizes = [2, 128], strides = [1, 1]} : vector<2x384xf32> to vector<2x128xf32>
    %116 = arith.addf %114, %115 : vector<2x128xf32>
    %117 = arith.negf %116 : vector<2x128xf32>
    %118 = math.exp %117 : vector<2x128xf32>
    %cst_23 = arith.constant 1.000000e+00 : f32
    %119 = vector.broadcast %cst_23 : f32 to vector<2x128xf32>
    %120 = arith.addf %119, %118 : vector<2x128xf32>
    %121 = arith.divf %119, %120 : vector<2x128xf32>
    %122 = vector.extract_strided_slice %111 {offsets = [0, 128], sizes = [2, 128], strides = [1, 1]} : vector<2x384xf32> to vector<2x128xf32>
    %123 = vector.extract_strided_slice %113 {offsets = [0, 128], sizes = [2, 128], strides = [1, 1]} : vector<2x384xf32> to vector<2x128xf32>
    %124 = arith.addf %122, %123 : vector<2x128xf32>
    %125 = arith.negf %124 : vector<2x128xf32>
    %126 = math.exp %125 : vector<2x128xf32>
    %cst_24 = arith.constant 1.000000e+00 : f32
    %127 = vector.broadcast %cst_24 : f32 to vector<2x128xf32>
    %128 = arith.addf %127, %126 : vector<2x128xf32>
    %129 = arith.divf %127, %128 : vector<2x128xf32>
    %130 = vector.extract_strided_slice %111 {offsets = [0, 256], sizes = [2, 128], strides = [1, 1]} : vector<2x384xf32> to vector<2x128xf32>
    %131 = vector.extract_strided_slice %113 {offsets = [0, 256], sizes = [2, 128], strides = [1, 1]} : vector<2x384xf32> to vector<2x128xf32>
    %132 = vector.broadcast %11 : vector<1x128xf32> to vector<2x128xf32>
    %133 = arith.addf %131, %132 : vector<2x128xf32>
    %134 = arith.mulf %121, %133 : vector<2x128xf32>
    %135 = arith.addf %130, %134 : vector<2x128xf32>
    %136 = math.tanh %135 : vector<2x128xf32>
    %cst_25 = arith.constant 1.000000e+00 : f32
    %137 = vector.broadcast %cst_25 : f32 to vector<2x128xf32>
    %138 = arith.subf %137, %129 : vector<2x128xf32>
    %139 = arith.mulf %138, %136 : vector<2x128xf32>
    %140 = arith.mulf %129, %110 : vector<2x128xf32>
    %141 = arith.addf %139, %140 : vector<2x128xf32>
    %142 = vector.extract_strided_slice %16 {offsets = [8, 0], sizes = [2, 384], strides = [1, 1]} : vector<16x384xf32> to vector<2x384xf32>
    %143 = arith.truncf %141 : vector<2x128xf32> to vector<2x128xbf16>
    %cst_26 = arith.constant dense<0.000000e+00> : vector<2x384xf32>
    %144 = tpu.matmul %143, %10, %cst_26 {dimension_numbers = #tpu.dot_dimension_numbers<[1], [0], [0], [1], [0, 0, 1, 1], [], []>} : vector<2x128xbf16>, vector<128x384xbf16>, vector<2x384xf32> -> vector<2x384xf32>
    %145 = vector.extract_strided_slice %142 {offsets = [0, 0], sizes = [2, 128], strides = [1, 1]} : vector<2x384xf32> to vector<2x128xf32>
    %146 = vector.extract_strided_slice %144 {offsets = [0, 0], sizes = [2, 128], strides = [1, 1]} : vector<2x384xf32> to vector<2x128xf32>
    %147 = arith.addf %145, %146 : vector<2x128xf32>
    %148 = arith.negf %147 : vector<2x128xf32>
    %149 = math.exp %148 : vector<2x128xf32>
    %cst_27 = arith.constant 1.000000e+00 : f32
    %150 = vector.broadcast %cst_27 : f32 to vector<2x128xf32>
    %151 = arith.addf %150, %149 : vector<2x128xf32>
    %152 = arith.divf %150, %151 : vector<2x128xf32>
    %153 = vector.extract_strided_slice %142 {offsets = [0, 128], sizes = [2, 128], strides = [1, 1]} : vector<2x384xf32> to vector<2x128xf32>
    %154 = vector.extract_strided_slice %144 {offsets = [0, 128], sizes = [2, 128], strides = [1, 1]} : vector<2x384xf32> to vector<2x128xf32>
    %155 = arith.addf %153, %154 : vector<2x128xf32>
    %156 = arith.negf %155 : vector<2x128xf32>
    %157 = math.exp %156 : vector<2x128xf32>
    %cst_28 = arith.constant 1.000000e+00 : f32
    %158 = vector.broadcast %cst_28 : f32 to vector<2x128xf32>
    %159 = arith.addf %158, %157 : vector<2x128xf32>
    %160 = arith.divf %158, %159 : vector<2x128xf32>
    %161 = vector.extract_strided_slice %142 {offsets = [0, 256], sizes = [2, 128], strides = [1, 1]} : vector<2x384xf32> to vector<2x128xf32>
    %162 = vector.extract_strided_slice %144 {offsets = [0, 256], sizes = [2, 128], strides = [1, 1]} : vector<2x384xf32> to vector<2x128xf32>
    %163 = vector.broadcast %11 : vector<1x128xf32> to vector<2x128xf32>
    %164 = arith.addf %162, %163 : vector<2x128xf32>
    %165 = arith.mulf %152, %164 : vector<2x128xf32>
    %166 = arith.addf %161, %165 : vector<2x128xf32>
    %167 = math.tanh %166 : vector<2x128xf32>
    %cst_29 = arith.constant 1.000000e+00 : f32
    %168 = vector.broadcast %cst_29 : f32 to vector<2x128xf32>
    %169 = arith.subf %168, %160 : vector<2x128xf32>
    %170 = arith.mulf %169, %167 : vector<2x128xf32>
    %171 = arith.mulf %160, %141 : vector<2x128xf32>
    %172 = arith.addf %170, %171 : vector<2x128xf32>
    %173 = vector.extract_strided_slice %16 {offsets = [10, 0], sizes = [2, 384], strides = [1, 1]} : vector<16x384xf32> to vector<2x384xf32>
    %174 = arith.truncf %172 : vector<2x128xf32> to vector<2x128xbf16>
    %cst_30 = arith.constant dense<0.000000e+00> : vector<2x384xf32>
    %175 = tpu.matmul %174, %10, %cst_30 {dimension_numbers = #tpu.dot_dimension_numbers<[1], [0], [0], [1], [0, 0, 1, 1], [], []>} : vector<2x128xbf16>, vector<128x384xbf16>, vector<2x384xf32> -> vector<2x384xf32>
    %176 = vector.extract_strided_slice %173 {offsets = [0, 0], sizes = [2, 128], strides = [1, 1]} : vector<2x384xf32> to vector<2x128xf32>
    %177 = vector.extract_strided_slice %175 {offsets = [0, 0], sizes = [2, 128], strides = [1, 1]} : vector<2x384xf32> to vector<2x128xf32>
    %178 = arith.addf %176, %177 : vector<2x128xf32>
    %179 = arith.negf %178 : vector<2x128xf32>
    %180 = math.exp %179 : vector<2x128xf32>
    %cst_31 = arith.constant 1.000000e+00 : f32
    %181 = vector.broadcast %cst_31 : f32 to vector<2x128xf32>
    %182 = arith.addf %181, %180 : vector<2x128xf32>
    %183 = arith.divf %181, %182 : vector<2x128xf32>
    %184 = vector.extract_strided_slice %173 {offsets = [0, 128], sizes = [2, 128], strides = [1, 1]} : vector<2x384xf32> to vector<2x128xf32>
    %185 = vector.extract_strided_slice %175 {offsets = [0, 128], sizes = [2, 128], strides = [1, 1]} : vector<2x384xf32> to vector<2x128xf32>
    %186 = arith.addf %184, %185 : vector<2x128xf32>
    %187 = arith.negf %186 : vector<2x128xf32>
    %188 = math.exp %187 : vector<2x128xf32>
    %cst_32 = arith.constant 1.000000e+00 : f32
    %189 = vector.broadcast %cst_32 : f32 to vector<2x128xf32>
    %190 = arith.addf %189, %188 : vector<2x128xf32>
    %191 = arith.divf %189, %190 : vector<2x128xf32>
    %192 = vector.extract_strided_slice %173 {offsets = [0, 256], sizes = [2, 128], strides = [1, 1]} : vector<2x384xf32> to vector<2x128xf32>
    %193 = vector.extract_strided_slice %175 {offsets = [0, 256], sizes = [2, 128], strides = [1, 1]} : vector<2x384xf32> to vector<2x128xf32>
    %194 = vector.broadcast %11 : vector<1x128xf32> to vector<2x128xf32>
    %195 = arith.addf %193, %194 : vector<2x128xf32>
    %196 = arith.mulf %183, %195 : vector<2x128xf32>
    %197 = arith.addf %192, %196 : vector<2x128xf32>
    %198 = math.tanh %197 : vector<2x128xf32>
    %cst_33 = arith.constant 1.000000e+00 : f32
    %199 = vector.broadcast %cst_33 : f32 to vector<2x128xf32>
    %200 = arith.subf %199, %191 : vector<2x128xf32>
    %201 = arith.mulf %200, %198 : vector<2x128xf32>
    %202 = arith.mulf %191, %172 : vector<2x128xf32>
    %203 = arith.addf %201, %202 : vector<2x128xf32>
    %204 = vector.extract_strided_slice %16 {offsets = [12, 0], sizes = [2, 384], strides = [1, 1]} : vector<16x384xf32> to vector<2x384xf32>
    %205 = arith.truncf %203 : vector<2x128xf32> to vector<2x128xbf16>
    %cst_34 = arith.constant dense<0.000000e+00> : vector<2x384xf32>
    %206 = tpu.matmul %205, %10, %cst_34 {dimension_numbers = #tpu.dot_dimension_numbers<[1], [0], [0], [1], [0, 0, 1, 1], [], []>} : vector<2x128xbf16>, vector<128x384xbf16>, vector<2x384xf32> -> vector<2x384xf32>
    %207 = vector.extract_strided_slice %204 {offsets = [0, 0], sizes = [2, 128], strides = [1, 1]} : vector<2x384xf32> to vector<2x128xf32>
    %208 = vector.extract_strided_slice %206 {offsets = [0, 0], sizes = [2, 128], strides = [1, 1]} : vector<2x384xf32> to vector<2x128xf32>
    %209 = arith.addf %207, %208 : vector<2x128xf32>
    %210 = arith.negf %209 : vector<2x128xf32>
    %211 = math.exp %210 : vector<2x128xf32>
    %cst_35 = arith.constant 1.000000e+00 : f32
    %212 = vector.broadcast %cst_35 : f32 to vector<2x128xf32>
    %213 = arith.addf %212, %211 : vector<2x128xf32>
    %214 = arith.divf %212, %213 : vector<2x128xf32>
    %215 = vector.extract_strided_slice %204 {offsets = [0, 128], sizes = [2, 128], strides = [1, 1]} : vector<2x384xf32> to vector<2x128xf32>
    %216 = vector.extract_strided_slice %206 {offsets = [0, 128], sizes = [2, 128], strides = [1, 1]} : vector<2x384xf32> to vector<2x128xf32>
    %217 = arith.addf %215, %216 : vector<2x128xf32>
    %218 = arith.negf %217 : vector<2x128xf32>
    %219 = math.exp %218 : vector<2x128xf32>
    %cst_36 = arith.constant 1.000000e+00 : f32
    %220 = vector.broadcast %cst_36 : f32 to vector<2x128xf32>
    %221 = arith.addf %220, %219 : vector<2x128xf32>
    %222 = arith.divf %220, %221 : vector<2x128xf32>
    %223 = vector.extract_strided_slice %204 {offsets = [0, 256], sizes = [2, 128], strides = [1, 1]} : vector<2x384xf32> to vector<2x128xf32>
    %224 = vector.extract_strided_slice %206 {offsets = [0, 256], sizes = [2, 128], strides = [1, 1]} : vector<2x384xf32> to vector<2x128xf32>
    %225 = vector.broadcast %11 : vector<1x128xf32> to vector<2x128xf32>
    %226 = arith.addf %224, %225 : vector<2x128xf32>
    %227 = arith.mulf %214, %226 : vector<2x128xf32>
    %228 = arith.addf %223, %227 : vector<2x128xf32>
    %229 = math.tanh %228 : vector<2x128xf32>
    %cst_37 = arith.constant 1.000000e+00 : f32
    %230 = vector.broadcast %cst_37 : f32 to vector<2x128xf32>
    %231 = arith.subf %230, %222 : vector<2x128xf32>
    %232 = arith.mulf %231, %229 : vector<2x128xf32>
    %233 = arith.mulf %222, %203 : vector<2x128xf32>
    %234 = arith.addf %232, %233 : vector<2x128xf32>
    %235 = vector.extract_strided_slice %16 {offsets = [14, 0], sizes = [2, 384], strides = [1, 1]} : vector<16x384xf32> to vector<2x384xf32>
    %236 = arith.truncf %234 : vector<2x128xf32> to vector<2x128xbf16>
    %cst_38 = arith.constant dense<0.000000e+00> : vector<2x384xf32>
    %237 = tpu.matmul %236, %10, %cst_38 {dimension_numbers = #tpu.dot_dimension_numbers<[1], [0], [0], [1], [0, 0, 1, 1], [], []>} : vector<2x128xbf16>, vector<128x384xbf16>, vector<2x384xf32> -> vector<2x384xf32>
    %238 = vector.extract_strided_slice %235 {offsets = [0, 0], sizes = [2, 128], strides = [1, 1]} : vector<2x384xf32> to vector<2x128xf32>
    %239 = vector.extract_strided_slice %237 {offsets = [0, 0], sizes = [2, 128], strides = [1, 1]} : vector<2x384xf32> to vector<2x128xf32>
    %240 = arith.addf %238, %239 : vector<2x128xf32>
    %241 = arith.negf %240 : vector<2x128xf32>
    %242 = math.exp %241 : vector<2x128xf32>
    %cst_39 = arith.constant 1.000000e+00 : f32
    %243 = vector.broadcast %cst_39 : f32 to vector<2x128xf32>
    %244 = arith.addf %243, %242 : vector<2x128xf32>
    %245 = arith.divf %243, %244 : vector<2x128xf32>
    %246 = vector.extract_strided_slice %235 {offsets = [0, 128], sizes = [2, 128], strides = [1, 1]} : vector<2x384xf32> to vector<2x128xf32>
    %247 = vector.extract_strided_slice %237 {offsets = [0, 128], sizes = [2, 128], strides = [1, 1]} : vector<2x384xf32> to vector<2x128xf32>
    %248 = arith.addf %246, %247 : vector<2x128xf32>
    %249 = arith.negf %248 : vector<2x128xf32>
    %250 = math.exp %249 : vector<2x128xf32>
    %cst_40 = arith.constant 1.000000e+00 : f32
    %251 = vector.broadcast %cst_40 : f32 to vector<2x128xf32>
    %252 = arith.addf %251, %250 : vector<2x128xf32>
    %253 = arith.divf %251, %252 : vector<2x128xf32>
    %254 = vector.extract_strided_slice %235 {offsets = [0, 256], sizes = [2, 128], strides = [1, 1]} : vector<2x384xf32> to vector<2x128xf32>
    %255 = vector.extract_strided_slice %237 {offsets = [0, 256], sizes = [2, 128], strides = [1, 1]} : vector<2x384xf32> to vector<2x128xf32>
    %256 = vector.broadcast %11 : vector<1x128xf32> to vector<2x128xf32>
    %257 = arith.addf %255, %256 : vector<2x128xf32>
    %258 = arith.mulf %245, %257 : vector<2x128xf32>
    %259 = arith.addf %254, %258 : vector<2x128xf32>
    %260 = math.tanh %259 : vector<2x128xf32>
    %cst_41 = arith.constant 1.000000e+00 : f32
    %261 = vector.broadcast %cst_41 : f32 to vector<2x128xf32>
    %262 = arith.subf %261, %253 : vector<2x128xf32>
    %263 = arith.mulf %262, %260 : vector<2x128xf32>
    %264 = arith.mulf %253, %234 : vector<2x128xf32>
    %265 = arith.addf %263, %264 : vector<2x128xf32>
    %266 = tpu.concatenate %48, %79, %110, %141, %172, %203, %234, %265 in 0 : vector<2x128xf32>, vector<2x128xf32>, vector<2x128xf32>, vector<2x128xf32>, vector<2x128xf32>, vector<2x128xf32>, vector<2x128xf32>, vector<2x128xf32> -> vector<16x128xf32>
    %267 = arith.truncf %266 : vector<16x128xf32> to vector<16x128xbf16>
    %c0_42 = arith.constant 0 : index
    %c0_43 = arith.constant 0 : index
    %268 = vector.load %arg6[%c0_42, %c0_43] : memref<128x384xbf16, #tpu.memory_space<vmem>>, vector<128x384xbf16>
    %c0_44 = arith.constant 0 : index
    %c0_45 = arith.constant 0 : index
    %269 = vector.load %arg8[%c0_44, %c0_45] : memref<1x128xf32, #tpu.memory_space<vmem>>, vector<1x128xf32>
    %c0_46 = arith.constant 0 : index
    %c0_47 = arith.constant 0 : index
    %270 = vector.load %arg5[%c0_46, %c0_47] : memref<128x384xbf16, #tpu.memory_space<vmem>>, vector<128x384xbf16>
    %cst_48 = arith.constant dense<0.000000e+00> : vector<16x384xf32>
    %271 = tpu.matmul %267, %270, %cst_48 {dimension_numbers = #tpu.dot_dimension_numbers<[1], [0], [0], [1], [0, 0, 1, 1], [], []>} : vector<16x128xbf16>, vector<128x384xbf16>, vector<16x384xf32> -> vector<16x384xf32>
    %c0_49 = arith.constant 0 : index
    %c0_50 = arith.constant 0 : index
    %272 = vector.load %arg7[%c0_49, %c0_50] : memref<1x384xf32, #tpu.memory_space<vmem>>, vector<1x384xf32>
    %273 = vector.broadcast %272 : vector<1x384xf32> to vector<16x384xf32>
    %274 = arith.addf %271, %273 : vector<16x384xf32>
    %cst_51 = arith.constant 0.000000e+00 : f32
    %275 = vector.broadcast %cst_51 : f32 to vector<2x128xf32>
    %276 = vector.extract_strided_slice %274 {offsets = [0, 0], sizes = [2, 384], strides = [1, 1]} : vector<16x384xf32> to vector<2x384xf32>
    %277 = arith.truncf %275 : vector<2x128xf32> to vector<2x128xbf16>
    %cst_52 = arith.constant dense<0.000000e+00> : vector<2x384xf32>
    %278 = tpu.matmul %277, %268, %cst_52 {dimension_numbers = #tpu.dot_dimension_numbers<[1], [0], [0], [1], [0, 0, 1, 1], [], []>} : vector<2x128xbf16>, vector<128x384xbf16>, vector<2x384xf32> -> vector<2x384xf32>
    %279 = vector.extract_strided_slice %276 {offsets = [0, 0], sizes = [2, 128], strides = [1, 1]} : vector<2x384xf32> to vector<2x128xf32>
    %280 = vector.extract_strided_slice %278 {offsets = [0, 0], sizes = [2, 128], strides = [1, 1]} : vector<2x384xf32> to vector<2x128xf32>
    %281 = arith.addf %279, %280 : vector<2x128xf32>
    %282 = arith.negf %281 : vector<2x128xf32>
    %283 = math.exp %282 : vector<2x128xf32>
    %cst_53 = arith.constant 1.000000e+00 : f32
    %284 = vector.broadcast %cst_53 : f32 to vector<2x128xf32>
    %285 = arith.addf %284, %283 : vector<2x128xf32>
    %286 = arith.divf %284, %285 : vector<2x128xf32>
    %287 = vector.extract_strided_slice %276 {offsets = [0, 128], sizes = [2, 128], strides = [1, 1]} : vector<2x384xf32> to vector<2x128xf32>
    %288 = vector.extract_strided_slice %278 {offsets = [0, 128], sizes = [2, 128], strides = [1, 1]} : vector<2x384xf32> to vector<2x128xf32>
    %289 = arith.addf %287, %288 : vector<2x128xf32>
    %290 = arith.negf %289 : vector<2x128xf32>
    %291 = math.exp %290 : vector<2x128xf32>
    %cst_54 = arith.constant 1.000000e+00 : f32
    %292 = vector.broadcast %cst_54 : f32 to vector<2x128xf32>
    %293 = arith.addf %292, %291 : vector<2x128xf32>
    %294 = arith.divf %292, %293 : vector<2x128xf32>
    %295 = vector.extract_strided_slice %276 {offsets = [0, 256], sizes = [2, 128], strides = [1, 1]} : vector<2x384xf32> to vector<2x128xf32>
    %296 = vector.extract_strided_slice %278 {offsets = [0, 256], sizes = [2, 128], strides = [1, 1]} : vector<2x384xf32> to vector<2x128xf32>
    %297 = vector.broadcast %269 : vector<1x128xf32> to vector<2x128xf32>
    %298 = arith.addf %296, %297 : vector<2x128xf32>
    %299 = arith.mulf %286, %298 : vector<2x128xf32>
    %300 = arith.addf %295, %299 : vector<2x128xf32>
    %301 = math.tanh %300 : vector<2x128xf32>
    %cst_55 = arith.constant 1.000000e+00 : f32
    %302 = vector.broadcast %cst_55 : f32 to vector<2x128xf32>
    %303 = arith.subf %302, %294 : vector<2x128xf32>
    %304 = arith.mulf %303, %301 : vector<2x128xf32>
    %305 = arith.mulf %294, %275 : vector<2x128xf32>
    %306 = arith.addf %304, %305 : vector<2x128xf32>
    %307 = vector.extract_strided_slice %274 {offsets = [2, 0], sizes = [2, 384], strides = [1, 1]} : vector<16x384xf32> to vector<2x384xf32>
    %308 = arith.truncf %306 : vector<2x128xf32> to vector<2x128xbf16>
    %cst_56 = arith.constant dense<0.000000e+00> : vector<2x384xf32>
    %309 = tpu.matmul %308, %268, %cst_56 {dimension_numbers = #tpu.dot_dimension_numbers<[1], [0], [0], [1], [0, 0, 1, 1], [], []>} : vector<2x128xbf16>, vector<128x384xbf16>, vector<2x384xf32> -> vector<2x384xf32>
    %310 = vector.extract_strided_slice %307 {offsets = [0, 0], sizes = [2, 128], strides = [1, 1]} : vector<2x384xf32> to vector<2x128xf32>
    %311 = vector.extract_strided_slice %309 {offsets = [0, 0], sizes = [2, 128], strides = [1, 1]} : vector<2x384xf32> to vector<2x128xf32>
    %312 = arith.addf %310, %311 : vector<2x128xf32>
    %313 = arith.negf %312 : vector<2x128xf32>
    %314 = math.exp %313 : vector<2x128xf32>
    %cst_57 = arith.constant 1.000000e+00 : f32
    %315 = vector.broadcast %cst_57 : f32 to vector<2x128xf32>
    %316 = arith.addf %315, %314 : vector<2x128xf32>
    %317 = arith.divf %315, %316 : vector<2x128xf32>
    %318 = vector.extract_strided_slice %307 {offsets = [0, 128], sizes = [2, 128], strides = [1, 1]} : vector<2x384xf32> to vector<2x128xf32>
    %319 = vector.extract_strided_slice %309 {offsets = [0, 128], sizes = [2, 128], strides = [1, 1]} : vector<2x384xf32> to vector<2x128xf32>
    %320 = arith.addf %318, %319 : vector<2x128xf32>
    %321 = arith.negf %320 : vector<2x128xf32>
    %322 = math.exp %321 : vector<2x128xf32>
    %cst_58 = arith.constant 1.000000e+00 : f32
    %323 = vector.broadcast %cst_58 : f32 to vector<2x128xf32>
    %324 = arith.addf %323, %322 : vector<2x128xf32>
    %325 = arith.divf %323, %324 : vector<2x128xf32>
    %326 = vector.extract_strided_slice %307 {offsets = [0, 256], sizes = [2, 128], strides = [1, 1]} : vector<2x384xf32> to vector<2x128xf32>
    %327 = vector.extract_strided_slice %309 {offsets = [0, 256], sizes = [2, 128], strides = [1, 1]} : vector<2x384xf32> to vector<2x128xf32>
    %328 = vector.broadcast %269 : vector<1x128xf32> to vector<2x128xf32>
    %329 = arith.addf %327, %328 : vector<2x128xf32>
    %330 = arith.mulf %317, %329 : vector<2x128xf32>
    %331 = arith.addf %326, %330 : vector<2x128xf32>
    %332 = math.tanh %331 : vector<2x128xf32>
    %cst_59 = arith.constant 1.000000e+00 : f32
    %333 = vector.broadcast %cst_59 : f32 to vector<2x128xf32>
    %334 = arith.subf %333, %325 : vector<2x128xf32>
    %335 = arith.mulf %334, %332 : vector<2x128xf32>
    %336 = arith.mulf %325, %306 : vector<2x128xf32>
    %337 = arith.addf %335, %336 : vector<2x128xf32>
    %338 = vector.extract_strided_slice %274 {offsets = [4, 0], sizes = [2, 384], strides = [1, 1]} : vector<16x384xf32> to vector<2x384xf32>
    %339 = arith.truncf %337 : vector<2x128xf32> to vector<2x128xbf16>
    %cst_60 = arith.constant dense<0.000000e+00> : vector<2x384xf32>
    %340 = tpu.matmul %339, %268, %cst_60 {dimension_numbers = #tpu.dot_dimension_numbers<[1], [0], [0], [1], [0, 0, 1, 1], [], []>} : vector<2x128xbf16>, vector<128x384xbf16>, vector<2x384xf32> -> vector<2x384xf32>
    %341 = vector.extract_strided_slice %338 {offsets = [0, 0], sizes = [2, 128], strides = [1, 1]} : vector<2x384xf32> to vector<2x128xf32>
    %342 = vector.extract_strided_slice %340 {offsets = [0, 0], sizes = [2, 128], strides = [1, 1]} : vector<2x384xf32> to vector<2x128xf32>
    %343 = arith.addf %341, %342 : vector<2x128xf32>
    %344 = arith.negf %343 : vector<2x128xf32>
    %345 = math.exp %344 : vector<2x128xf32>
    %cst_61 = arith.constant 1.000000e+00 : f32
    %346 = vector.broadcast %cst_61 : f32 to vector<2x128xf32>
    %347 = arith.addf %346, %345 : vector<2x128xf32>
    %348 = arith.divf %346, %347 : vector<2x128xf32>
    %349 = vector.extract_strided_slice %338 {offsets = [0, 128], sizes = [2, 128], strides = [1, 1]} : vector<2x384xf32> to vector<2x128xf32>
    %350 = vector.extract_strided_slice %340 {offsets = [0, 128], sizes = [2, 128], strides = [1, 1]} : vector<2x384xf32> to vector<2x128xf32>
    %351 = arith.addf %349, %350 : vector<2x128xf32>
    %352 = arith.negf %351 : vector<2x128xf32>
    %353 = math.exp %352 : vector<2x128xf32>
    %cst_62 = arith.constant 1.000000e+00 : f32
    %354 = vector.broadcast %cst_62 : f32 to vector<2x128xf32>
    %355 = arith.addf %354, %353 : vector<2x128xf32>
    %356 = arith.divf %354, %355 : vector<2x128xf32>
    %357 = vector.extract_strided_slice %338 {offsets = [0, 256], sizes = [2, 128], strides = [1, 1]} : vector<2x384xf32> to vector<2x128xf32>
    %358 = vector.extract_strided_slice %340 {offsets = [0, 256], sizes = [2, 128], strides = [1, 1]} : vector<2x384xf32> to vector<2x128xf32>
    %359 = vector.broadcast %269 : vector<1x128xf32> to vector<2x128xf32>
    %360 = arith.addf %358, %359 : vector<2x128xf32>
    %361 = arith.mulf %348, %360 : vector<2x128xf32>
    %362 = arith.addf %357, %361 : vector<2x128xf32>
    %363 = math.tanh %362 : vector<2x128xf32>
    %cst_63 = arith.constant 1.000000e+00 : f32
    %364 = vector.broadcast %cst_63 : f32 to vector<2x128xf32>
    %365 = arith.subf %364, %356 : vector<2x128xf32>
    %366 = arith.mulf %365, %363 : vector<2x128xf32>
    %367 = arith.mulf %356, %337 : vector<2x128xf32>
    %368 = arith.addf %366, %367 : vector<2x128xf32>
    %369 = vector.extract_strided_slice %274 {offsets = [6, 0], sizes = [2, 384], strides = [1, 1]} : vector<16x384xf32> to vector<2x384xf32>
    %370 = arith.truncf %368 : vector<2x128xf32> to vector<2x128xbf16>
    %cst_64 = arith.constant dense<0.000000e+00> : vector<2x384xf32>
    %371 = tpu.matmul %370, %268, %cst_64 {dimension_numbers = #tpu.dot_dimension_numbers<[1], [0], [0], [1], [0, 0, 1, 1], [], []>} : vector<2x128xbf16>, vector<128x384xbf16>, vector<2x384xf32> -> vector<2x384xf32>
    %372 = vector.extract_strided_slice %369 {offsets = [0, 0], sizes = [2, 128], strides = [1, 1]} : vector<2x384xf32> to vector<2x128xf32>
    %373 = vector.extract_strided_slice %371 {offsets = [0, 0], sizes = [2, 128], strides = [1, 1]} : vector<2x384xf32> to vector<2x128xf32>
    %374 = arith.addf %372, %373 : vector<2x128xf32>
    %375 = arith.negf %374 : vector<2x128xf32>
    %376 = math.exp %375 : vector<2x128xf32>
    %cst_65 = arith.constant 1.000000e+00 : f32
    %377 = vector.broadcast %cst_65 : f32 to vector<2x128xf32>
    %378 = arith.addf %377, %376 : vector<2x128xf32>
    %379 = arith.divf %377, %378 : vector<2x128xf32>
    %380 = vector.extract_strided_slice %369 {offsets = [0, 128], sizes = [2, 128], strides = [1, 1]} : vector<2x384xf32> to vector<2x128xf32>
    %381 = vector.extract_strided_slice %371 {offsets = [0, 128], sizes = [2, 128], strides = [1, 1]} : vector<2x384xf32> to vector<2x128xf32>
    %382 = arith.addf %380, %381 : vector<2x128xf32>
    %383 = arith.negf %382 : vector<2x128xf32>
    %384 = math.exp %383 : vector<2x128xf32>
    %cst_66 = arith.constant 1.000000e+00 : f32
    %385 = vector.broadcast %cst_66 : f32 to vector<2x128xf32>
    %386 = arith.addf %385, %384 : vector<2x128xf32>
    %387 = arith.divf %385, %386 : vector<2x128xf32>
    %388 = vector.extract_strided_slice %369 {offsets = [0, 256], sizes = [2, 128], strides = [1, 1]} : vector<2x384xf32> to vector<2x128xf32>
    %389 = vector.extract_strided_slice %371 {offsets = [0, 256], sizes = [2, 128], strides = [1, 1]} : vector<2x384xf32> to vector<2x128xf32>
    %390 = vector.broadcast %269 : vector<1x128xf32> to vector<2x128xf32>
    %391 = arith.addf %389, %390 : vector<2x128xf32>
    %392 = arith.mulf %379, %391 : vector<2x128xf32>
    %393 = arith.addf %388, %392 : vector<2x128xf32>
    %394 = math.tanh %393 : vector<2x128xf32>
    %cst_67 = arith.constant 1.000000e+00 : f32
    %395 = vector.broadcast %cst_67 : f32 to vector<2x128xf32>
    %396 = arith.subf %395, %387 : vector<2x128xf32>
    %397 = arith.mulf %396, %394 : vector<2x128xf32>
    %398 = arith.mulf %387, %368 : vector<2x128xf32>
    %399 = arith.addf %397, %398 : vector<2x128xf32>
    %400 = vector.extract_strided_slice %274 {offsets = [8, 0], sizes = [2, 384], strides = [1, 1]} : vector<16x384xf32> to vector<2x384xf32>
    %401 = arith.truncf %399 : vector<2x128xf32> to vector<2x128xbf16>
    %cst_68 = arith.constant dense<0.000000e+00> : vector<2x384xf32>
    %402 = tpu.matmul %401, %268, %cst_68 {dimension_numbers = #tpu.dot_dimension_numbers<[1], [0], [0], [1], [0, 0, 1, 1], [], []>} : vector<2x128xbf16>, vector<128x384xbf16>, vector<2x384xf32> -> vector<2x384xf32>
    %403 = vector.extract_strided_slice %400 {offsets = [0, 0], sizes = [2, 128], strides = [1, 1]} : vector<2x384xf32> to vector<2x128xf32>
    %404 = vector.extract_strided_slice %402 {offsets = [0, 0], sizes = [2, 128], strides = [1, 1]} : vector<2x384xf32> to vector<2x128xf32>
    %405 = arith.addf %403, %404 : vector<2x128xf32>
    %406 = arith.negf %405 : vector<2x128xf32>
    %407 = math.exp %406 : vector<2x128xf32>
    %cst_69 = arith.constant 1.000000e+00 : f32
    %408 = vector.broadcast %cst_69 : f32 to vector<2x128xf32>
    %409 = arith.addf %408, %407 : vector<2x128xf32>
    %410 = arith.divf %408, %409 : vector<2x128xf32>
    %411 = vector.extract_strided_slice %400 {offsets = [0, 128], sizes = [2, 128], strides = [1, 1]} : vector<2x384xf32> to vector<2x128xf32>
    %412 = vector.extract_strided_slice %402 {offsets = [0, 128], sizes = [2, 128], strides = [1, 1]} : vector<2x384xf32> to vector<2x128xf32>
    %413 = arith.addf %411, %412 : vector<2x128xf32>
    %414 = arith.negf %413 : vector<2x128xf32>
    %415 = math.exp %414 : vector<2x128xf32>
    %cst_70 = arith.constant 1.000000e+00 : f32
    %416 = vector.broadcast %cst_70 : f32 to vector<2x128xf32>
    %417 = arith.addf %416, %415 : vector<2x128xf32>
    %418 = arith.divf %416, %417 : vector<2x128xf32>
    %419 = vector.extract_strided_slice %400 {offsets = [0, 256], sizes = [2, 128], strides = [1, 1]} : vector<2x384xf32> to vector<2x128xf32>
    %420 = vector.extract_strided_slice %402 {offsets = [0, 256], sizes = [2, 128], strides = [1, 1]} : vector<2x384xf32> to vector<2x128xf32>
    %421 = vector.broadcast %269 : vector<1x128xf32> to vector<2x128xf32>
    %422 = arith.addf %420, %421 : vector<2x128xf32>
    %423 = arith.mulf %410, %422 : vector<2x128xf32>
    %424 = arith.addf %419, %423 : vector<2x128xf32>
    %425 = math.tanh %424 : vector<2x128xf32>
    %cst_71 = arith.constant 1.000000e+00 : f32
    %426 = vector.broadcast %cst_71 : f32 to vector<2x128xf32>
    %427 = arith.subf %426, %418 : vector<2x128xf32>
    %428 = arith.mulf %427, %425 : vector<2x128xf32>
    %429 = arith.mulf %418, %399 : vector<2x128xf32>
    %430 = arith.addf %428, %429 : vector<2x128xf32>
    %431 = vector.extract_strided_slice %274 {offsets = [10, 0], sizes = [2, 384], strides = [1, 1]} : vector<16x384xf32> to vector<2x384xf32>
    %432 = arith.truncf %430 : vector<2x128xf32> to vector<2x128xbf16>
    %cst_72 = arith.constant dense<0.000000e+00> : vector<2x384xf32>
    %433 = tpu.matmul %432, %268, %cst_72 {dimension_numbers = #tpu.dot_dimension_numbers<[1], [0], [0], [1], [0, 0, 1, 1], [], []>} : vector<2x128xbf16>, vector<128x384xbf16>, vector<2x384xf32> -> vector<2x384xf32>
    %434 = vector.extract_strided_slice %431 {offsets = [0, 0], sizes = [2, 128], strides = [1, 1]} : vector<2x384xf32> to vector<2x128xf32>
    %435 = vector.extract_strided_slice %433 {offsets = [0, 0], sizes = [2, 128], strides = [1, 1]} : vector<2x384xf32> to vector<2x128xf32>
    %436 = arith.addf %434, %435 : vector<2x128xf32>
    %437 = arith.negf %436 : vector<2x128xf32>
    %438 = math.exp %437 : vector<2x128xf32>
    %cst_73 = arith.constant 1.000000e+00 : f32
    %439 = vector.broadcast %cst_73 : f32 to vector<2x128xf32>
    %440 = arith.addf %439, %438 : vector<2x128xf32>
    %441 = arith.divf %439, %440 : vector<2x128xf32>
    %442 = vector.extract_strided_slice %431 {offsets = [0, 128], sizes = [2, 128], strides = [1, 1]} : vector<2x384xf32> to vector<2x128xf32>
    %443 = vector.extract_strided_slice %433 {offsets = [0, 128], sizes = [2, 128], strides = [1, 1]} : vector<2x384xf32> to vector<2x128xf32>
    %444 = arith.addf %442, %443 : vector<2x128xf32>
    %445 = arith.negf %444 : vector<2x128xf32>
    %446 = math.exp %445 : vector<2x128xf32>
    %cst_74 = arith.constant 1.000000e+00 : f32
    %447 = vector.broadcast %cst_74 : f32 to vector<2x128xf32>
    %448 = arith.addf %447, %446 : vector<2x128xf32>
    %449 = arith.divf %447, %448 : vector<2x128xf32>
    %450 = vector.extract_strided_slice %431 {offsets = [0, 256], sizes = [2, 128], strides = [1, 1]} : vector<2x384xf32> to vector<2x128xf32>
    %451 = vector.extract_strided_slice %433 {offsets = [0, 256], sizes = [2, 128], strides = [1, 1]} : vector<2x384xf32> to vector<2x128xf32>
    %452 = vector.broadcast %269 : vector<1x128xf32> to vector<2x128xf32>
    %453 = arith.addf %451, %452 : vector<2x128xf32>
    %454 = arith.mulf %441, %453 : vector<2x128xf32>
    %455 = arith.addf %450, %454 : vector<2x128xf32>
    %456 = math.tanh %455 : vector<2x128xf32>
    %cst_75 = arith.constant 1.000000e+00 : f32
    %457 = vector.broadcast %cst_75 : f32 to vector<2x128xf32>
    %458 = arith.subf %457, %449 : vector<2x128xf32>
    %459 = arith.mulf %458, %456 : vector<2x128xf32>
    %460 = arith.mulf %449, %430 : vector<2x128xf32>
    %461 = arith.addf %459, %460 : vector<2x128xf32>
    %462 = vector.extract_strided_slice %274 {offsets = [12, 0], sizes = [2, 384], strides = [1, 1]} : vector<16x384xf32> to vector<2x384xf32>
    %463 = arith.truncf %461 : vector<2x128xf32> to vector<2x128xbf16>
    %cst_76 = arith.constant dense<0.000000e+00> : vector<2x384xf32>
    %464 = tpu.matmul %463, %268, %cst_76 {dimension_numbers = #tpu.dot_dimension_numbers<[1], [0], [0], [1], [0, 0, 1, 1], [], []>} : vector<2x128xbf16>, vector<128x384xbf16>, vector<2x384xf32> -> vector<2x384xf32>
    %465 = vector.extract_strided_slice %462 {offsets = [0, 0], sizes = [2, 128], strides = [1, 1]} : vector<2x384xf32> to vector<2x128xf32>
    %466 = vector.extract_strided_slice %464 {offsets = [0, 0], sizes = [2, 128], strides = [1, 1]} : vector<2x384xf32> to vector<2x128xf32>
    %467 = arith.addf %465, %466 : vector<2x128xf32>
    %468 = arith.negf %467 : vector<2x128xf32>
    %469 = math.exp %468 : vector<2x128xf32>
    %cst_77 = arith.constant 1.000000e+00 : f32
    %470 = vector.broadcast %cst_77 : f32 to vector<2x128xf32>
    %471 = arith.addf %470, %469 : vector<2x128xf32>
    %472 = arith.divf %470, %471 : vector<2x128xf32>
    %473 = vector.extract_strided_slice %462 {offsets = [0, 128], sizes = [2, 128], strides = [1, 1]} : vector<2x384xf32> to vector<2x128xf32>
    %474 = vector.extract_strided_slice %464 {offsets = [0, 128], sizes = [2, 128], strides = [1, 1]} : vector<2x384xf32> to vector<2x128xf32>
    %475 = arith.addf %473, %474 : vector<2x128xf32>
    %476 = arith.negf %475 : vector<2x128xf32>
    %477 = math.exp %476 : vector<2x128xf32>
    %cst_78 = arith.constant 1.000000e+00 : f32
    %478 = vector.broadcast %cst_78 : f32 to vector<2x128xf32>
    %479 = arith.addf %478, %477 : vector<2x128xf32>
    %480 = arith.divf %478, %479 : vector<2x128xf32>
    %481 = vector.extract_strided_slice %462 {offsets = [0, 256], sizes = [2, 128], strides = [1, 1]} : vector<2x384xf32> to vector<2x128xf32>
    %482 = vector.extract_strided_slice %464 {offsets = [0, 256], sizes = [2, 128], strides = [1, 1]} : vector<2x384xf32> to vector<2x128xf32>
    %483 = vector.broadcast %269 : vector<1x128xf32> to vector<2x128xf32>
    %484 = arith.addf %482, %483 : vector<2x128xf32>
    %485 = arith.mulf %472, %484 : vector<2x128xf32>
    %486 = arith.addf %481, %485 : vector<2x128xf32>
    %487 = math.tanh %486 : vector<2x128xf32>
    %cst_79 = arith.constant 1.000000e+00 : f32
    %488 = vector.broadcast %cst_79 : f32 to vector<2x128xf32>
    %489 = arith.subf %488, %480 : vector<2x128xf32>
    %490 = arith.mulf %489, %487 : vector<2x128xf32>
    %491 = arith.mulf %480, %461 : vector<2x128xf32>
    %492 = arith.addf %490, %491 : vector<2x128xf32>
    %493 = vector.extract_strided_slice %274 {offsets = [14, 0], sizes = [2, 384], strides = [1, 1]} : vector<16x384xf32> to vector<2x384xf32>
    %494 = arith.truncf %492 : vector<2x128xf32> to vector<2x128xbf16>
    %cst_80 = arith.constant dense<0.000000e+00> : vector<2x384xf32>
    %495 = tpu.matmul %494, %268, %cst_80 {dimension_numbers = #tpu.dot_dimension_numbers<[1], [0], [0], [1], [0, 0, 1, 1], [], []>} : vector<2x128xbf16>, vector<128x384xbf16>, vector<2x384xf32> -> vector<2x384xf32>
    %496 = vector.extract_strided_slice %493 {offsets = [0, 0], sizes = [2, 128], strides = [1, 1]} : vector<2x384xf32> to vector<2x128xf32>
    %497 = vector.extract_strided_slice %495 {offsets = [0, 0], sizes = [2, 128], strides = [1, 1]} : vector<2x384xf32> to vector<2x128xf32>
    %498 = arith.addf %496, %497 : vector<2x128xf32>
    %499 = arith.negf %498 : vector<2x128xf32>
    %500 = math.exp %499 : vector<2x128xf32>
    %cst_81 = arith.constant 1.000000e+00 : f32
    %501 = vector.broadcast %cst_81 : f32 to vector<2x128xf32>
    %502 = arith.addf %501, %500 : vector<2x128xf32>
    %503 = arith.divf %501, %502 : vector<2x128xf32>
    %504 = vector.extract_strided_slice %493 {offsets = [0, 128], sizes = [2, 128], strides = [1, 1]} : vector<2x384xf32> to vector<2x128xf32>
    %505 = vector.extract_strided_slice %495 {offsets = [0, 128], sizes = [2, 128], strides = [1, 1]} : vector<2x384xf32> to vector<2x128xf32>
    %506 = arith.addf %504, %505 : vector<2x128xf32>
    %507 = arith.negf %506 : vector<2x128xf32>
    %508 = math.exp %507 : vector<2x128xf32>
    %cst_82 = arith.constant 1.000000e+00 : f32
    %509 = vector.broadcast %cst_82 : f32 to vector<2x128xf32>
    %510 = arith.addf %509, %508 : vector<2x128xf32>
    %511 = arith.divf %509, %510 : vector<2x128xf32>
    %512 = vector.extract_strided_slice %493 {offsets = [0, 256], sizes = [2, 128], strides = [1, 1]} : vector<2x384xf32> to vector<2x128xf32>
    %513 = vector.extract_strided_slice %495 {offsets = [0, 256], sizes = [2, 128], strides = [1, 1]} : vector<2x384xf32> to vector<2x128xf32>
    %514 = vector.broadcast %269 : vector<1x128xf32> to vector<2x128xf32>
    %515 = arith.addf %513, %514 : vector<2x128xf32>
    %516 = arith.mulf %503, %515 : vector<2x128xf32>
    %517 = arith.addf %512, %516 : vector<2x128xf32>
    %518 = math.tanh %517 : vector<2x128xf32>
    %cst_83 = arith.constant 1.000000e+00 : f32
    %519 = vector.broadcast %cst_83 : f32 to vector<2x128xf32>
    %520 = arith.subf %519, %511 : vector<2x128xf32>
    %521 = arith.mulf %520, %518 : vector<2x128xf32>
    %522 = arith.mulf %511, %492 : vector<2x128xf32>
    %523 = arith.addf %521, %522 : vector<2x128xf32>
    %c0_i32_84 = arith.constant 0 : i32
    %524 = tpu.memref_slice %arg22[%c0_i32_84] : memref<4x!tpu.dma_semaphore, #tpu.memory_space<semaphore_mem>> -> memref<1x!tpu.dma_semaphore, #tpu.memory_space<semaphore_mem>>
    %525 = tpu.memref_squeeze %524 : memref<1x!tpu.dma_semaphore, #tpu.memory_space<semaphore_mem>> -> memref<!tpu.dma_semaphore, #tpu.memory_space<semaphore_mem>>
    tpu.wait_dma2 semaphore(%525 : memref<!tpu.dma_semaphore, #tpu.memory_space<semaphore_mem>>) src(%arg13 : memref<128x1024xbf16, #tpu.memory_space<any>>) dst(%arg18 : memref<128x1024xbf16, #tpu.memory_space<vmem>>)
    %c1_i32_85 = arith.constant 1 : i32
    %526 = tpu.memref_slice %arg22[%c1_i32_85] : memref<4x!tpu.dma_semaphore, #tpu.memory_space<semaphore_mem>> -> memref<1x!tpu.dma_semaphore, #tpu.memory_space<semaphore_mem>>
    %527 = tpu.memref_squeeze %526 : memref<1x!tpu.dma_semaphore, #tpu.memory_space<semaphore_mem>> -> memref<!tpu.dma_semaphore, #tpu.memory_space<semaphore_mem>>
    tpu.wait_dma2 semaphore(%527 : memref<!tpu.dma_semaphore, #tpu.memory_space<semaphore_mem>>) src(%arg14 : memref<1024x512xbf16, #tpu.memory_space<any>>) dst(%arg19 : memref<1024x512xbf16, #tpu.memory_space<vmem>>)
    %c2_i32_86 = arith.constant 2 : i32
    %528 = tpu.memref_slice %arg22[%c2_i32_86] : memref<4x!tpu.dma_semaphore, #tpu.memory_space<semaphore_mem>> -> memref<1x!tpu.dma_semaphore, #tpu.memory_space<semaphore_mem>>
    %529 = tpu.memref_squeeze %528 : memref<1x!tpu.dma_semaphore, #tpu.memory_space<semaphore_mem>> -> memref<!tpu.dma_semaphore, #tpu.memory_space<semaphore_mem>>
    tpu.wait_dma2 semaphore(%529 : memref<!tpu.dma_semaphore, #tpu.memory_space<semaphore_mem>>) src(%arg15 : memref<512x128xbf16, #tpu.memory_space<any>>) dst(%arg20 : memref<512x128xbf16, #tpu.memory_space<vmem>>)
    %c3_i32_87 = arith.constant 3 : i32
    %530 = tpu.memref_slice %arg22[%c3_i32_87] : memref<4x!tpu.dma_semaphore, #tpu.memory_space<semaphore_mem>> -> memref<1x!tpu.dma_semaphore, #tpu.memory_space<semaphore_mem>>
    %531 = tpu.memref_squeeze %530 : memref<1x!tpu.dma_semaphore, #tpu.memory_space<semaphore_mem>> -> memref<!tpu.dma_semaphore, #tpu.memory_space<semaphore_mem>>
    tpu.wait_dma2 semaphore(%531 : memref<!tpu.dma_semaphore, #tpu.memory_space<semaphore_mem>>) src(%arg16 : memref<128x13xbf16, #tpu.memory_space<any>>) dst(%arg21 : memref<128x13xbf16, #tpu.memory_space<vmem>>)
    %532 = arith.truncf %523 : vector<2x128xf32> to vector<2x128xbf16>
    %c0_88 = arith.constant 0 : index
    %c0_89 = arith.constant 0 : index
    %533 = vector.load %arg18[%c0_88, %c0_89] : memref<128x1024xbf16, #tpu.memory_space<vmem>>, vector<128x1024xbf16>
    %cst_90 = arith.constant dense<0.000000e+00> : vector<2x1024xf32>
    %534 = tpu.matmul %532, %533, %cst_90 {dimension_numbers = #tpu.dot_dimension_numbers<[1], [0], [0], [1], [0, 0, 1, 1], [], []>} : vector<2x128xbf16>, vector<128x1024xbf16>, vector<2x1024xf32> -> vector<2x1024xf32>
    %c0_91 = arith.constant 0 : index
    %c0_92 = arith.constant 0 : index
    %535 = vector.load %arg9[%c0_91, %c0_92] : memref<1x1024xf32, #tpu.memory_space<vmem>>, vector<1x1024xf32>
    %536 = vector.broadcast %535 : vector<1x1024xf32> to vector<2x1024xf32>
    %537 = arith.addf %534, %536 : vector<2x1024xf32>
    %cst_93 = arith.constant 0.000000e+00 : f32
    %538 = vector.broadcast %cst_93 : f32 to vector<2x1024xf32>
    %539 = arith.maximumf %537, %538 : vector<2x1024xf32>
    %540 = arith.truncf %539 : vector<2x1024xf32> to vector<2x1024xbf16>
    %c0_94 = arith.constant 0 : index
    %c0_95 = arith.constant 0 : index
    %541 = vector.load %arg19[%c0_94, %c0_95] : memref<1024x512xbf16, #tpu.memory_space<vmem>>, vector<1024x512xbf16>
    %cst_96 = arith.constant dense<0.000000e+00> : vector<2x512xf32>
    %542 = tpu.matmul %540, %541, %cst_96 {dimension_numbers = #tpu.dot_dimension_numbers<[1], [0], [0], [1], [0, 0, 1, 1], [], []>} : vector<2x1024xbf16>, vector<1024x512xbf16>, vector<2x512xf32> -> vector<2x512xf32>
    %c0_97 = arith.constant 0 : index
    %c0_98 = arith.constant 0 : index
    %543 = vector.load %arg10[%c0_97, %c0_98] : memref<1x512xf32, #tpu.memory_space<vmem>>, vector<1x512xf32>
    %544 = vector.broadcast %543 : vector<1x512xf32> to vector<2x512xf32>
    %545 = arith.addf %542, %544 : vector<2x512xf32>
    %cst_99 = arith.constant 0.000000e+00 : f32
    %546 = vector.broadcast %cst_99 : f32 to vector<2x512xf32>
    %547 = arith.maximumf %545, %546 : vector<2x512xf32>
    %548 = arith.truncf %547 : vector<2x512xf32> to vector<2x512xbf16>
    %c0_100 = arith.constant 0 : index
    %c0_101 = arith.constant 0 : index
    %549 = vector.load %arg20[%c0_100, %c0_101] : memref<512x128xbf16, #tpu.memory_space<vmem>>, vector<512x128xbf16>
    %cst_102 = arith.constant dense<0.000000e+00> : vector<2x128xf32>
    %550 = tpu.matmul %548, %549, %cst_102 {dimension_numbers = #tpu.dot_dimension_numbers<[1], [0], [0], [1], [0, 0, 1, 1], [], []>} : vector<2x512xbf16>, vector<512x128xbf16>, vector<2x128xf32> -> vector<2x128xf32>
    %c0_103 = arith.constant 0 : index
    %c0_104 = arith.constant 0 : index
    %551 = vector.load %arg11[%c0_103, %c0_104] : memref<1x128xf32, #tpu.memory_space<vmem>>, vector<1x128xf32>
    %552 = vector.broadcast %551 : vector<1x128xf32> to vector<2x128xf32>
    %553 = arith.addf %550, %552 : vector<2x128xf32>
    %cst_105 = arith.constant 0.000000e+00 : f32
    %554 = vector.broadcast %cst_105 : f32 to vector<2x128xf32>
    %555 = arith.maximumf %553, %554 : vector<2x128xf32>
    %556 = arith.truncf %555 : vector<2x128xf32> to vector<2x128xbf16>
    %c0_106 = arith.constant 0 : index
    %c0_107 = arith.constant 0 : index
    %557 = vector.load %arg21[%c0_106, %c0_107] : memref<128x13xbf16, #tpu.memory_space<vmem>>, vector<128x13xbf16>
    %cst_108 = arith.constant dense<0.000000e+00> : vector<2x13xf32>
    %558 = tpu.matmul %556, %557, %cst_108 {dimension_numbers = #tpu.dot_dimension_numbers<[1], [0], [0], [1], [0, 0, 1, 1], [], []>} : vector<2x128xbf16>, vector<128x13xbf16>, vector<2x13xf32> -> vector<2x13xf32>
    %c0_109 = arith.constant 0 : index
    %c0_110 = arith.constant 0 : index
    %559 = vector.load %arg12[%c0_109, %c0_110] : memref<1x13xf32, #tpu.memory_space<vmem>>, vector<1x13xf32>
    %560 = vector.broadcast %559 : vector<1x13xf32> to vector<2x13xf32>
    %561 = arith.addf %558, %560 : vector<2x13xf32>
    %c0_111 = arith.constant 0 : index
    %c0_112 = arith.constant 0 : index
    %562 = vector.load %arg17[%c0_111, %c0_112] : memref<2x13xf32, #tpu.memory_space<vmem>>, vector<2x13xf32>
    tpu.vector_store %arg17[%c0_111, %c0_112], %561 {strides = array<i32>} : memref<2x13xf32, #tpu.memory_space<vmem>>, vector<2x13xf32>,
    return
  }
}

</mosaic_0001>

<bundles_post_ra>
// kernel: rnn_forward.1
= control target key start
LH: loop header
LB: loop body
LE: loop exit
PB: predicated region body
PF: predicated region fallthrough
CT: control target
= control target key end

     0   :  { %s6592_s0 = inlined_call_operand.vmem [shape: f32[16,128], index: 0, kind: input, shape index: {}]   ;;  %s6593_s1 = inlined_call_operand.hbm [shape: bf16[128,384], index: 1, kind: input, shape index: {}]   ;;  %s6594_s2 = inlined_call_operand.hbm [shape: bf16[128,384], index: 2, kind: input, shape index: {}]   ;;  %s6595_s3 = inlined_call_operand.vmem [shape: f32[1,384], index: 3, kind: input, shape index: {}]   ;;  %s6596_s4 = inlined_call_operand.vmem [shape: f32[1,128], index: 4, kind: input, shape index: {}]   ;;  %s6597_s5 = inlined_call_operand.hbm [shape: bf16[128,384], index: 5, kind: input, shape index: {}]   ;;  %s6598_s6 = inlined_call_operand.hbm [shape: bf16[128,384], index: 6, kind: input, shape index: {}]   ;;  %s6599_s7 = inlined_call_operand.vmem [shape: f32[1,384], index: 7, kind: input, shape index: {}]   ;;  %s6600_s8 = inlined_call_operand.vmem [shape: f32[1,128], index: 8, kind: input, shape index: {}]   ;;  %s6601_s9 = inlined_call_operand.vmem [shape: f32[1,1024], index: 9, kind: input, shape index: {}]   ;;  %s6602_s10 = inlined_call_operand.vmem [shape: f32[1,512], index: 10, kind: input, shape index: {}]   ;;  %s6603_s11 = inlined_call_operand.vmem [shape: f32[1,128], index: 11, kind: input, shape index: {}]   ;;  %s6604_s12 = inlined_call_operand.vmem [shape: f32[1,13], index: 12, kind: input, shape index: {}]   ;;  %s6605_s13 = inlined_call_operand.hbm [shape: bf16[128,1024], index: 13, kind: input, shape index: {}]   ;;  %s6606_s14 = inlined_call_operand.hbm [shape: bf16[1024,512], index: 14, kind: input, shape index: {}]   ;;  %s6607_s15 = inlined_call_operand.hbm [shape: bf16[512,128], index: 15, kind: input, shape index: {}]   ;;  %s6608_s16 = inlined_call_operand.vmem [shape: bf16[128,13], index: 16, kind: input, shape index: {}]   ;;  %s6609_s17 = inlined_call_operand.hbm [shape: f32[2,13], index: 17, kind: output, shape index: {}]  }
   0x1   :  { %6617 = sst [smem:[#allocation33_spill]] %s6592_s0 }
   0x2   :  { %6618 = sst [smem:[#allocation34_spill]] %s6593_s1 }
   0x3   :  { %6619 = sst [smem:[#allocation35_spill]] %s6609_s17 }
   0x4   :  { %22 = vsyncpa [#allocation8], 0 }
   0x5   :  { %23 = vsyncpa [#allocation11], 0 }
   0x6   :  { %24 = vsyncpa [#allocation14], 0 }
   0x7   :  { %25 = vsyncpa [#allocation9], 0  ;;  %s5349_s24 = smov [#allocation10]   ;;  %s5350_s26 = smov [#allocation7]  }
   0x8   :  { %s45_s25 = sshll.u32 %s5349_s24, 4  ;;  %s33_s27 = sshll.u32 %s5350_s26, 4  ;;  %s46_s25 = int_to_ptr.vmem [resolvable:$true] %s45_s25  ;;  %s5464_s27 = int_to_ptr.vmem [resolvable:$true] %s33_s27 }
   0x9   :  { %s5201_s0 = scalar_lea.hbm %s6594_s2, 3072 }
   0xa   :  { %p5202_p0 = scmp.ne.s32.totalorder %s6594_s2, %s5201_s0  ;;  %p5205_p1 = scmp.lt.u32.totalorder %s5201_s0, %s6594_s2 }
   0xc   :  { %p5207_p2 = pnand %p5205_p1, %p5202_p0 }
   0xe   :  { %5210 = shalt.err (!%p5207_p2)
}
   0xf   :  { %s5211_s20 = scalar_lea.vmem %s46_s25, 3072  ;;  %p5216_p4 = scmp.lt.s32.totalorder %s46_s25, %s46_s25 }
  0x10   :  { %p5212_p3 = scmp.ne.s32.totalorder %s46_s25, %s5211_s20  ;;  %p5217_p5 = scmp.lt.s32.totalorder %s5211_s20, %s5211_s20 }
  0x12   :  { %p5218_p6 = por %p5217_p5, %p5216_p4 }
  0x14   :  { %p5219_p7 = pnand %p5218_p6, %p5212_p3 }
  0x16   :  { %5222 = shalt.err (!%p5219_p7)
}
  0x17   :  { %s5351_s21 = smov 192   ;;  %s5352_s22 = smov 12  }
  0x18   :  { %51 = dma.hbm_to_vmem [thread:$0]  %s6594_s2, 3072, %s46_s25, [#allocation11], %s5351_s21, %s5351_s21, %s5352_s22  }
  0x19   :  { %s6620_s29 = sld [smem:[#allocation34_spill]] }
  0x1f   :  { %s5223_s0 = scalar_lea.hbm %s6620_s29, 3072 }
  0x20   :  { %p5224_p8 = scmp.ne.s32.totalorder %s6620_s29, %s5223_s0  ;;  %p5227_p9 = scmp.lt.u32.totalorder %s5223_s0, %s6620_s29 }
  0x22   :  { %p5229_p10 = pnand %p5227_p9, %p5224_p8 }
  0x24   :  { %5232 = shalt.err (!%p5229_p10)
}
  0x25   :  { %s5233_s20 = scalar_lea.vmem %s5464_s27, 3072  ;;  %p5238_p12 = scmp.lt.s32.totalorder %s5464_s27, %s5464_s27 }
  0x26   :  { %p5234_p11 = scmp.ne.s32.totalorder %s5464_s27, %s5233_s20  ;;  %p5239_p13 = scmp.lt.s32.totalorder %s5233_s20, %s5233_s20 }
  0x28   :  { %p5240_p0 = por %p5239_p13, %p5238_p12 }
  0x2a   :  { %p5241_p1 = pnand %p5240_p0, %p5234_p11 }
  0x2c   :  { %5244 = shalt.err (!%p5241_p1)
}
  0x2d   :  { %39 = dma.hbm_to_vmem [thread:$0]  %s6620_s29, 3072, %s5464_s27, [#allocation8], %s5351_s21, %s5351_s21, %s5352_s22  }
  0x2e   :  { %s5353_s23 = smov [#allocation12]   ;;  %s5354_s26 = smov [#allocation13]  }
  0x2f   :  { %s61_s24 = sshll.u32 %s5353_s23, 4  ;;  %s73_s28 = sshll.u32 %s5354_s26, 4  ;;  %s62_s24 = int_to_ptr.vmem [resolvable:$true] %s61_s24  ;;  %s5501_s28 = int_to_ptr.vmem [resolvable:$true] %s73_s28 }
  0x30   :  { %s5245_s18 = scalar_lea.hbm %s6597_s5, 3072 }
  0x31   :  { %p5246_p2 = scmp.ne.s32.totalorder %s6597_s5, %s5245_s18  ;;  %p5249_p3 = scmp.lt.u32.totalorder %s5245_s18, %s6597_s5 }
  0x33   :  { %p5251_p4 = pnand %p5249_p3, %p5246_p2 }
  0x35   :  { %5254 = shalt.err (!%p5251_p4)
}
  0x36   :  { %s5255_s27 = scalar_lea.vmem %s62_s24, 3072  ;;  %p5260_p6 = scmp.lt.s32.totalorder %s62_s24, %s62_s24 }
  0x37   :  { %p5256_p5 = scmp.ne.s32.totalorder %s62_s24, %s5255_s27  ;;  %p5261_p7 = scmp.lt.s32.totalorder %s5255_s27, %s5255_s27 }
  0x39   :  { %p5262_p8 = por %p5261_p7, %p5260_p6 }
  0x3b   :  { %p5263_p9 = pnand %p5262_p8, %p5256_p5 }
  0x3d   :  { %5266 = shalt.err (!%p5263_p9)
}
  0x3e   :  { %67 = dma.hbm_to_vmem [thread:$0]  %s6597_s5, 3072, %s62_s24, [#allocation11], %s5351_s21, %s5351_s21, %s5352_s22  }
  0x3f   :  { %s5267_s17 = scalar_lea.hbm %s6598_s6, 3072 }
  0x40   :  { %p5268_p10 = scmp.ne.s32.totalorder %s6598_s6, %s5267_s17  ;;  %p5271_p11 = scmp.lt.u32.totalorder %s5267_s17, %s6598_s6 }
  0x42   :  { %p5273_p12 = pnand %p5271_p11, %p5268_p10 }
  0x44   :  { %5276 = shalt.err (!%p5273_p12)
}
  0x45   :  { %s5277_s19 = scalar_lea.vmem %s5501_s28, 3072  ;;  %p5282_p0 = scmp.lt.s32.totalorder %s5501_s28, %s5501_s28 }
  0x46   :  { %p5278_p13 = scmp.ne.s32.totalorder %s5501_s28, %s5277_s19  ;;  %p5283_p1 = scmp.lt.s32.totalorder %s5277_s19, %s5277_s19 }
  0x48   :  { %p5284_p2 = por %p5283_p1, %p5282_p0 }
  0x4a   :  { %p5285_p3 = pnand %p5284_p2, %p5278_p13 }
  0x4c   :  { %5288 = shalt.err (!%p5285_p3)
}
  0x4d   :  { %79 = dma.hbm_to_vmem [thread:$0]  %s6598_s6, 3072, %s5501_s28, [#allocation14], %s5351_s21, %s5351_s21, %s5352_s22  }
  0x4e   :  { %5333 = dma.done.wait [#allocation8], 3072  }
  0x4f   :  { %5334 = vsyncadd [#allocation8], 4294964224 }
  0x50   :  { %5335 = dma.done.wait [#allocation11], 6144  }
  0x51   :  { %5336 = vsyncadd [#allocation11], 4294961152 }
  0x52   :  { %5337 = dma.done.wait [#allocation14], 3072  }
  0x53   :  { %5338 = vsyncadd [#allocation14], 4294964224  ;;  %s109_s1 = sld [smem:[#allocation0]]   ;;  %s5355_s20 = smov 1024  }
  0x54   :  { %121 = sst [smem:[#allocation17]] %s5355_s20  ;;  %s5356_s27 = smov 8  }
  0x55   :  { %123 = sst [smem:[#allocation17 + $0x1]] %s5355_s20  ;;  %s5357_s29 = smov [#allocation2]  }
  0x56   :  { %125 = sst [smem:[#allocation17 + $0x2]] %s5356_s27  ;;  %s117_s2 = sshll.u32 %s5357_s29, 4  ;;  %s118_s2 = int_to_ptr.vmem [resolvable:$true] %s117_s2 }
  0x57   :  { %s5358_s25 = smov 64   ;;  %s5359_s23 = smov 128  }
  0x58   :  { %127 = sst [smem:[#allocation17 + $0x3]] %s5358_s25  ;;  %s5360_s21 = smov 2  }
  0x59   :  { %129 = sst [smem:[#allocation17 + $0x4]] %s5359_s23  ;;  %s4104_s6 = sshll.u32 %s109_s1, 26 }
  0x5a   :  { %131 = sst [smem:[#allocation17 + $0x5]] %s5360_s21  ;;  %s5538_s22 = sadd.s32 134217728, %s4104_s6 }
  0x5b   :  { %s5361_s28 = smov 512   ;;  %135 = sst [smem:[#allocation17 + $0x7]] %s5358_s25 }
  0x5c   :  { %133 = sst [smem:[#allocation17 + $0x6]] %s5361_s28  ;;  %s5362_s17 = smov 4  }
  0x5d   :  { %137 = sst [smem:[#allocation17 + $0x8]] %s5362_s17  ;;  %s5363_s26 = smov [#allocation6]  }
  0x5e   :  { %s5364_s0 = smov [#allocation16]   ;;  %s5365_s19 = smov [#allocation3]  }
  0x5f   :  { %139 = dma.general %s6605_s13, 8192, %s118_s2, %s5363_s26, %s5364_s0, [#allocation17], %s5538_s22, 0  }
  0x60   :  { %156 = sst [smem:[#allocation19]] %s5361_s28  ;;  %s152_s5 = sshll.u32 %s5365_s19, 4  ;;  %s153_s5 = int_to_ptr.vmem [resolvable:$true] %s152_s5 }
  0x61   :  { %158 = sst [smem:[#allocation19 + $0x1]] %s5361_s28  ;;  %s5366_s24 = smov 256  }
  0x62   :  { %160 = sst [smem:[#allocation19 + $0x2]] %s5362_s17  ;;  %s5367_s1 = smov [#allocation4]  }
  0x63   :  { %162 = sst [smem:[#allocation19 + $0x3]] %s5358_s25  ;;  %s183_s20 = sshll.u32 %s5367_s1, 4  ;;  %s184_s20 = int_to_ptr.vmem [resolvable:$true] %s183_s20 }
  0x64   :  { %164 = sst [smem:[#allocation19 + $0x4]] %s5359_s23  ;;  %s5368_s27 = smov [#allocation6 + $0x1]  }
  0x65   :  { %166 = sst [smem:[#allocation19 + $0x5]] %s5360_s21  ;;  %s5369_s29 = smov [#allocation18]  }
  0x66   :  { %168 = sst [smem:[#allocation19 + $0x6]] %s5366_s24  ;;  %s5289_s26 = scalar_lea.hbm %s6607_s15, 4096 }
  0x67   :  { %170 = sst [smem:[#allocation19 + $0x7]] %s5358_s25  ;;  %p5290_p4 = scmp.ne.s32.totalorder %s6607_s15, %s5289_s26 }
  0x68   :  { %172 = sst [smem:[#allocation19 + $0x8]] %s5362_s17  ;;  %p5293_p5 = scmp.lt.u32.totalorder %s5289_s26, %s6607_s15 }
  0x69   :  { %174 = dma.general %s6606_s14, 32768, %s153_s5, %s5368_s27, %s5369_s29, [#allocation19], %s5538_s22, 0  }
  0x6a   :  { %p5295_p6 = pnand %p5293_p5, %p5290_p4 }
  0x6c   :  { %5298 = shalt.err (!%p5295_p6)  }
  0x6d   :  { %s5299_s17 = scalar_lea.vmem %s184_s20, 4096  ;;  %p5304_p8 = scmp.lt.s32.totalorder %s184_s20, %s184_s20 }
  0x6e   :  { %p5300_p7 = scmp.ne.s32.totalorder %s184_s20, %s5299_s17  ;;  %p5305_p9 = scmp.lt.s32.totalorder %s5299_s17, %s5299_s17 }
  0x70   :  { %p5306_p10 = por %p5305_p9, %p5304_p8 }
  0x72   :  { %p5307_p11 = pnand %p5306_p10, %p5300_p7 }
  0x74   :  { %5310 = shalt.err (!%p5307_p11)  }
  0x75   :  { %186 = dma.hbm_to_vmem [thread:$0]  %s6607_s15, 4096, %s184_s20, [#allocation6 + $0x2]  ;;  %v5563_v0 = vld [vmem:[%s6608_s16] sm:$0xff]  ;;  %v5568_v1 = vld [vmem:[%s6608_s16 + $0x8] sm:$0xff]  ;;  %v5573_v2 = vld [vmem:[%s6608_s16 + $0x10] sm:$0xff] }
  0x76   :  { %v5578_v3 = vld [vmem:[%s6608_s16 + $0x18] sm:$0xff]  ;;  %v5583_v4 = vld [vmem:[%s6608_s16 + $0x20] sm:$0xff]  ;;  %v5588_v5 = vld [vmem:[%s6608_s16 + $0x28] sm:$0xff] }
  0x77   :  { %v5593_v6 = vld [vmem:[%s6608_s16 + $0x30] sm:$0xff]  ;;  %v5598_v7 = vld [vmem:[%s6608_s16 + $0x38] sm:$0xff] }
  0x78   :  { %243 = vsyncadd [#allocation6 + $0x3], 1024  ;;  %v4892_v8 = vld [vmem:[#allocation7 + $0x4] ss:$12 sps:$4 sm:$0xff]   ;;  %v4894_v9 = vld [vmem:[#allocation7] ss:$12 sps:$4 sm:$0xff]   ;;  %v314_v61 = vlaneseq }
  0x79   :  { %v6615_v10 = vmov 0.0   ;;  %v6613_v11 = vmov 0   ;;  %v4895_v12 = vld [vmem:[#allocation7 + $0x1c] ss:$12 sps:$4 sm:$0xff]   ;;  %vm5372_vm0 = vmmov 0   ;;  %457 = vmatprep.subr.bf16.mxu0 %v4892_v8  ;;  %s6621_s21 = sld [smem:[#allocation33_spill]] }
  0x7a   :  { %4459 = vmatprep.subr.bf16.mxu1 %v6615_v10  ;;  %489 = vmatprep.mubr.bf16.mxu0 %v6613_v11  ;;  %v4897_v13 = vld [vmem:[#allocation7 + $0x18] ss:$12 sps:$4 sm:$0xff]   ;;  %v4898_v14 = vld [vmem:[#allocation7 + $0x34] ss:$12 sps:$4 sm:$0xff]   ;;  %v4900_v15 = vld [vmem:[#allocation7 + $0x30] ss:$12 sps:$4 sm:$0xff]  }
  0x7b   :  { %4475 = vmatprep.mubr.msk.bf16.mxu1 %vm5372_vm0, %v6615_v10  ;;  %458 = vmatpush1.bf16.msra.mxu0 %v4894_v9  ;;  %v4901_v16 = vld [vmem:[#allocation7 + $0x4c] ss:$12 sps:$4 sm:$0xff]   ;;  %v4912_v17 = vld [vmem:[#allocation7 + $0x8] ss:$12 sps:$4 sm:$0xff]   ;;  %v4904_v20 = vld [vmem:[#allocation7 + $0x64] ss:$12 sps:$4 sm:$0xff]  }
  0x7c   :  { %459 = vmatprep.subr.bf16.mxu0 %v4895_v12  ;;  %v4903_v18 = vld [vmem:[#allocation7 + $0x48] ss:$12 sps:$4 sm:$0xff]   ;;  %4460 = vmatpush3.bf16.msra.mxu1 %v4912_v17  ;;  %v4916_v19 = vld [vmem:[#allocation7 + $0x20] ss:$12 sps:$4 sm:$0xff]   ;;  %v4918_v22 = vld [vmem:[#allocation7 + $0x38] ss:$12 sps:$4 sm:$0xff]  }
  0x7d   :  { %4461 = vmatprep.subr.bf16.mxu1 %v6615_v10  ;;  %v4906_v21 = vld [vmem:[#allocation7 + $0x60] ss:$12 sps:$4 sm:$0xff]   ;;  %v4907_v23 = vld [vmem:[#allocation7 + $0x7c] ss:$12 sps:$4 sm:$0xff]   ;;  %v4909_v24 = vld [vmem:[#allocation7 + $0x78] ss:$12 sps:$4 sm:$0xff]  }
  0x7e   :  { %v4922_v25 = vld [vmem:[#allocation7 + $0x50] ss:$12 sps:$4 sm:$0xff]   ;;  %v4910_v26 = vld [vmem:[#allocation7 + $0x94] ss:$12 sps:$4 sm:$0xff]   ;;  %v4914_v29 = vld [vmem:[#allocation7 + $0xac] ss:$12 sps:$4 sm:$0xff]  }
  0x7f   :  { %460 = vmatpush1.bf16.msra.mxu0 %v4897_v13  ;;  %v4913_v27 = vld [vmem:[#allocation7 + $0x90] ss:$12 sps:$4 sm:$0xff]   ;;  %v4926_v28 = vld [vmem:[#allocation7 + $0x68] ss:$12 sps:$4 sm:$0xff]   ;;  %v244_v31 = vld [vmem:[%s6621_s21] sm:$0xff]  ;;  %v5739_v62 = vshrl.u32 %v314_v61, 7 }
  0x80   :  { %461 = vmatprep.subr.bf16.mxu0 %v4898_v14  ;;  %4462 = vmatpush3.bf16.msra.mxu1 %v4916_v19  ;;  %v4917_v30 = vld [vmem:[#allocation7 + $0xa8] ss:$12 sps:$4 sm:$0xff]   ;;  %v4930_v33 = vld [vmem:[#allocation7 + $0x80] ss:$12 sps:$4 sm:$0xff]   ;;  %v5614_v34 = vld [vmem:[#allocation10 + $0x4] ss:$12 sps:$4 sm:$0xff]  }
  0x81   :  { %4463 = vmatprep.subr.bf16.mxu1 %v6615_v10  ;;  %v245_v32 = vld [vmem:[%s6621_s21 + $0x8] sm:$0xff]  ;;  %v4934_v37 = vld [vmem:[#allocation7 + $0x98] ss:$12 sps:$4 sm:$0xff]   ;;  %v4938_v40 = vld [vmem:[#allocation7 + $0xb0] ss:$12 sps:$4 sm:$0xff]   ;;  %v5742_v63 = vsub.s32 0, %v5739_v62 }
  0x82   :  { %v246_v35 = vpack.c.bf16 %v245_v32, %v244_v31  ;;  %v5617_v36 = vld [vmem:[#allocation10] ss:$12 sps:$4 sm:$0xff]   ;;  %v5620_v38 = vld [vmem:[#allocation10 + $0x1c] ss:$12 sps:$4 sm:$0xff]   ;;  %v5623_v39 = vld [vmem:[#allocation10 + $0x18] ss:$12 sps:$4 sm:$0xff]  }
  0x83   :  { %462 = vmatpush1.bf16.msra.mxu0 %v4900_v15  ;;  %v5627_v41 = vld [vmem:[#allocation10 + $0x34] ss:$12 sps:$4 sm:$0xff]   ;;  %v5630_v42 = vld [vmem:[#allocation10 + $0x30] ss:$12 sps:$4 sm:$0xff]   ;;  %v5635_v44 = vld [vmem:[#allocation10 + $0x4c] ss:$12 sps:$4 sm:$0xff]  }
  0x84   :  { %463 = vmatprep.subr.bf16.mxu0 %v4901_v16  ;;  %4464 = vmatpush3.bf16.msra.mxu1 %v4918_v22  ;;  %v5632_v43 = vld [vmem:[#allocation10 + $0x8] ss:$12 sps:$4 sm:$0xff]   ;;  %v5642_v46 = vld [vmem:[#allocation10 + $0x20] ss:$12 sps:$4 sm:$0xff]   ;;  %v5644_v47 = vld [vmem:[#allocation10 + $0x64] ss:$12 sps:$4 sm:$0xff]  }
  0x85   :  { %4465 = vmatprep.subr.bf16.mxu1 %v6615_v10  ;;  %v5640_v45 = vld [vmem:[#allocation10 + $0x48] ss:$12 sps:$4 sm:$0xff]   ;;  %v5650_v48 = vld [vmem:[#allocation10 + $0x60] ss:$12 sps:$4 sm:$0xff]   ;;  %v5652_v49 = vld [vmem:[#allocation10 + $0x38] ss:$12 sps:$4 sm:$0xff]  }
  0x86   :  { %v5656_v50 = vld [vmem:[#allocation10 + $0x7c] ss:$12 sps:$4 sm:$0xff]   ;;  %v5662_v51 = vld [vmem:[#allocation10 + $0x78] ss:$12 sps:$4 sm:$0xff]   ;;  %v5666_v53 = vld [vmem:[#allocation10 + $0x94] ss:$12 sps:$4 sm:$0xff]  }
  0x87   :  { %464 = vmatpush1.bf16.msra.mxu0 %v4903_v18  ;;  %v5664_v52 = vld [vmem:[#allocation10 + $0x50] ss:$12 sps:$4 sm:$0xff]   ;;  %v5674_v55 = vld [vmem:[#allocation10 + $0x68] ss:$12 sps:$4 sm:$0xff]   ;;  %v5676_v56 = vld [vmem:[#allocation10 + $0xac] ss:$12 sps:$4 sm:$0xff]  }
  0x88   :  { %465 = vmatprep.subr.bf16.mxu0 %v4904_v20  ;;  %4466 = vmatpush3.bf16.msra.mxu1 %v4922_v25  ;;  %v5672_v54 = vld [vmem:[#allocation10 + $0x90] ss:$12 sps:$4 sm:$0xff]   ;;  %v5683_v57 = vld [vmem:[#allocation10 + $0xa8] ss:$12 sps:$4 sm:$0xff]   ;;  %v5686_v58 = vld [vmem:[#allocation10 + $0x80] ss:$12 sps:$4 sm:$0xff]  }
  0x89   :  { %4467 = vmatprep.subr.bf16.mxu1 %v6615_v10  ;;  %v5692_v59 = vld [vmem:[#allocation10 + $0x98] ss:$12 sps:$4 sm:$0xff]   ;;  %v5698_v60 = vld [vmem:[#allocation10 + $0xb0] ss:$12 sps:$4 sm:$0xff]   ;;  %v312_v8 = vld [vmem:[%s6595_s3] sm:$0x7] }
  0x8a   :  { %v5748_v9 = vsub.s32 1, %v5739_v62  ;;  %v317_v12 = vrot.slane %v312_v8, %v5742_v63  ;;  %v5755_v19 = vsub.s32 2, %v5739_v62  ;;  %vm1596_vm1 = vcmask 1041408  }
  0x8b   :  { %466 = vmatpush1.bf16.msra.mxu0 %v4906_v21  ;;  %vm1598_vm2 = vcmask 1043456   ;;  %vm1600_vm3 = vcmask 1045504  }
  0x8c   :  { %467 = vmatprep.subr.bf16.mxu0 %v4907_v23  ;;  %4468 = vmatpush3.bf16.msra.mxu1 %v4926_v28  ;;  %v321_v15 = vrot.slane %v312_v8, %v5748_v9  ;;  %v325_v21 = vrot.slane %v312_v8, %v5755_v19 }
  0x8d   :  { %4469 = vmatprep.subr.bf16.mxu1 %v6615_v10 }
  0x8f   :  { %468 = vmatpush1.bf16.msra.mxu0 %v4909_v24 }
  0x90   :  { %469 = vmatprep.subr.bf16.mxu0 %v4910_v26  ;;  %4470 = vmatpush3.bf16.msra.mxu1 %v4930_v33 }
  0x91   :  { %4471 = vmatprep.subr.bf16.mxu1 %v6615_v10 }
  0x93   :  { %470 = vmatpush1.bf16.msra.mxu0 %v4913_v27 }
  0x94   :  { %471 = vmatprep.subr.bf16.mxu0 %v4914_v29  ;;  %4472 = vmatpush3.bf16.msra.mxu1 %v4934_v37 }
  0x95   :  { %4473 = vmatprep.subr.bf16.mxu1 %v6615_v10 }
  0x97   :  { %472 = vmatpush1.bf16.msra.mxu0 %v4917_v30 }
  0x98   :  { %669 = vmatprep.subr.bf16.mxu0 %v5614_v34  ;;  %4474 = vmatpush3.bf16.msra.mxu1 %v4938_v40 }
  0x99   :  { %4479 = vmatprep.subr.bf16.mxu1 %v6615_v10 }
  0x9a   :  { %490 = vmatmul.mubr.bf16.vlgmr.msra.gmra.mrb[0].mxu0 %v246_v35 }
  0x9b   :  { %670 = vmatpush1.bf16.msra.mxu0 %v5617_v36  ;;  %701 = vmatprep.mubr.bf16.mxu0 %v6613_v11 }
  0x9c   :  { %671 = vmatprep.subr.bf16.mxu0 %v5620_v38  ;;  %4476 = vmatmul.mubr.bf16.vlgmr.msra.gmra.mrb[0].mxu1 %v246_v35 }
  0x9d   :  { %4480 = vmatpush3.bf16.msra.mxu1 %v5632_v43  ;;  %4495 = vmatprep.mubr.msk.bf16.mxu1 %vm5372_vm0, %v6615_v10 }
  0x9e   :  { %4481 = vmatprep.subr.bf16.mxu1 %v6615_v10 }
  0x9f   :  { %672 = vmatpush1.bf16.msra.mxu0 %v5623_v39 }
  0xa0   :  { %673 = vmatprep.subr.bf16.mxu0 %v5627_v41 }
  0xa1   :  { %4482 = vmatpush3.bf16.msra.mxu1 %v5642_v46 }
  0xa2   :  { %4483 = vmatprep.subr.bf16.mxu1 %v6615_v10 }
  0xa3   :  { %674 = vmatpush1.bf16.msra.mxu0 %v5630_v42 }
  0xa4   :  { %675 = vmatprep.subr.bf16.mxu0 %v5635_v44 }
  0xa5   :  { %4484 = vmatpush3.bf16.msra.mxu1 %v5652_v49 }
  0xa6   :  { %4485 = vmatprep.subr.bf16.mxu1 %v6615_v10 }
  0xa7   :  { %676 = vmatpush1.bf16.msra.mxu0 %v5640_v45 }
  0xa8   :  { %677 = vmatprep.subr.bf16.mxu0 %v5644_v47 }
  0xa9   :  { %4486 = vmatpush3.bf16.msra.mxu1 %v5664_v52 }
  0xaa   :  { %4487 = vmatprep.subr.bf16.mxu1 %v6615_v10 }
  0xab   :  { %678 = vmatpush1.bf16.msra.mxu0 %v5650_v48 }
  0xac   :  { %679 = vmatprep.subr.bf16.mxu0 %v5656_v50 }
  0xad   :  { %4488 = vmatpush3.bf16.msra.mxu1 %v5674_v55 }
  0xae   :  { %4489 = vmatprep.subr.bf16.mxu1 %v6615_v10 }
  0xaf   :  { %680 = vmatpush1.bf16.msra.mxu0 %v5662_v51 }
  0xb0   :  { %681 = vmatprep.subr.bf16.mxu0 %v5666_v53 }
  0xb1   :  { %4490 = vmatpush3.bf16.msra.mxu1 %v5686_v58 }
  0xb2   :  { %4491 = vmatprep.subr.bf16.mxu1 %v6615_v10 }
  0xb3   :  { %682 = vmatpush1.bf16.msra.mxu0 %v5672_v54 }
  0xb4   :  { %683 = vmatprep.subr.bf16.mxu0 %v5676_v56 }
  0xb5   :  { %4492 = vmatpush3.bf16.msra.mxu1 %v5692_v59 }
  0xb6   :  { %4493 = vmatprep.subr.bf16.mxu1 %v6615_v10 }
  0xb7   :  { %684 = vmatpush1.bf16.msra.mxu0 %v5683_v57 }
  0xb8   :  { %779 = vmatprep.subr.bf16.mxu0 %v5614_v34 }
  0xb9   :  { %4494 = vmatpush3.bf16.msra.mxu1 %v5698_v60 }
  0xba   :  { %702 = vmatmul.mubr.bf16.vlgmr.msra.gmra.mrb[4].mxu0 %v6613_v11  ;;  %4499 = vmatprep.subr.bf16.mxu1 %v6615_v10 }
  0xbb   :  { %780 = vmatpush1.bf16.msra.mxu0 %v5617_v36  ;;  %811 = vmatprep.mubr.bf16.mxu0 %v6613_v11 }
  0xbc   :  { %781 = vmatprep.subr.bf16.mxu0 %v5620_v38  ;;  %4496 = vmatmul.mubr.bf16.vlgmr.msra.gmra.mrb[4].mxu1 %v6613_v11 }
  0xbd   :  { %4500 = vmatpush3.bf16.msra.mxu1 %v5632_v43  ;;  %4515 = vmatprep.mubr.msk.bf16.mxu1 %vm5372_vm0, %v6615_v10 }
  0xbe   :  { %4501 = vmatprep.subr.bf16.mxu1 %v6615_v10 }
  0xbf   :  { %782 = vmatpush1.bf16.msra.mxu0 %v5623_v39 }
  0xc0   :  { %783 = vmatprep.subr.bf16.mxu0 %v5627_v41 }
  0xc1   :  { %4502 = vmatpush3.bf16.msra.mxu1 %v5642_v46 }
  0xc2   :  { %4503 = vmatprep.subr.bf16.mxu1 %v6615_v10 }
  0xc3   :  { %784 = vmatpush1.bf16.msra.mxu0 %v5630_v42 }
  0xc4   :  { %785 = vmatprep.subr.bf16.mxu0 %v5635_v44 }
  0xc5   :  { %4504 = vmatpush3.bf16.msra.mxu1 %v5652_v49 }
  0xc6   :  { %4505 = vmatprep.subr.bf16.mxu1 %v6615_v10 }
  0xc7   :  { %786 = vmatpush1.bf16.msra.mxu0 %v5640_v45 }
  0xc8   :  { %787 = vmatprep.subr.bf16.mxu0 %v5644_v47 }
  0xc9   :  { %4506 = vmatpush3.bf16.msra.mxu1 %v5664_v52 }
  0xca   :  { %4507 = vmatprep.subr.bf16.mxu1 %v6615_v10 }
  0xcb   :  { %788 = vmatpush1.bf16.msra.mxu0 %v5650_v48 }
  0xcc   :  { %789 = vmatprep.subr.bf16.mxu0 %v5656_v50 }
  0xcd   :  { %4508 = vmatpush3.bf16.msra.mxu1 %v5674_v55 }
  0xce   :  { %4509 = vmatprep.subr.bf16.mxu1 %v6615_v10 }
  0xcf   :  { %790 = vmatpush1.bf16.msra.mxu0 %v5662_v51 }
  0xd0   :  { %791 = vmatprep.subr.bf16.mxu0 %v5666_v53 }
  0xd1   :  { %4510 = vmatpush3.bf16.msra.mxu1 %v5686_v58 }
  0xd2   :  { %4511 = vmatprep.subr.bf16.mxu1 %v6615_v10 }
  0xd3   :  { %792 = vmatpush1.bf16.msra.mxu0 %v5672_v54 }
  0xd4   :  { %793 = vmatprep.subr.bf16.mxu0 %v5676_v56 }
  0xd5   :  { %4512 = vmatpush3.bf16.msra.mxu1 %v5692_v59 }
  0xd6   :  { %4513 = vmatprep.subr.bf16.mxu1 %v6615_v10 }
  0xd7   :  { %794 = vmatpush1.bf16.msra.mxu0 %v5683_v57 }
  0xd8   :  { %898 = vmatprep.subr.bf16.mxu0 %v5614_v34 }
  0xd9   :  { %4514 = vmatpush3.bf16.msra.mxu1 %v5698_v60 }
  0xda   :  { %4519 = vmatprep.subr.bf16.mxu1 %v6615_v10 }
 0x16d   :  { %v491_v13 = vpop.f32.mrb[0].mxu0 }
 0x16e   :  { %v493_v14 = vpop.f32.mrb[1].mxu0  ;;  %v5762_v27 = vadd.f32 %v491_v13, %v317_v12 }
 0x16f   :  { %v495_v16 = vpop.f32.mrb[2].mxu0  ;;  %v534_v22 = vpop.f32.mrb[0].mxu1  ;;  %v5765_v31 = vadd.f32 %v493_v14, %v321_v15  ;;  %v5771_v14 = vld [vmem:[%s6596_s4] ss:$0 sm:$0xff] }
 0x170   :  { %v5752_v17 = vadd.f32 %v495_v16, %v317_v12  ;;  %v497_v18 = vpop.f32.mrb[3].mxu0  ;;  %v4477_v23 = vpop.f32.mrb[1].mxu1 }
 0x171   :  { %v5757_v20 = vadd.f32 %v497_v18, %v321_v15  ;;  %v537_v24 = vpop.f32.mrb[2].mxu1 }
 0x172   :  { %v5760_v25 = vadd.f32 %v537_v24, %v325_v21  ;;  %v4478_v26 = vpop.f32.mrb[3].mxu1 }
 0x18d   :  { %v703_v28 = vpop.f32.mrb[4].mxu0 }
 0x18e   :  { %v750_v29 = vadd.f32 %v703_v28, %v5762_v27  ;;  %v705_v30 = vpop.f32.mrb[5].mxu0  ;;  %v5774_v28 = vadd.f32 %v534_v22, %v325_v21 }
 0x18f   :  { %v707_v32 = vpop.f32.mrb[6].mxu0  ;;  %v757_v37 = vadd.f32 %v705_v30, %v5765_v31  ;;  %v744_v61 = vpop.f32.mrb[4].mxu1 }
 0x190   :  { %v4156_v33 = vmul.f32 -1.442695, %v750_v29  ;;  %v708_v35 = vpop.f32.mrb[7].mxu0  ;;  %v4497_v8 = vpop.f32.mrb[5].mxu1  ;;  %v770_v24 = vadd.f32 %v5771_v14, %v744_v61 }
 0x191   :  { %v4157_v40 = vmul.f32 -1.442695, %v757_v37  ;;  %v747_v16 = vpop.f32.mrb[6].mxu1 }
 0x192   :  { %5020 = vpow2.f32 %v4156_v33  ;;  %v4498_v18 = vpop.f32.mrb[7].mxu1 }
 0x193   :  { %5022 = vpow2.f32 %v4157_v40 }
 0x19c   :  { %v5021_v12 = vpop.eup %5020 }
 0x19d   :  { %v754_v13 = vadd.f32 1.0, %v5021_v12  ;;  %v5023_v23 = vpop.eup %5022 }
 0x19e   :  { %v761_v15 = vadd.f32 1.0, %v5023_v23 }
 0x19f   :  { %5024 = vrcp.f32 %v754_v13 }
 0x1a0   :  { %5026 = vrcp.f32 %v761_v15 }
 0x1a9   :  { %v5025_v26 = vpop.eup %5024 }
 0x1aa   :  { %v771_v29 = vmul.f32 %v5025_v26, %v770_v24  ;;  %v5027_v32 = vpop.eup %5026 }
 0x1ab   :  { %v774_v33 = vsub.f32 1.0, %v5027_v32  ;;  %v776_v40 = vmul.f32 0.0, %v5027_v32 }
 0x1ac   :  { %v772_v30 = vadd.f32 %v771_v29, %v5774_v28 }
 0x1ae   :  { %5028 = vtanh.f32 %v772_v30 }
 0x1b8   :  { %v5029_v35 = vpop.eup %5028 }
 0x1b9   :  { %v775_v37 = vmul.f32 %v5029_v35, %v774_v33 }
 0x1bb   :  { %v5777_v8 = vadd.f32 %v776_v40, %v775_v37 }
 0x1bd   :  { %v778_v16 = vpack.c.bf16 %v5777_v8, %v5777_v8 }
 0x1bf   :  { %812 = vmatmul.mubr.bf16.vlgmr.msra.gmra.mrb[8].mxu0 %v778_v16  ;;  %4516 = vmatmul.mubr.bf16.vlgmr.msra.gmra.mrb[8].mxu1 %v778_v16 }
 0x1c0   :  { %899 = vmatpush1.bf16.msra.mxu0 %v5617_v36  ;;  %4520 = vmatpush3.bf16.msra.mxu1 %v5632_v43 }
 0x1c1   :  { %900 = vmatprep.subr.bf16.mxu0 %v5620_v38  ;;  %4521 = vmatprep.subr.bf16.mxu1 %v6615_v10 }
 0x1c2   :  { %930 = vmatprep.mubr.bf16.mxu0 %v6613_v11  ;;  %4535 = vmatprep.mubr.msk.bf16.mxu1 %vm5372_vm0, %v6615_v10 }
 0x1c4   :  { %901 = vmatpush1.bf16.msra.mxu0 %v5623_v39  ;;  %4522 = vmatpush3.bf16.msra.mxu1 %v5642_v46 }
 0x1c5   :  { %902 = vmatprep.subr.bf16.mxu0 %v5627_v41  ;;  %4523 = vmatprep.subr.bf16.mxu1 %v6615_v10 }
 0x1c8   :  { %903 = vmatpush1.bf16.msra.mxu0 %v5630_v42  ;;  %4524 = vmatpush3.bf16.msra.mxu1 %v5652_v49 }
 0x1c9   :  { %904 = vmatprep.subr.bf16.mxu0 %v5635_v44  ;;  %4525 = vmatprep.subr.bf16.mxu1 %v6615_v10 }
 0x1cc   :  { %905 = vmatpush1.bf16.msra.mxu0 %v5640_v45  ;;  %4526 = vmatpush3.bf16.msra.mxu1 %v5664_v52 }
 0x1cd   :  { %906 = vmatprep.subr.bf16.mxu0 %v5644_v47  ;;  %4527 = vmatprep.subr.bf16.mxu1 %v6615_v10 }
 0x1d0   :  { %907 = vmatpush1.bf16.msra.mxu0 %v5650_v48  ;;  %4528 = vmatpush3.bf16.msra.mxu1 %v5674_v55 }
 0x1d1   :  { %908 = vmatprep.subr.bf16.mxu0 %v5656_v50  ;;  %4529 = vmatprep.subr.bf16.mxu1 %v6615_v10 }
 0x1d4   :  { %909 = vmatpush1.bf16.msra.mxu0 %v5662_v51  ;;  %4530 = vmatpush3.bf16.msra.mxu1 %v5686_v58 }
 0x1d5   :  { %910 = vmatprep.subr.bf16.mxu0 %v5666_v53  ;;  %4531 = vmatprep.subr.bf16.mxu1 %v6615_v10 }
 0x1d8   :  { %911 = vmatpush1.bf16.msra.mxu0 %v5672_v54  ;;  %4532 = vmatpush3.bf16.msra.mxu1 %v5692_v59 }
 0x1d9   :  { %912 = vmatprep.subr.bf16.mxu0 %v5676_v56  ;;  %4533 = vmatprep.subr.bf16.mxu1 %v6615_v10 }
 0x1dc   :  { %913 = vmatpush1.bf16.msra.mxu0 %v5683_v57  ;;  %4534 = vmatpush3.bf16.msra.mxu1 %v5698_v60 }
 0x1dd   :  { %1017 = vmatprep.subr.bf16.mxu0 %v5614_v34  ;;  %4539 = vmatprep.subr.bf16.mxu1 %v6615_v10 }
 0x292   :  { %v813_v21 = vpop.f32.mrb[8].mxu0  ;;  %v854_v22 = vpop.f32.mrb[8].mxu1 }
 0x293   :  { %v861_v61 = vrot.slane %v813_v21, 6  ;;  %v815_v18 = vpop.f32.mrb[9].mxu0  ;;  %v4517_v12 = vpop.f32.mrb[9].mxu1  ;;  %v880_v16 = vadd.f32 %v5771_v14, %v854_v22 }
 0x294   :  { %v871_v13 = vrot.slane %v815_v18, 6  ;;  %v817_v23 = vpop.f32.mrb[10].mxu0  ;;  %v857_v15 = vpop.f32.mrb[10].mxu1 }
 0x295   :  { %v863_v24 = vadd.f32 %v861_v61, %v5762_v27  ;;  %v818_v26 = vpop.f32.mrb[11].mxu0  ;;  %v4518_v29 = vpop.f32.mrb[11].mxu1  ;;  %v882_v18 = vrot.slane %v880_v16, 6 }
 0x296   :  { %v873_v32 = vadd.f32 %v871_v13, %v5765_v31  ;;  %v890_v13 = vrot.slane %v5777_v8, 6 }
 0x297   :  { %v4159_v30 = vmul.f32 -1.442695, %v863_v24 }
 0x298   :  { %v4160_v33 = vmul.f32 -1.442695, %v873_v32 }
 0x299   :  { %5030 = vpow2.f32 %v4159_v30 }
 0x29a   :  { %5032 = vpow2.f32 %v4160_v33 }
 0x2a3   :  { %v5031_v35 = vpop.eup %5030 }
 0x2a4   :  { %v867_v37 = vadd.f32 1.0, %v5031_v35  ;;  %v5033_v40 = vpop.eup %5032 }
 0x2a5   :  { %v877_v21 = vadd.f32 1.0, %v5033_v40 }
 0x2a6   :  { %5034 = vrcp.f32 %v867_v37 }
 0x2a7   :  { %5036 = vrcp.f32 %v877_v21 }
 0x2b0   :  { %v5035_v12 = vpop.eup %5034 }
 0x2b1   :  { %v884_v23 = vmul.f32 %v5035_v12, %v882_v18  ;;  %v5037_v15 = vpop.eup %5036 }
 0x2b2   :  { %v887_v24 = vsub.f32 1.0, %v5037_v15  ;;  %v892_v30 = vmul.f32 %v5037_v15, %v890_v13 }
 0x2b3   :  { %v885_v61 = vadd.f32 %v884_v23, %v5774_v28 }
 0x2b5   :  { %5038 = vtanh.f32 %v885_v61 }
 0x2bf   :  { %v5039_v26 = vpop.eup %5038 }
 0x2c0   :  { %v888_v29 = vmul.f32 %v5039_v26, %v887_v24 }
 0x2c2   :  { %v5821_v32 = vadd.f32 %v892_v30, %v888_v29 }
 0x2c4   :  { %v894_v22 = vpack.c.bf16 %v5821_v32, %v5821_v32 }
 0x2c6   :  { %v896_v33 = vrot.slane %v894_v22, 1 }
 0x2c8   :  { %931 = vmatmul.mubr.bf16.vlgmr.msra.gmra.mrb[12].mxu0 %v896_v33  ;;  %4536 = vmatmul.mubr.bf16.vlgmr.msra.gmra.mrb[12].mxu1 %v896_v33 }
 0x2c9   :  { %1018 = vmatpush1.bf16.msra.mxu0 %v5617_v36  ;;  %4540 = vmatpush3.bf16.msra.mxu1 %v5632_v43 }
 0x2ca   :  { %1019 = vmatprep.subr.bf16.mxu0 %v5620_v38  ;;  %4541 = vmatprep.subr.bf16.mxu1 %v6615_v10 }
 0x2cb   :  { %1049 = vmatprep.mubr.bf16.mxu0 %v6613_v11  ;;  %4555 = vmatprep.mubr.msk.bf16.mxu1 %vm5372_vm0, %v6615_v10 }
 0x2cd   :  { %1020 = vmatpush1.bf16.msra.mxu0 %v5623_v39  ;;  %4542 = vmatpush3.bf16.msra.mxu1 %v5642_v46 }
 0x2ce   :  { %1021 = vmatprep.subr.bf16.mxu0 %v5627_v41  ;;  %4543 = vmatprep.subr.bf16.mxu1 %v6615_v10 }
 0x2d1   :  { %1022 = vmatpush1.bf16.msra.mxu0 %v5630_v42  ;;  %4544 = vmatpush3.bf16.msra.mxu1 %v5652_v49 }
 0x2d2   :  { %1023 = vmatprep.subr.bf16.mxu0 %v5635_v44  ;;  %4545 = vmatprep.subr.bf16.mxu1 %v6615_v10 }
 0x2d5   :  { %1024 = vmatpush1.bf16.msra.mxu0 %v5640_v45  ;;  %4546 = vmatpush3.bf16.msra.mxu1 %v5664_v52 }
 0x2d6   :  { %1025 = vmatprep.subr.bf16.mxu0 %v5644_v47  ;;  %4547 = vmatprep.subr.bf16.mxu1 %v6615_v10 }
 0x2d9   :  { %1026 = vmatpush1.bf16.msra.mxu0 %v5650_v48  ;;  %4548 = vmatpush3.bf16.msra.mxu1 %v5674_v55 }
 0x2da   :  { %1027 = vmatprep.subr.bf16.mxu0 %v5656_v50  ;;  %4549 = vmatprep.subr.bf16.mxu1 %v6615_v10 }
 0x2dd   :  { %1028 = vmatpush1.bf16.msra.mxu0 %v5662_v51  ;;  %4550 = vmatpush3.bf16.msra.mxu1 %v5686_v58 }
 0x2de   :  { %1029 = vmatprep.subr.bf16.mxu0 %v5666_v53  ;;  %4551 = vmatprep.subr.bf16.mxu1 %v6615_v10 }
 0x2e1   :  { %1030 = vmatpush1.bf16.msra.mxu0 %v5672_v54  ;;  %4552 = vmatpush3.bf16.msra.mxu1 %v5692_v59 }
 0x2e2   :  { %1031 = vmatprep.subr.bf16.mxu0 %v5676_v56  ;;  %4553 = vmatprep.subr.bf16.mxu1 %v6615_v10 }
 0x2e5   :  { %1032 = vmatpush1.bf16.msra.mxu0 %v5683_v57  ;;  %4554 = vmatpush3.bf16.msra.mxu1 %v5698_v60 }
 0x2e6   :  { %1136 = vmatprep.subr.bf16.mxu0 %v5614_v34  ;;  %4559 = vmatprep.subr.bf16.mxu1 %v6615_v10 }
 0x39b   :  { %v932_v35 = vpop.f32.mrb[12].mxu0  ;;  %v973_v37 = vpop.f32.mrb[12].mxu1 }
 0x39c   :  { %v980_v40 = vrot.slane %v932_v35, 4  ;;  %v934_v16 = vpop.f32.mrb[13].mxu0  ;;  %v4537_v21 = vpop.f32.mrb[13].mxu1  ;;  %v999_v35 = vadd.f32 %v5771_v14, %v973_v37 }
 0x39d   :  { %v990_v18 = vrot.slane %v934_v16, 4  ;;  %v936_v12 = vpop.f32.mrb[14].mxu0  ;;  %v976_v23 = vpop.f32.mrb[14].mxu1 }
 0x39e   :  { %v982_v61 = vadd.f32 %v980_v40, %v5762_v27  ;;  %v937_v15 = vpop.f32.mrb[15].mxu0  ;;  %v4538_v24 = vpop.f32.mrb[15].mxu1  ;;  %v1001_v16 = vrot.slane %v999_v35, 4  ;;  %v1009_v40 = vrot.slane %v5821_v32, 6 }
 0x39f   :  { %v992_v13 = vadd.f32 %v990_v18, %v5765_v31 }
 0x3a0   :  { %v4161_v26 = vmul.f32 -1.442695, %v982_v61 }
 0x3a1   :  { %v4162_v29 = vmul.f32 -1.442695, %v992_v13 }
 0x3a2   :  { %5040 = vpow2.f32 %v4161_v26 }
 0x3a3   :  { %5042 = vpow2.f32 %v4162_v29 }
 0x3ac   :  { %v5041_v30 = vpop.eup %5040 }
 0x3ad   :  { %v5043_v22 = vpop.eup %5042  ;;  %v986_v33 = vadd.f32 1.0, %v5041_v30 }
 0x3ae   :  { %v996_v11 = vadd.f32 1.0, %v5043_v22  ;;  %v6622_v22 = vmov 0  }
 0x3af   :  { %5044 = vrcp.f32 %v986_v33 }
 0x3b0   :  { %5046 = vrcp.f32 %v996_v11  ;;  %v1597_v11 = vsel %vm1596_vm1, %v5777_v8, %v5821_v32 }
 0x3b9   :  { %v5045_v21 = vpop.eup %5044 }
 0x3ba   :  { %v5047_v12 = vpop.eup %5046  ;;  %v1003_v23 = vmul.f32 %v5045_v21, %v1001_v16 }
 0x3bb   :  { %v1011_v15 = vmul.f32 %v5047_v12, %v1009_v40  ;;  %v1006_v61 = vsub.f32 1.0, %v5047_v12 }
 0x3bc   :  { %v1004_v18 = vadd.f32 %v1003_v23, %v5774_v28 }
 0x3be   :  { %5048 = vtanh.f32 %v1004_v18 }
 0x3c8   :  { %v5049_v24 = vpop.eup %5048 }
 0x3c9   :  { %v1007_v13 = vmul.f32 %v5049_v24, %v1006_v61 }
 0x3cb   :  { %v5865_v26 = vadd.f32 %v1011_v15, %v1007_v13 }
 0x3cd   :  { %v1013_v37 = vpack.c.bf16 %v5865_v26, %v5865_v26  ;;  %v5874_v29 = vsel %vm1598_vm2, %v1597_v11, %v5865_v26 }
 0x3cf   :  { %v1015_v30 = vrot.slane %v1013_v37, 2 }
 0x3d1   :  { %1050 = vmatmul.mubr.bf16.vlgmr.msra.gmra.mrb[16].mxu0 %v1015_v30  ;;  %4556 = vmatmul.mubr.bf16.vlgmr.msra.gmra.mrb[16].mxu1 %v1015_v30 }
 0x3d2   :  { %1137 = vmatpush1.bf16.msra.mxu0 %v5617_v36  ;;  %4560 = vmatpush3.bf16.msra.mxu1 %v5632_v43 }
 0x3d3   :  { %1138 = vmatprep.subr.bf16.mxu0 %v5620_v38  ;;  %4561 = vmatprep.subr.bf16.mxu1 %v6615_v10 }
 0x3d4   :  { %1168 = vmatprep.mubr.bf16.mxu0 %v6622_v22  ;;  %4575 = vmatprep.mubr.msk.bf16.mxu1 %vm5372_vm0, %v6615_v10 }
 0x3d6   :  { %1139 = vmatpush1.bf16.msra.mxu0 %v5623_v39  ;;  %4562 = vmatpush3.bf16.msra.mxu1 %v5642_v46 }
 0x3d7   :  { %1140 = vmatprep.subr.bf16.mxu0 %v5627_v41  ;;  %4563 = vmatprep.subr.bf16.mxu1 %v6615_v10 }
 0x3da   :  { %1141 = vmatpush1.bf16.msra.mxu0 %v5630_v42  ;;  %4564 = vmatpush3.bf16.msra.mxu1 %v5652_v49 }
 0x3db   :  { %1142 = vmatprep.subr.bf16.mxu0 %v5635_v44  ;;  %4565 = vmatprep.subr.bf16.mxu1 %v6615_v10 }
 0x3de   :  { %1143 = vmatpush1.bf16.msra.mxu0 %v5640_v45  ;;  %4566 = vmatpush3.bf16.msra.mxu1 %v5664_v52 }
 0x3df   :  { %1144 = vmatprep.subr.bf16.mxu0 %v5644_v47  ;;  %4567 = vmatprep.subr.bf16.mxu1 %v6615_v10 }
 0x3e2   :  { %1145 = vmatpush1.bf16.msra.mxu0 %v5650_v48  ;;  %4568 = vmatpush3.bf16.msra.mxu1 %v5674_v55 }
 0x3e3   :  { %1146 = vmatprep.subr.bf16.mxu0 %v5656_v50  ;;  %4569 = vmatprep.subr.bf16.mxu1 %v6615_v10 }
 0x3e6   :  { %1147 = vmatpush1.bf16.msra.mxu0 %v5662_v51  ;;  %4570 = vmatpush3.bf16.msra.mxu1 %v5686_v58 }
 0x3e7   :  { %1148 = vmatprep.subr.bf16.mxu0 %v5666_v53  ;;  %4571 = vmatprep.subr.bf16.mxu1 %v6615_v10 }
 0x3ea   :  { %1149 = vmatpush1.bf16.msra.mxu0 %v5672_v54  ;;  %4572 = vmatpush3.bf16.msra.mxu1 %v5692_v59 }
 0x3eb   :  { %1150 = vmatprep.subr.bf16.mxu0 %v5676_v56  ;;  %4573 = vmatprep.subr.bf16.mxu1 %v6615_v10 }
 0x3ee   :  { %1151 = vmatpush1.bf16.msra.mxu0 %v5683_v57  ;;  %4574 = vmatpush3.bf16.msra.mxu1 %v5698_v60 }
 0x3ef   :  { %1243 = vmatprep.subr.bf16.mxu0 %v5614_v34  ;;  %4579 = vmatprep.subr.bf16.mxu1 %v6615_v10 }
 0x4a4   :  { %v1051_v8 = vpop.f32.mrb[16].mxu0  ;;  %v1092_v32 = vpop.f32.mrb[16].mxu1 }
 0x4a5   :  { %v1099_v33 = vrot.slane %v1051_v8, 2  ;;  %v1053_v35 = vpop.f32.mrb[17].mxu0  ;;  %v4557_v16 = vpop.f32.mrb[17].mxu1  ;;  %v1118_v8 = vadd.f32 %v5771_v14, %v1092_v32 }
 0x4a6   :  { %v1109_v21 = vrot.slane %v1053_v35, 2  ;;  %v1055_v40 = vpop.f32.mrb[18].mxu0  ;;  %v1095_v12 = vpop.f32.mrb[18].mxu1 }
 0x4a7   :  { %v1101_v23 = vadd.f32 %v1099_v33, %v5762_v27  ;;  %v1056_v15 = vpop.f32.mrb[19].mxu0  ;;  %v4558_v18 = vpop.f32.mrb[19].mxu1  ;;  %v1120_v35 = vrot.slane %v1118_v8, 2  ;;  %v1128_v27 = vrot.slane %v5865_v26, 6 }
 0x4a8   :  { %v1111_v61 = vadd.f32 %v1109_v21, %v5765_v31 }
 0x4a9   :  { %v4163_v24 = vmul.f32 -1.442695, %v1101_v23 }
 0x4aa   :  { %v4164_v13 = vmul.f32 -1.442695, %v1111_v61 }
 0x4ab   :  { %5050 = vpow2.f32 %v4163_v24 }
 0x4ac   :  { %5052 = vpow2.f32 %v4164_v13 }
 0x4b5   :  { %v5051_v11 = vpop.eup %5050 }
 0x4b6   :  { %v5053_v37 = vpop.eup %5052  ;;  %v1105_v30 = vadd.f32 1.0, %v5051_v11 }
 0x4b7   :  { %v1115_v10 = vadd.f32 1.0, %v5053_v37 }
 0x4b8   :  { %5054 = vrcp.f32 %v1105_v30 }
 0x4b9   :  { %5056 = vrcp.f32 %v1115_v10 }
 0x4c2   :  { %v5055_v16 = vpop.eup %5054 }
 0x4c3   :  { %v5057_v33 = vpop.eup %5056  ;;  %v1122_v40 = vmul.f32 %v5055_v16, %v1120_v35 }
 0x4c4   :  { %v1130_v12 = vmul.f32 %v5057_v33, %v1128_v27  ;;  %v1125_v21 = vsub.f32 1.0, %v5057_v33 }
 0x4c5   :  { %v1123_v31 = vadd.f32 %v1122_v40, %v5774_v28  ;;  %v6623_v28 = vmov 0.0  }
 0x4c7   :  { %5058 = vtanh.f32 %v1123_v31 }
 0x4d1   :  { %v5059_v23 = vpop.eup %5058 }
 0x4d2   :  { %v1126_v15 = vmul.f32 %v5059_v23, %v1125_v21 }
 0x4d4   :  { %v5916_v18 = vadd.f32 %v1130_v12, %v1126_v15 }
 0x4d6   :  { %v1132_v10 = vpack.c.bf16 %v5916_v18, %v5916_v18  ;;  %v5923_v32 = vsel %vm1600_vm3, %v5874_v29, %v5916_v18  ;;  %v1238_v33 = vrot.slane %v5916_v18, 6  ;;  %v5973_v18 = vld [vmem:[#allocation10 + $0x1c] ss:$12 sps:$4 sm:$0xff]  }
 0x4d8   :  { %v1134_v26 = vrot.slane %v1132_v10, 3 }
 0x4da   :  { %1169 = vmatmul.mubr.bf16.vlgmr.msra.gmra.mrb[20].mxu0 %v1134_v26  ;;  %4576 = vmatmul.mubr.bf16.vlgmr.msra.gmra.mrb[20].mxu1 %v1134_v26 }
 0x4db   :  { %1244 = vmatpush1.bf16.msra.mxu0 %v5617_v36  ;;  %4580 = vmatpush3.bf16.msra.mxu1 %v5632_v43 }
 0x4dc   :  { %1245 = vmatprep.subr.bf16.mxu0 %v5620_v38  ;;  %4581 = vmatprep.subr.bf16.mxu1 %v6623_v28 }
 0x4dd   :  { %1275 = vmatprep.mubr.bf16.mxu0 %v6622_v22  ;;  %4595 = vmatprep.mubr.msk.bf16.mxu1 %vm5372_vm0, %v6623_v28 }
 0x4df   :  { %1246 = vmatpush1.bf16.msra.mxu0 %v5623_v39  ;;  %4582 = vmatpush3.bf16.msra.mxu1 %v5642_v46 }
 0x4e0   :  { %1247 = vmatprep.subr.bf16.mxu0 %v5627_v41  ;;  %4583 = vmatprep.subr.bf16.mxu1 %v6623_v28 }
 0x4e3   :  { %1248 = vmatpush1.bf16.msra.mxu0 %v5630_v42  ;;  %4584 = vmatpush3.bf16.msra.mxu1 %v5652_v49 }
 0x4e4   :  { %1249 = vmatprep.subr.bf16.mxu0 %v5635_v44  ;;  %4585 = vmatprep.subr.bf16.mxu1 %v6623_v28 }
 0x4e7   :  { %1250 = vmatpush1.bf16.msra.mxu0 %v5640_v45  ;;  %4586 = vmatpush3.bf16.msra.mxu1 %v5664_v52 }
 0x4e8   :  { %1251 = vmatprep.subr.bf16.mxu0 %v5644_v47  ;;  %4587 = vmatprep.subr.bf16.mxu1 %v6623_v28 }
 0x4eb   :  { %1252 = vmatpush1.bf16.msra.mxu0 %v5650_v48  ;;  %4588 = vmatpush3.bf16.msra.mxu1 %v5674_v55 }
 0x4ec   :  { %1253 = vmatprep.subr.bf16.mxu0 %v5656_v50  ;;  %4589 = vmatprep.subr.bf16.mxu1 %v6623_v28 }
 0x4ef   :  { %1254 = vmatpush1.bf16.msra.mxu0 %v5662_v51  ;;  %4590 = vmatpush3.bf16.msra.mxu1 %v5686_v58 }
 0x4f0   :  { %1255 = vmatprep.subr.bf16.mxu0 %v5666_v53  ;;  %4591 = vmatprep.subr.bf16.mxu1 %v6623_v28 }
 0x4f3   :  { %1256 = vmatpush1.bf16.msra.mxu0 %v5672_v54  ;;  %4592 = vmatpush3.bf16.msra.mxu1 %v5692_v59 }
 0x4f4   :  { %1257 = vmatprep.subr.bf16.mxu0 %v5676_v56  ;;  %4593 = vmatprep.subr.bf16.mxu1 %v6623_v28 }
 0x4f7   :  { %1258 = vmatpush1.bf16.msra.mxu0 %v5683_v57  ;;  %4594 = vmatpush3.bf16.msra.mxu1 %v5698_v60 }
 0x4f8   :  { %1362 = vmatprep.subr.bf16.mxu0 %v5614_v34  ;;  %4599 = vmatprep.subr.bf16.mxu1 %v6623_v28 }
 0x5ad   :  { %v1170_v36 = vpop.f32.mrb[20].mxu0  ;;  %v1211_v38 = vpop.f32.mrb[20].mxu1 }
 0x5ae   :  { %v1217_v39 = vadd.f32 %v1170_v36, %v5752_v17  ;;  %v1172_v41 = vpop.f32.mrb[21].mxu0  ;;  %v4577_v42 = vpop.f32.mrb[21].mxu1  ;;  %v1231_v16 = vadd.f32 %v5771_v14, %v1211_v38  ;;  %v5969_v38 = vld [vmem:[#allocation10] ss:$12 sps:$4 sm:$0xff]  }
 0x5af   :  { %v1224_v44 = vadd.f32 %v1172_v41, %v5757_v20  ;;  %v1174_v29 = vpop.f32.mrb[22].mxu0  ;;  %v1214_v61 = vpop.f32.mrb[22].mxu1  ;;  %v5984_v41 = vld [vmem:[#allocation10 + $0x34] ss:$12 sps:$4 sm:$0xff]   ;;  %v5992_v42 = vld [vmem:[#allocation10 + $0x4c] ss:$12 sps:$4 sm:$0xff]  }
 0x5b0   :  { %v4165_v24 = vmul.f32 -1.442695, %v1217_v39  ;;  %v1175_v13 = vpop.f32.mrb[23].mxu0  ;;  %v4578_v11 = vpop.f32.mrb[23].mxu1  ;;  %v5980_v39 = vld [vmem:[#allocation10 + $0x18] ss:$12 sps:$4 sm:$0xff]  }
 0x5b1   :  { %v4166_v37 = vmul.f32 -1.442695, %v1224_v44 }
 0x5b2   :  { %5060 = vpow2.f32 %v4165_v24 }
 0x5b3   :  { %5062 = vpow2.f32 %v4166_v37 }
 0x5bc   :  { %v5061_v30 = vpop.eup %5060 }
 0x5bd   :  { %v5063_v34 = vpop.eup %5062  ;;  %v1221_v8 = vadd.f32 1.0, %v5061_v30 }
 0x5be   :  { %v1228_v35 = vadd.f32 1.0, %v5063_v34 }
 0x5bf   :  { %5064 = vrcp.f32 %v1221_v8 }
 0x5c0   :  { %5066 = vrcp.f32 %v1228_v35 }
 0x5c9   :  { %v5065_v27 = vpop.eup %5064 }
 0x5ca   :  { %v5067_v40 = vpop.eup %5066  ;;  %v1232_v12 = vmul.f32 %v5065_v27, %v1231_v16 }
 0x5cb   :  { %v1240_v31 = vmul.f32 %v5067_v40, %v1238_v33  ;;  %v1235_v23 = vsub.f32 1.0, %v5067_v40 }
 0x5cc   :  { %v1233_v21 = vadd.f32 %v1232_v12, %v5760_v25 }
 0x5ce   :  { %5068 = vtanh.f32 %v1233_v21 }
 0x5d8   :  { %v5069_v15 = vpop.eup %5068 }
 0x5d9   :  { %v1236_v10 = vmul.f32 %v5069_v15, %v1235_v23 }
 0x5db   :  { %v5965_v26 = vadd.f32 %v1240_v31, %v1236_v10 }
 0x5dd   :  { %v1242_v36 = vpack.c.bf16 %v5965_v26, %v5965_v26  ;;  %v1354_v40 = vrot.slane %v5965_v26, 6 }
 0x5df   :  { %1276 = vmatmul.mubr.bf16.vlgmr.msra.gmra.mrb[24].mxu0 %v1242_v36  ;;  %4596 = vmatmul.mubr.bf16.vlgmr.msra.gmra.mrb[24].mxu1 %v1242_v36  ;;  %v5187_v36 = vld [vmem:[#allocation10 + $0x8] ss:$12 sps:$4 sm:$0xff]  }
 0x5e0   :  { %1363 = vmatpush1.bf16.msra.mxu0 %v5969_v38  ;;  %4600 = vmatpush3.bf16.msra.mxu1 %v5632_v43  ;;  %v5988_v43 = vld [vmem:[#allocation10 + $0x30] ss:$12 sps:$4 sm:$0xff]  }
 0x5e1   :  { %1364 = vmatprep.subr.bf16.mxu0 %v5973_v18  ;;  %4601 = vmatprep.subr.bf16.mxu1 %v6623_v28 }
 0x5e2   :  { %1394 = vmatprep.mubr.bf16.mxu0 %v6622_v22  ;;  %4615 = vmatprep.mubr.msk.bf16.mxu1 %vm5372_vm0, %v6623_v28 }
 0x5e4   :  { %1365 = vmatpush1.bf16.msra.mxu0 %v5980_v39  ;;  %4602 = vmatpush3.bf16.msra.mxu1 %v5642_v46 }
 0x5e5   :  { %1366 = vmatprep.subr.bf16.mxu0 %v5984_v41  ;;  %4603 = vmatprep.subr.bf16.mxu1 %v6623_v28 }
 0x5e8   :  { %1367 = vmatpush1.bf16.msra.mxu0 %v5988_v43  ;;  %4604 = vmatpush3.bf16.msra.mxu1 %v5652_v49 }
 0x5e9   :  { %1368 = vmatprep.subr.bf16.mxu0 %v5992_v42  ;;  %4605 = vmatprep.subr.bf16.mxu1 %v6623_v28 }
 0x5ec   :  { %1369 = vmatpush1.bf16.msra.mxu0 %v5640_v45  ;;  %4606 = vmatpush3.bf16.msra.mxu1 %v5664_v52  ;;  %v5186_v45 = vld [vmem:[#allocation10 + $0x4] ss:$12 sps:$4 sm:$0xff]  }
 0x5ed   :  { %1370 = vmatprep.subr.bf16.mxu0 %v5644_v47  ;;  %4607 = vmatprep.subr.bf16.mxu1 %v6623_v28 }
 0x5f0   :  { %1371 = vmatpush1.bf16.msra.mxu0 %v5650_v48  ;;  %4608 = vmatpush3.bf16.msra.mxu1 %v5674_v55 }
 0x5f1   :  { %1372 = vmatprep.subr.bf16.mxu0 %v5656_v50  ;;  %4609 = vmatprep.subr.bf16.mxu1 %v6623_v28 }
 0x5f4   :  { %1373 = vmatpush1.bf16.msra.mxu0 %v5662_v51  ;;  %4610 = vmatpush3.bf16.msra.mxu1 %v5686_v58 }
 0x5f5   :  { %1374 = vmatprep.subr.bf16.mxu0 %v5666_v53  ;;  %4611 = vmatprep.subr.bf16.mxu1 %v6623_v28 }
 0x5f8   :  { %1375 = vmatpush1.bf16.msra.mxu0 %v5672_v54  ;;  %4612 = vmatpush3.bf16.msra.mxu1 %v5692_v59 }
 0x5f9   :  { %1376 = vmatprep.subr.bf16.mxu0 %v5676_v56  ;;  %4613 = vmatprep.subr.bf16.mxu1 %v6623_v28 }
 0x5fc   :  { %1377 = vmatpush1.bf16.msra.mxu0 %v5683_v57  ;;  %4614 = vmatpush3.bf16.msra.mxu1 %v5698_v60 }
 0x5fd   :  { %1481 = vmatprep.subr.bf16.mxu0 %v5186_v45  ;;  %4619 = vmatprep.subr.bf16.mxu1 %v6623_v28  ;;  %v5188_v45 = vld [vmem:[#allocation10 + $0x20] ss:$12 sps:$4 sm:$0xff]  }
 0x6b2   :  { %v1277_v46 = vpop.f32.mrb[24].mxu0  ;;  %v1318_v47 = vpop.f32.mrb[24].mxu1 }
 0x6b3   :  { %v1325_v48 = vrot.slane %v1277_v46, 6  ;;  %v1279_v49 = vpop.f32.mrb[25].mxu0  ;;  %v4597_v50 = vpop.f32.mrb[25].mxu1  ;;  %v1344_v37 = vadd.f32 %v5771_v14, %v1318_v47  ;;  %v5191_v46 = vld [vmem:[#allocation10 + $0x50] ss:$12 sps:$4 sm:$0xff]  }
 0x6b4   :  { %v1335_v51 = vrot.slane %v1279_v49, 6  ;;  %v1281_v52 = vpop.f32.mrb[26].mxu0  ;;  %v1321_v53 = vpop.f32.mrb[26].mxu1  ;;  %v5192_v47 = vld [vmem:[#allocation10 + $0x64] ss:$12 sps:$4 sm:$0xff]  }
 0x6b5   :  { %v1327_v54 = vadd.f32 %v1325_v48, %v5752_v17  ;;  %v1282_v55 = vpop.f32.mrb[27].mxu0  ;;  %v4598_v56 = vpop.f32.mrb[27].mxu1  ;;  %v1346_v34 = vrot.slane %v1344_v37, 6  ;;  %v5195_v48 = vld [vmem:[#allocation10 + $0x7c] ss:$12 sps:$4 sm:$0xff]  }
 0x6b6   :  { %v1337_v29 = vadd.f32 %v1335_v51, %v5757_v20  ;;  %v5198_v49 = vld [vmem:[#allocation10 + $0x90] ss:$12 sps:$4 sm:$0xff]   ;;  %v5199_v50 = vld [vmem:[#allocation10 + $0xac] ss:$12 sps:$4 sm:$0xff]  }
 0x6b7   :  { %v4167_v44 = vmul.f32 -1.442695, %v1327_v54 }
 0x6b8   :  { %v4168_v61 = vmul.f32 -1.442695, %v1337_v29 }
 0x6b9   :  { %5070 = vpow2.f32 %v4167_v44 }
 0x6ba   :  { %5072 = vpow2.f32 %v4168_v61 }
 0x6c3   :  { %v5071_v24 = vpop.eup %5070 }
 0x6c4   :  { %v1331_v13 = vadd.f32 1.0, %v5071_v24  ;;  %v5073_v11 = vpop.eup %5072 }
 0x6c5   :  { %v1341_v30 = vadd.f32 1.0, %v5073_v11 }
 0x6c6   :  { %5074 = vrcp.f32 %v1331_v13 }
 0x6c7   :  { %5076 = vrcp.f32 %v1341_v30 }
 0x6d0   :  { %v5075_v8 = vpop.eup %5074 }
 0x6d1   :  { %v1348_v35 = vmul.f32 %v5075_v8, %v1346_v34  ;;  %v5077_v27 = vpop.eup %5076 }
 0x6d2   :  { %v1351_v33 = vsub.f32 1.0, %v5077_v27  ;;  %v1356_v21 = vmul.f32 %v5077_v27, %v1354_v40 }
 0x6d3   :  { %v1349_v16 = vadd.f32 %v1348_v35, %v5760_v25 }
 0x6d5   :  { %5078 = vtanh.f32 %v1349_v16 }
 0x6df   :  { %v5079_v12 = vpop.eup %5078 }
 0x6e0   :  { %v1352_v31 = vmul.f32 %v5079_v12, %v1351_v33 }
 0x6e2   :  { %v6020_v23 = vadd.f32 %v1356_v21, %v1352_v31 }
 0x6e4   :  { %v1358_v15 = vpack.c.bf16 %v6020_v23, %v6020_v23  ;;  %v1473_v16 = vrot.slane %v6020_v23, 6 }
 0x6e6   :  { %v1360_v10 = vrot.slane %v1358_v15, 1 }
 0x6e8   :  { %1395 = vmatmul.mubr.bf16.vlgmr.msra.gmra.mrb[28].mxu0 %v1360_v10  ;;  %4616 = vmatmul.mubr.bf16.vlgmr.msra.gmra.mrb[28].mxu1 %v1360_v10 }
 0x6e9   :  { %1482 = vmatpush1.bf16.msra.mxu0 %v5969_v38  ;;  %4620 = vmatpush3.bf16.msra.mxu1 %v5187_v36  ;;  %v5189_v38 = vld [vmem:[#allocation10 + $0x38] ss:$12 sps:$4 sm:$0xff]   ;;  %v1602_v36 = vsel %vm1596_vm1, %v5965_v26, %v6020_v23  ;;  %v4962_v26 = vld [vmem:[#allocation12 + $0x1c] ss:$12 sps:$4 sm:$0xff]  }
 0x6ea   :  { %1483 = vmatprep.subr.bf16.mxu0 %v5973_v18  ;;  %4621 = vmatprep.subr.bf16.mxu1 %v6623_v28  ;;  %v5190_v18 = vld [vmem:[#allocation10 + $0x48] ss:$12 sps:$4 sm:$0xff]   ;;  %v4960_v23 = vld [vmem:[#allocation12 + $0x18] ss:$12 sps:$4 sm:$0xff]  }
 0x6eb   :  { %1513 = vmatprep.mubr.bf16.mxu0 %v6622_v22  ;;  %4635 = vmatprep.mubr.msk.bf16.mxu1 %vm5372_vm0, %v6623_v28 }
 0x6ed   :  { %1484 = vmatpush1.bf16.msra.mxu0 %v5980_v39  ;;  %4622 = vmatpush3.bf16.msra.mxu1 %v5188_v45  ;;  %v5193_v39 = vld [vmem:[#allocation10 + $0x60] ss:$12 sps:$4 sm:$0xff]  }
 0x6ee   :  { %1485 = vmatprep.subr.bf16.mxu0 %v5984_v41  ;;  %4623 = vmatprep.subr.bf16.mxu1 %v6623_v28  ;;  %v5194_v41 = vld [vmem:[#allocation10 + $0x68] ss:$12 sps:$4 sm:$0xff]  }
 0x6f1   :  { %1486 = vmatpush1.bf16.msra.mxu0 %v5988_v43  ;;  %4624 = vmatpush3.bf16.msra.mxu1 %v5189_v38  ;;  %v5196_v43 = vld [vmem:[#allocation10 + $0x78] ss:$12 sps:$4 sm:$0xff]  }
 0x6f2   :  { %1487 = vmatprep.subr.bf16.mxu0 %v5992_v42  ;;  %4625 = vmatprep.subr.bf16.mxu1 %v6623_v28  ;;  %v5197_v42 = vld [vmem:[#allocation10 + $0x94] ss:$12 sps:$4 sm:$0xff]  }
 0x6f5   :  { %1488 = vmatpush1.bf16.msra.mxu0 %v5190_v18  ;;  %4626 = vmatpush3.bf16.msra.mxu1 %v5191_v46  ;;  %v4958_v18 = vld [vmem:[#allocation12 + $0x4] ss:$12 sps:$4 sm:$0xff]   ;;  %v4956_v46 = vld [vmem:[#allocation12] ss:$12 sps:$4 sm:$0xff]  }
 0x6f6   :  { %1489 = vmatprep.subr.bf16.mxu0 %v5192_v47  ;;  %4627 = vmatprep.subr.bf16.mxu1 %v6623_v28  ;;  %v4959_v47 = vld [vmem:[#allocation12 + $0x8] ss:$12 sps:$4 sm:$0xff]  }
 0x6f9   :  { %1490 = vmatpush1.bf16.msra.mxu0 %v5193_v39  ;;  %4628 = vmatpush3.bf16.msra.mxu1 %v5194_v41  ;;  %v4963_v39 = vld [vmem:[#allocation12 + $0x20] ss:$12 sps:$4 sm:$0xff]  }
 0x6fa   :  { %1491 = vmatprep.subr.bf16.mxu0 %v5195_v48  ;;  %4629 = vmatprep.subr.bf16.mxu1 %v6623_v28  ;;  %v4966_v41 = vld [vmem:[#allocation12 + $0x34] ss:$12 sps:$4 sm:$0xff]   ;;  %v4964_v48 = vld [vmem:[#allocation12 + $0x30] ss:$12 sps:$4 sm:$0xff]  }
 0x6fd   :  { %1492 = vmatpush1.bf16.msra.mxu0 %v5196_v43  ;;  %4630 = vmatpush3.bf16.msra.mxu1 %v5686_v58  ;;  %v4967_v43 = vld [vmem:[#allocation12 + $0x38] ss:$12 sps:$4 sm:$0xff]  }
 0x6fe   :  { %1493 = vmatprep.subr.bf16.mxu0 %v5197_v42  ;;  %4631 = vmatprep.subr.bf16.mxu1 %v6623_v28  ;;  %v4970_v42 = vld [vmem:[#allocation12 + $0x4c] ss:$12 sps:$4 sm:$0xff]  }
 0x701   :  { %1494 = vmatpush1.bf16.msra.mxu0 %v5198_v49  ;;  %4632 = vmatpush3.bf16.msra.mxu1 %v5692_v59  ;;  %v4968_v49 = vld [vmem:[#allocation12 + $0x48] ss:$12 sps:$4 sm:$0xff]  }
 0x702   :  { %1495 = vmatprep.subr.bf16.mxu0 %v5199_v50  ;;  %4633 = vmatprep.subr.bf16.mxu1 %v6623_v28  ;;  %v4971_v50 = vld [vmem:[#allocation12 + $0x50] ss:$12 sps:$4 sm:$0xff]  }
 0x705   :  { %1496 = vmatpush1.bf16.msra.mxu0 %v5683_v57  ;;  %4634 = vmatpush3.bf16.msra.mxu1 %v5698_v60 }
 0x706   :  { %4639 = vmatprep.subr.bf16.mxu1 %v6623_v28  ;;  %1816 = vmatprep.subr.bf16.mxu0 %v4958_v18 }
 0x7bb   :  { %v1396_v51 = vpop.f32.mrb[28].mxu0  ;;  %v1437_v58 = vpop.f32.mrb[28].mxu1 }
 0x7bc   :  { %v1444_v52 = vrot.slane %v1396_v51, 4  ;;  %v1398_v53 = vpop.f32.mrb[29].mxu0  ;;  %v4617_v54 = vpop.f32.mrb[29].mxu1  ;;  %v1463_v34 = vadd.f32 %v5771_v14, %v1437_v58  ;;  %v4974_v51 = vld [vmem:[#allocation12 + $0x64] ss:$12 sps:$4 sm:$0xff]  }
 0x7bd   :  { %v1454_v55 = vrot.slane %v1398_v53, 4  ;;  %v1400_v56 = vpop.f32.mrb[30].mxu0  ;;  %v1440_v44 = vpop.f32.mrb[30].mxu1  ;;  %v4972_v58 = vld [vmem:[#allocation12 + $0x60] ss:$12 sps:$4 sm:$0xff]  }
 0x7be   :  { %v1446_v59 = vadd.f32 %v1444_v52, %v5752_v17  ;;  %v1401_v29 = vpop.f32.mrb[31].mxu0  ;;  %v4618_v61 = vpop.f32.mrb[31].mxu1  ;;  %v1465_v8 = vrot.slane %v1463_v34, 4  ;;  %v4975_v52 = vld [vmem:[#allocation12 + $0x68] ss:$12 sps:$4 sm:$0xff]  }
 0x7bf   :  { %v1456_v24 = vadd.f32 %v1454_v55, %v5757_v20  ;;  %v4978_v53 = vld [vmem:[#allocation12 + $0x7c] ss:$12 sps:$4 sm:$0xff]   ;;  %v4976_v54 = vld [vmem:[#allocation12 + $0x78] ss:$12 sps:$4 sm:$0xff]   ;;  %v4979_v55 = vld [vmem:[#allocation12 + $0x80] ss:$12 sps:$4 sm:$0xff]  }
 0x7c0   :  { %v4169_v13 = vmul.f32 -1.442695, %v1446_v59  ;;  %v4982_v56 = vld [vmem:[#allocation12 + $0x94] ss:$12 sps:$4 sm:$0xff]   ;;  %v4980_v44 = vld [vmem:[#allocation12 + $0x90] ss:$12 sps:$4 sm:$0xff]  }
 0x7c1   :  { %v4170_v57 = vmul.f32 -1.442695, %v1456_v24  ;;  %v4983_v59 = vld [vmem:[#allocation12 + $0x98] ss:$12 sps:$4 sm:$0xff]   ;;  %v4984_v61 = vld [vmem:[#allocation12 + $0xa8] ss:$12 sps:$4 sm:$0xff]  }
 0x7c2   :  { %5080 = vpow2.f32 %v4169_v13  ;;  %v4986_v29 = vld [vmem:[#allocation12 + $0xac] ss:$12 sps:$4 sm:$0xff]   ;;  %v4987_v24 = vld [vmem:[#allocation12 + $0xb0] ss:$12 sps:$4 sm:$0xff]  }
 0x7c3   :  { %5082 = vpow2.f32 %v4170_v57  ;;  %v6070_v13 = vld [vmem:[#allocation13 + $0x4] ss:$12 sps:$4 sm:$0xff]  }
 0x7cc   :  { %v5081_v60 = vpop.eup %5080 }
 0x7cd   :  { %v5083_v11 = vpop.eup %5082  ;;  %v1450_v37 = vadd.f32 1.0, %v5081_v60 }
 0x7ce   :  { %v1460_v30 = vadd.f32 1.0, %v5083_v11 }
 0x7cf   :  { %5084 = vrcp.f32 %v1450_v37 }
 0x7d0   :  { %5086 = vrcp.f32 %v1460_v30 }
 0x7d9   :  { %v5085_v35 = vpop.eup %5084 }
 0x7da   :  { %v5087_v27 = vpop.eup %5086  ;;  %v1467_v33 = vmul.f32 %v5085_v35, %v1465_v8 }
 0x7db   :  { %v1475_v40 = vmul.f32 %v5087_v27, %v1473_v16  ;;  %v1470_v31 = vsub.f32 1.0, %v5087_v27 }
 0x7dc   :  { %v1468_v12 = vadd.f32 %v1467_v33, %v5760_v25 }
 0x7de   :  { %5088 = vtanh.f32 %v1468_v12 }
 0x7e8   :  { %v5089_v21 = vpop.eup %5088 }
 0x7e9   :  { %v1471_v15 = vmul.f32 %v5089_v21, %v1470_v31 }
 0x7eb   :  { %v6050_v10 = vadd.f32 %v1475_v40, %v1471_v15 }
 0x7ed   :  { %v1477_v14 = vpack.c.bf16 %v6050_v10, %v6050_v10  ;;  %v6059_v45 = vsel %vm1598_vm2, %v1602_v36, %v6050_v10 }
 0x7ef   :  { %v1479_v38 = vrot.slane %v1477_v14, 2 }
 0x7f1   :  { %1514 = vmatmul.mubr.bf16.vlgmr.msra.gmra.mrb[32].mxu0 %v1479_v38  ;;  %4636 = vmatmul.mubr.bf16.vlgmr.msra.gmra.mrb[32].mxu1 %v1479_v38  ;;  %v5200_v38 = vld [vmem:[%s6596_s4] ss:$0 sm:$0xff] }
 0x7f2   :  { %1848 = vmatprep.mubr.bf16.mxu0 %v6622_v22  ;;  %4655 = vmatprep.mubr.msk.bf16.mxu1 %vm5372_vm0, %v6623_v28 }
 0x7f3   :  { %1817 = vmatpush1.bf16.msra.mxu0 %v4956_v46  ;;  %4640 = vmatpush3.bf16.msra.mxu1 %v4959_v47  ;;  %v1592_v47 = vrot.slane %v6050_v10, 6  ;;  %v6089_v10 = vld [vmem:[#allocation13 + $0x1c] ss:$12 sps:$4 sm:$0xff]  }
 0x7f4   :  { %4641 = vmatprep.subr.bf16.mxu1 %v6623_v28  ;;  %1818 = vmatprep.subr.bf16.mxu0 %v4962_v26 }
 0x7f7   :  { %1819 = vmatpush1.bf16.msra.mxu0 %v4960_v23  ;;  %4642 = vmatpush3.bf16.msra.mxu1 %v4963_v39 }
 0x7f8   :  { %4643 = vmatprep.subr.bf16.mxu1 %v6623_v28  ;;  %1820 = vmatprep.subr.bf16.mxu0 %v4966_v41 }
 0x7fb   :  { %1821 = vmatpush1.bf16.msra.mxu0 %v4964_v48  ;;  %4644 = vmatpush3.bf16.msra.mxu1 %v4967_v43 }
 0x7fc   :  { %4645 = vmatprep.subr.bf16.mxu1 %v6623_v28  ;;  %1822 = vmatprep.subr.bf16.mxu0 %v4970_v42 }
 0x7ff   :  { %1823 = vmatpush1.bf16.msra.mxu0 %v4968_v49  ;;  %4646 = vmatpush3.bf16.msra.mxu1 %v4971_v50  ;;  %v6084_v50 = vld [vmem:[#allocation13] ss:$12 sps:$4 sm:$0xff]  }
 0x800   :  { %4647 = vmatprep.subr.bf16.mxu1 %v6623_v28  ;;  %1824 = vmatprep.subr.bf16.mxu0 %v4974_v51  ;;  %v6086_v51 = vld [vmem:[#allocation13 + $0x8] ss:$12 sps:$4 sm:$0xff]  }
 0x803   :  { %1825 = vmatpush1.bf16.msra.mxu0 %v4972_v58  ;;  %4648 = vmatpush3.bf16.msra.mxu1 %v4975_v52  ;;  %v6095_v52 = vld [vmem:[#allocation13 + $0x20] ss:$12 sps:$4 sm:$0xff]  }
 0x804   :  { %1826 = vmatprep.subr.bf16.mxu0 %v4978_v53  ;;  %4649 = vmatprep.subr.bf16.mxu1 %v6623_v28  ;;  %v6108_v53 = vld [vmem:[#allocation13 + $0x38] ss:$12 sps:$4 sm:$0xff]  }
 0x807   :  { %1827 = vmatpush1.bf16.msra.mxu0 %v4976_v54  ;;  %4650 = vmatpush3.bf16.msra.mxu1 %v4979_v55  ;;  %v6111_v54 = vld [vmem:[#allocation13 + $0x4c] ss:$12 sps:$4 sm:$0xff]   ;;  %v6115_v55 = vld [vmem:[#allocation13 + $0x48] ss:$12 sps:$4 sm:$0xff]  }
 0x808   :  { %1828 = vmatprep.subr.bf16.mxu0 %v4982_v56  ;;  %4651 = vmatprep.subr.bf16.mxu1 %v6623_v28  ;;  %v6118_v56 = vld [vmem:[#allocation13 + $0x50] ss:$12 sps:$4 sm:$0xff]  }
 0x80b   :  { %1829 = vmatpush1.bf16.msra.mxu0 %v4980_v44  ;;  %4652 = vmatpush3.bf16.msra.mxu1 %v4983_v59  ;;  %v6121_v44 = vld [vmem:[#allocation13 + $0x64] ss:$12 sps:$4 sm:$0xff]   ;;  %v6125_v59 = vld [vmem:[#allocation13 + $0x60] ss:$12 sps:$4 sm:$0xff]  }
 0x80c   :  { %1830 = vmatprep.subr.bf16.mxu0 %v4986_v29  ;;  %4653 = vmatprep.subr.bf16.mxu1 %v6623_v28  ;;  %v6128_v29 = vld [vmem:[#allocation13 + $0x68] ss:$12 sps:$4 sm:$0xff]  }
 0x80f   :  { %1831 = vmatpush1.bf16.msra.mxu0 %v4984_v61  ;;  %4654 = vmatpush3.bf16.msra.mxu1 %v4987_v24  ;;  %v6131_v61 = vld [vmem:[#allocation13 + $0x7c] ss:$12 sps:$4 sm:$0xff]   ;;  %v6135_v24 = vld [vmem:[#allocation13 + $0x78] ss:$12 sps:$4 sm:$0xff]  }
 0x810   :  { %2028 = vmatprep.subr.bf16.mxu0 %v6070_v13  ;;  %4659 = vmatprep.subr.bf16.mxu1 %v6623_v28 }
 0x8c4   :  { %v1515_v57 = vpop.f32.mrb[32].mxu0  ;;  %v1556_v60 = vpop.f32.mrb[32].mxu1 }
 0x8c5   :  { %v1563_v11 = vrot.slane %v1515_v57, 2  ;;  %v1517_v37 = vpop.f32.mrb[33].mxu0  ;;  %v4637_v30 = vpop.f32.mrb[33].mxu1  ;;  %v1582_v18 = vadd.f32 %v5200_v38, %v1556_v60  ;;  %v6138_v57 = vld [vmem:[#allocation13 + $0x80] ss:$12 sps:$4 sm:$0xff]  }
 0x8c6   :  { %v1573_v34 = vrot.slane %v1517_v37, 2  ;;  %v1519_v8 = vpop.f32.mrb[34].mxu0  ;;  %v1559_v35 = vpop.f32.mrb[34].mxu1  ;;  %v6141_v60 = vld [vmem:[#allocation13 + $0x94] ss:$12 sps:$4 sm:$0xff]  }
 0x8c7   :  { %v1565_v16 = vadd.f32 %v1563_v11, %v5752_v17  ;;  %v1520_v27 = vpop.f32.mrb[35].mxu0  ;;  %v4638_v33 = vpop.f32.mrb[35].mxu1  ;;  %v1584_v17 = vrot.slane %v1582_v18, 2  ;;  %v6145_v11 = vld [vmem:[#allocation13 + $0x90] ss:$12 sps:$4 sm:$0xff]  }
 0x8c8   :  { %v1575_v40 = vadd.f32 %v1573_v34, %v5757_v20  ;;  %v6148_v37 = vld [vmem:[#allocation13 + $0x98] ss:$12 sps:$4 sm:$0xff]   ;;  %v6155_v34 = vld [vmem:[#allocation13 + $0xa8] ss:$12 sps:$4 sm:$0xff]   ;;  %v6158_v8 = vld [vmem:[#allocation13 + $0xb0] ss:$12 sps:$4 sm:$0xff]  }
 0x8c9   :  { %v4171_v12 = vmul.f32 -1.442695, %v1565_v16  ;;  %v6151_v30 = vld [vmem:[#allocation13 + $0xac] ss:$12 sps:$4 sm:$0xff]   ;;  %v1671_v35 = vld [vmem:[%s6599_s7] sm:$0x7] }
 0x8ca   :  { %v4172_v31 = vmul.f32 -1.442695, %v1575_v40  ;;  %v1676_v33 = vrot.slane %v1671_v35, %v5742_v63  ;;  %v1684_v40 = vrot.slane %v1671_v35, %v5755_v19 }
 0x8cb   :  { %5090 = vpow2.f32 %v4171_v12 }
 0x8cc   :  { %5092 = vpow2.f32 %v4172_v31 }
 0x8d5   :  { %v5091_v21 = vpop.eup %5090 }
 0x8d6   :  { %v5093_v15 = vpop.eup %5092  ;;  %v1569_v36 = vadd.f32 1.0, %v5091_v21  ;;  %v1680_v21 = vrot.slane %v1671_v35, %v5748_v9 }
 0x8d7   :  { %v1579_v14 = vadd.f32 1.0, %v5093_v15 }
 0x8d8   :  { %5094 = vrcp.f32 %v1569_v36 }
 0x8d9   :  { %5096 = vrcp.f32 %v1579_v14 }
 0x8e2   :  { %v5095_v46 = vpop.eup %5094 }
 0x8e3   :  { %v5097_v20 = vpop.eup %5096  ;;  %v1586_v26 = vmul.f32 %v5095_v46, %v1584_v17 }
 0x8e4   :  { %v1594_v23 = vmul.f32 %v5097_v20, %v1592_v47  ;;  %v1589_v41 = vsub.f32 1.0, %v5097_v20 }
 0x8e5   :  { %v1587_v39 = vadd.f32 %v1586_v26, %v5760_v25  ;;  %v6092_v25 = vld [vmem:[#allocation13 + $0x18] ss:$12 sps:$4 sm:$0xff]  }
 0x8e7   :  { %5098 = vtanh.f32 %v1587_v39 }
 0x8f1   :  { %v5099_v48 = vpop.eup %5098 }
 0x8f2   :  { %v1590_v43 = vmul.f32 %v5099_v48, %v1589_v41 }
 0x8f4   :  { %v1595_v42 = vadd.f32 %v1594_v23, %v1590_v43 }
 0x8f6   :  { %v1604_v49 = vsel %vm1600_vm3, %v6059_v45, %v1595_v42  ;;  %v6098_v45 = vld [vmem:[#allocation13 + $0x34] ss:$12 sps:$4 sm:$0xff]  }
 0x8f7   :  { %v1605_v58 = vpack.c.bf16 %v1604_v49, %v5923_v32  ;;  %v6105_v32 = vld [vmem:[#allocation13 + $0x30] ss:$12 sps:$4 sm:$0xff]  }
 0x8f9   :  { %1849 = vmatmul.mubr.bf16.vlgmr.msra.gmra.mrb[36].mxu0 %v1605_v58  ;;  %4656 = vmatmul.mubr.bf16.vlgmr.msra.gmra.mrb[36].mxu1 %v1605_v58 }
 0x8fa   :  { %2029 = vmatpush1.bf16.msra.mxu0 %v6084_v50  ;;  %4660 = vmatpush3.bf16.msra.mxu1 %v6086_v51 }
 0x8fb   :  { %2030 = vmatprep.subr.bf16.mxu0 %v6089_v10  ;;  %4661 = vmatprep.subr.bf16.mxu1 %v6623_v28 }
 0x8fc   :  { %2060 = vmatprep.mubr.bf16.mxu0 %v6622_v22  ;;  %4675 = vmatprep.mubr.msk.bf16.mxu1 %vm5372_vm0, %v6623_v28 }
 0x8fe   :  { %2031 = vmatpush1.bf16.msra.mxu0 %v6092_v25  ;;  %4662 = vmatpush3.bf16.msra.mxu1 %v6095_v52 }
 0x8ff   :  { %2032 = vmatprep.subr.bf16.mxu0 %v6098_v45  ;;  %4663 = vmatprep.subr.bf16.mxu1 %v6623_v28 }
 0x902   :  { %2033 = vmatpush1.bf16.msra.mxu0 %v6105_v32  ;;  %4664 = vmatpush3.bf16.msra.mxu1 %v6108_v53 }
 0x903   :  { %2034 = vmatprep.subr.bf16.mxu0 %v6111_v54  ;;  %4665 = vmatprep.subr.bf16.mxu1 %v6623_v28 }
 0x906   :  { %2035 = vmatpush1.bf16.msra.mxu0 %v6115_v55  ;;  %4666 = vmatpush3.bf16.msra.mxu1 %v6118_v56 }
 0x907   :  { %2036 = vmatprep.subr.bf16.mxu0 %v6121_v44  ;;  %4667 = vmatprep.subr.bf16.mxu1 %v6623_v28 }
 0x90a   :  { %2037 = vmatpush1.bf16.msra.mxu0 %v6125_v59  ;;  %4668 = vmatpush3.bf16.msra.mxu1 %v6128_v29 }
 0x90b   :  { %2038 = vmatprep.subr.bf16.mxu0 %v6131_v61  ;;  %4669 = vmatprep.subr.bf16.mxu1 %v6623_v28 }
 0x90e   :  { %2039 = vmatpush1.bf16.msra.mxu0 %v6135_v24  ;;  %4670 = vmatpush3.bf16.msra.mxu1 %v6138_v57 }
 0x90f   :  { %2040 = vmatprep.subr.bf16.mxu0 %v6141_v60  ;;  %4671 = vmatprep.subr.bf16.mxu1 %v6623_v28 }
 0x912   :  { %2041 = vmatpush1.bf16.msra.mxu0 %v6145_v11  ;;  %4672 = vmatpush3.bf16.msra.mxu1 %v6148_v37 }
 0x913   :  { %2042 = vmatprep.subr.bf16.mxu0 %v6151_v30  ;;  %4673 = vmatprep.subr.bf16.mxu1 %v6623_v28 }
 0x916   :  { %2043 = vmatpush1.bf16.msra.mxu0 %v6155_v34  ;;  %4674 = vmatpush3.bf16.msra.mxu1 %v6158_v8 }
 0x917   :  { %2138 = vmatprep.subr.bf16.mxu0 %v6070_v13  ;;  %4679 = vmatprep.subr.bf16.mxu1 %v6623_v28 }
 0x919   :  { %2061 = vmatmul.mubr.bf16.vlgmr.msra.gmra.mrb[40].mxu0 %v6622_v22  ;;  %4676 = vmatmul.mubr.bf16.vlgmr.msra.gmra.mrb[40].mxu1 %v6622_v22 }
 0x91a   :  { %2139 = vmatpush1.bf16.msra.mxu0 %v6084_v50  ;;  %4680 = vmatpush3.bf16.msra.mxu1 %v6086_v51 }
 0x91b   :  { %2140 = vmatprep.subr.bf16.mxu0 %v6089_v10  ;;  %4681 = vmatprep.subr.bf16.mxu1 %v6623_v28 }
 0x91c   :  { %2170 = vmatprep.mubr.bf16.mxu0 %v6622_v22  ;;  %4695 = vmatprep.mubr.msk.bf16.mxu1 %vm5372_vm0, %v6623_v28 }
 0x91e   :  { %2141 = vmatpush1.bf16.msra.mxu0 %v6092_v25  ;;  %4682 = vmatpush3.bf16.msra.mxu1 %v6095_v52 }
 0x91f   :  { %2142 = vmatprep.subr.bf16.mxu0 %v6098_v45  ;;  %4683 = vmatprep.subr.bf16.mxu1 %v6623_v28 }
 0x922   :  { %2143 = vmatpush1.bf16.msra.mxu0 %v6105_v32  ;;  %4684 = vmatpush3.bf16.msra.mxu1 %v6108_v53 }
 0x923   :  { %2144 = vmatprep.subr.bf16.mxu0 %v6111_v54  ;;  %4685 = vmatprep.subr.bf16.mxu1 %v6623_v28 }
 0x926   :  { %2145 = vmatpush1.bf16.msra.mxu0 %v6115_v55  ;;  %4686 = vmatpush3.bf16.msra.mxu1 %v6118_v56 }
 0x927   :  { %2146 = vmatprep.subr.bf16.mxu0 %v6121_v44  ;;  %4687 = vmatprep.subr.bf16.mxu1 %v6623_v28 }
 0x92a   :  { %2147 = vmatpush1.bf16.msra.mxu0 %v6125_v59  ;;  %4688 = vmatpush3.bf16.msra.mxu1 %v6128_v29 }
 0x92b   :  { %2148 = vmatprep.subr.bf16.mxu0 %v6131_v61  ;;  %4689 = vmatprep.subr.bf16.mxu1 %v6623_v28 }
 0x92e   :  { %2149 = vmatpush1.bf16.msra.mxu0 %v6135_v24  ;;  %4690 = vmatpush3.bf16.msra.mxu1 %v6138_v57 }
 0x92f   :  { %2150 = vmatprep.subr.bf16.mxu0 %v6141_v60  ;;  %4691 = vmatprep.subr.bf16.mxu1 %v6623_v28 }
 0x932   :  { %2151 = vmatpush1.bf16.msra.mxu0 %v6145_v11  ;;  %4692 = vmatpush3.bf16.msra.mxu1 %v6148_v37 }
 0x933   :  { %2152 = vmatprep.subr.bf16.mxu0 %v6151_v30  ;;  %4693 = vmatprep.subr.bf16.mxu1 %v6623_v28 }
 0x936   :  { %2153 = vmatpush1.bf16.msra.mxu0 %v6155_v34  ;;  %4694 = vmatpush3.bf16.msra.mxu1 %v6158_v8 }
 0x937   :  { %2257 = vmatprep.subr.bf16.mxu0 %v6070_v13  ;;  %4699 = vmatprep.subr.bf16.mxu1 %v6623_v28 }
 0x9cc   :  { %v1850_v16 = vpop.f32.mrb[36].mxu0  ;;  %v1893_v27 = vpop.f32.mrb[36].mxu1 }
 0x9cd   :  { %v1852_v12 = vpop.f32.mrb[37].mxu0  ;;  %v4657_v31 = vpop.f32.mrb[37].mxu1  ;;  %v6215_v47 = vadd.f32 %v1850_v16, %v1676_v33 }
 0x9ce   :  { %v1854_v15 = vpop.f32.mrb[38].mxu0  ;;  %v1896_v36 = vpop.f32.mrb[38].mxu1  ;;  %v6218_v48 = vadd.f32 %v1852_v12, %v1680_v21 }
 0x9cf   :  { %v6209_v14 = vadd.f32 %v1854_v15, %v1676_v33  ;;  %v6211_v38 = vadd.f32 %v1896_v36, %v1684_v40  ;;  %v1856_v18 = vpop.f32.mrb[39].mxu0  ;;  %v4658_v17 = vpop.f32.mrb[39].mxu1 }
 0x9d0   :  { %v6213_v46 = vadd.f32 %v1856_v18, %v1680_v21  ;;  %v6224_v18 = vld [vmem:[%s6600_s8] ss:$0 sm:$0xff] }
 0x9ec   :  { %v2062_v20 = vpop.f32.mrb[40].mxu0  ;;  %v2103_v26 = vpop.f32.mrb[40].mxu1 }
 0x9ed   :  { %v2109_v23 = vadd.f32 %v2062_v20, %v6215_v47  ;;  %v2064_v39 = vpop.f32.mrb[41].mxu0  ;;  %v4677_v41 = vpop.f32.mrb[41].mxu1  ;;  %v2129_v21 = vadd.f32 %v6224_v18, %v2103_v26  ;;  %v6227_v20 = vadd.f32 %v1893_v27, %v1684_v40 }
 0x9ee   :  { %v2066_v43 = vpop.f32.mrb[42].mxu0  ;;  %v2106_v42 = vpop.f32.mrb[42].mxu1  ;;  %v2116_v31 = vadd.f32 %v2064_v39, %v6218_v48 }
 0x9ef   :  { %v4221_v49 = vmul.f32 -1.442695, %v2109_v23  ;;  %v2067_v58 = vpop.f32.mrb[43].mxu0  ;;  %v4678_v35 = vpop.f32.mrb[43].mxu1 }
 0x9f0   :  { %v4222_v15 = vmul.f32 -1.442695, %v2116_v31 }
 0x9f1   :  { %5100 = vpow2.f32 %v4221_v49 }
 0x9f2   :  { %5102 = vpow2.f32 %v4222_v15 }
 0x9fb   :  { %v5101_v16 = vpop.eup %5100 }
 0x9fc   :  { %v2113_v33 = vadd.f32 1.0, %v5101_v16  ;;  %v5103_v36 = vpop.eup %5102 }
 0x9fd   :  { %v2120_v12 = vadd.f32 1.0, %v5103_v36 }
 0x9fe   :  { %5104 = vrcp.f32 %v2113_v33 }
 0x9ff   :  { %5106 = vrcp.f32 %v2120_v12 }
 0xa08   :  { %v5105_v17 = vpop.eup %5104 }
 0xa09   :  { %v2130_v23 = vmul.f32 %v5105_v17, %v2129_v21  ;;  %v5107_v41 = vpop.eup %5106 }
 0xa0a   :  { %v2133_v43 = vsub.f32 1.0, %v5107_v41  ;;  %v2135_v58 = vmul.f32 0.0, %v5107_v41 }
 0xa0b   :  { %v2131_v39 = vadd.f32 %v2130_v23, %v6227_v20 }
 0xa0d   :  { %5108 = vtanh.f32 %v2131_v39 }
 0xa17   :  { %v5109_v42 = vpop.eup %5108 }
 0xa18   :  { %v2134_v49 = vmul.f32 %v5109_v42, %v2133_v43 }
 0xa1a   :  { %v6230_v35 = vadd.f32 %v2135_v58, %v2134_v49 }
 0xa1c   :  { %v2137_v31 = vpack.c.bf16 %v6230_v35, %v6230_v35 }
 0xa1e   :  { %2171 = vmatmul.mubr.bf16.vlgmr.msra.gmra.mrb[44].mxu0 %v2137_v31  ;;  %4696 = vmatmul.mubr.bf16.vlgmr.msra.gmra.mrb[44].mxu1 %v2137_v31 }
 0xa1f   :  { %2258 = vmatpush1.bf16.msra.mxu0 %v6084_v50  ;;  %4700 = vmatpush3.bf16.msra.mxu1 %v6086_v51 }
 0xa20   :  { %2259 = vmatprep.subr.bf16.mxu0 %v6089_v10  ;;  %4701 = vmatprep.subr.bf16.mxu1 %v6623_v28 }
 0xa21   :  { %2289 = vmatprep.mubr.bf16.mxu0 %v6622_v22  ;;  %4715 = vmatprep.mubr.msk.bf16.mxu1 %vm5372_vm0, %v6623_v28 }
 0xa23   :  { %2260 = vmatpush1.bf16.msra.mxu0 %v6092_v25  ;;  %4702 = vmatpush3.bf16.msra.mxu1 %v6095_v52 }
 0xa24   :  { %2261 = vmatprep.subr.bf16.mxu0 %v6098_v45  ;;  %4703 = vmatprep.subr.bf16.mxu1 %v6623_v28 }
 0xa27   :  { %2262 = vmatpush1.bf16.msra.mxu0 %v6105_v32  ;;  %4704 = vmatpush3.bf16.msra.mxu1 %v6108_v53 }
 0xa28   :  { %2263 = vmatprep.subr.bf16.mxu0 %v6111_v54  ;;  %4705 = vmatprep.subr.bf16.mxu1 %v6623_v28 }
 0xa2b   :  { %2264 = vmatpush1.bf16.msra.mxu0 %v6115_v55  ;;  %4706 = vmatpush3.bf16.msra.mxu1 %v6118_v56 }
 0xa2c   :  { %2265 = vmatprep.subr.bf16.mxu0 %v6121_v44  ;;  %4707 = vmatprep.subr.bf16.mxu1 %v6623_v28 }
 0xa2f   :  { %2266 = vmatpush1.bf16.msra.mxu0 %v6125_v59  ;;  %4708 = vmatpush3.bf16.msra.mxu1 %v6128_v29 }
 0xa30   :  { %2267 = vmatprep.subr.bf16.mxu0 %v6131_v61  ;;  %4709 = vmatprep.subr.bf16.mxu1 %v6623_v28 }
 0xa33   :  { %2268 = vmatpush1.bf16.msra.mxu0 %v6135_v24  ;;  %4710 = vmatpush3.bf16.msra.mxu1 %v6138_v57 }
 0xa34   :  { %2269 = vmatprep.subr.bf16.mxu0 %v6141_v60  ;;  %4711 = vmatprep.subr.bf16.mxu1 %v6623_v28 }
 0xa37   :  { %2270 = vmatpush1.bf16.msra.mxu0 %v6145_v11  ;;  %4712 = vmatpush3.bf16.msra.mxu1 %v6148_v37 }
 0xa38   :  { %2271 = vmatprep.subr.bf16.mxu0 %v6151_v30  ;;  %4713 = vmatprep.subr.bf16.mxu1 %v6623_v28 }
 0xa3b   :  { %2272 = vmatpush1.bf16.msra.mxu0 %v6155_v34  ;;  %4714 = vmatpush3.bf16.msra.mxu1 %v6158_v8 }
 0xa3c   :  { %2376 = vmatprep.subr.bf16.mxu0 %v6070_v13  ;;  %4719 = vmatprep.subr.bf16.mxu1 %v6623_v28 }
 0xaf1   :  { %v2172_v27 = vpop.f32.mrb[44].mxu0  ;;  %v2213_v40 = vpop.f32.mrb[44].mxu1 }
 0xaf2   :  { %v2220_v26 = vrot.slane %v2172_v27, 6  ;;  %v2174_v15 = vpop.f32.mrb[45].mxu0  ;;  %v4697_v16 = vpop.f32.mrb[45].mxu1  ;;  %v2239_v27 = vadd.f32 %v6224_v18, %v2213_v40 }
 0xaf3   :  { %v2230_v33 = vrot.slane %v2174_v15, 6  ;;  %v2176_v36 = vpop.f32.mrb[46].mxu0  ;;  %v2216_v12 = vpop.f32.mrb[46].mxu1 }
 0xaf4   :  { %v2222_v21 = vadd.f32 %v2220_v26, %v6215_v47  ;;  %v2177_v17 = vpop.f32.mrb[47].mxu0  ;;  %v4698_v23 = vpop.f32.mrb[47].mxu1  ;;  %v2241_v15 = vrot.slane %v2239_v27, 6  ;;  %v2249_v26 = vrot.slane %v6230_v35, 6 }
 0xaf5   :  { %v2232_v39 = vadd.f32 %v2230_v33, %v6218_v48 }
 0xaf6   :  { %v4224_v41 = vmul.f32 -1.442695, %v2222_v21 }
 0xaf7   :  { %v4225_v43 = vmul.f32 -1.442695, %v2232_v39 }
 0xaf8   :  { %5110 = vpow2.f32 %v4224_v41 }
 0xaf9   :  { %5112 = vpow2.f32 %v4225_v43 }
 0xb02   :  { %v5111_v42 = vpop.eup %5110 }
 0xb03   :  { %v5113_v49 = vpop.eup %5112  ;;  %v2226_v58 = vadd.f32 1.0, %v5111_v42 }
 0xb04   :  { %v2236_v31 = vadd.f32 1.0, %v5113_v49 }
 0xb05   :  { %5114 = vrcp.f32 %v2226_v58 }
 0xb06   :  { %5116 = vrcp.f32 %v2236_v31 }
 0xb0f   :  { %v5115_v16 = vpop.eup %5114 }
 0xb10   :  { %v5117_v36 = vpop.eup %5116  ;;  %v2243_v12 = vmul.f32 %v5115_v16, %v2241_v15 }
 0xb11   :  { %v2251_v17 = vmul.f32 %v5117_v36, %v2249_v26  ;;  %v2246_v21 = vsub.f32 1.0, %v5117_v36 }
 0xb12   :  { %v2244_v33 = vadd.f32 %v2243_v12, %v6227_v20 }
 0xb14   :  { %5118 = vtanh.f32 %v2244_v33 }
 0xb1e   :  { %v5119_v23 = vpop.eup %5118 }
 0xb1f   :  { %v2247_v39 = vmul.f32 %v5119_v23, %v2246_v21 }
 0xb21   :  { %v6274_v41 = vadd.f32 %v2251_v17, %v2247_v39 }
 0xb23   :  { %v2253_v43 = vpack.c.bf16 %v6274_v41, %v6274_v41 }
 0xb25   :  { %v2255_v42 = vrot.slane %v2253_v43, 1 }
 0xb27   :  { %2290 = vmatmul.mubr.bf16.vlgmr.msra.gmra.mrb[48].mxu0 %v2255_v42  ;;  %4716 = vmatmul.mubr.bf16.vlgmr.msra.gmra.mrb[48].mxu1 %v2255_v42 }
 0xb28   :  { %2377 = vmatpush1.bf16.msra.mxu0 %v6084_v50  ;;  %4720 = vmatpush3.bf16.msra.mxu1 %v6086_v51 }
 0xb29   :  { %2378 = vmatprep.subr.bf16.mxu0 %v6089_v10  ;;  %4721 = vmatprep.subr.bf16.mxu1 %v6623_v28 }
 0xb2a   :  { %2408 = vmatprep.mubr.bf16.mxu0 %v6622_v22  ;;  %4735 = vmatprep.mubr.msk.bf16.mxu1 %vm5372_vm0, %v6623_v28 }
 0xb2c   :  { %2379 = vmatpush1.bf16.msra.mxu0 %v6092_v25  ;;  %4722 = vmatpush3.bf16.msra.mxu1 %v6095_v52 }
 0xb2d   :  { %2380 = vmatprep.subr.bf16.mxu0 %v6098_v45  ;;  %4723 = vmatprep.subr.bf16.mxu1 %v6623_v28 }
 0xb30   :  { %2381 = vmatpush1.bf16.msra.mxu0 %v6105_v32  ;;  %4724 = vmatpush3.bf16.msra.mxu1 %v6108_v53 }
 0xb31   :  { %2382 = vmatprep.subr.bf16.mxu0 %v6111_v54  ;;  %4725 = vmatprep.subr.bf16.mxu1 %v6623_v28 }
 0xb34   :  { %2383 = vmatpush1.bf16.msra.mxu0 %v6115_v55  ;;  %4726 = vmatpush3.bf16.msra.mxu1 %v6118_v56 }
 0xb35   :  { %2384 = vmatprep.subr.bf16.mxu0 %v6121_v44  ;;  %4727 = vmatprep.subr.bf16.mxu1 %v6623_v28 }
 0xb38   :  { %2385 = vmatpush1.bf16.msra.mxu0 %v6125_v59  ;;  %4728 = vmatpush3.bf16.msra.mxu1 %v6128_v29 }
 0xb39   :  { %2386 = vmatprep.subr.bf16.mxu0 %v6131_v61  ;;  %4729 = vmatprep.subr.bf16.mxu1 %v6623_v28 }
 0xb3c   :  { %2387 = vmatpush1.bf16.msra.mxu0 %v6135_v24  ;;  %4730 = vmatpush3.bf16.msra.mxu1 %v6138_v57 }
 0xb3d   :  { %2388 = vmatprep.subr.bf16.mxu0 %v6141_v60  ;;  %4731 = vmatprep.subr.bf16.mxu1 %v6623_v28 }
 0xb40   :  { %2389 = vmatpush1.bf16.msra.mxu0 %v6145_v11  ;;  %4732 = vmatpush3.bf16.msra.mxu1 %v6148_v37 }
 0xb41   :  { %2390 = vmatprep.subr.bf16.mxu0 %v6151_v30  ;;  %4733 = vmatprep.subr.bf16.mxu1 %v6623_v28 }
 0xb44   :  { %2391 = vmatpush1.bf16.msra.mxu0 %v6155_v34  ;;  %4734 = vmatpush3.bf16.msra.mxu1 %v6158_v8 }
 0xb45   :  { %2495 = vmatprep.subr.bf16.mxu0 %v6070_v13  ;;  %4739 = vmatprep.subr.bf16.mxu1 %v6623_v28 }
 0xbfa   :  { %v2291_v35 = vpop.f32.mrb[48].mxu0  ;;  %v2332_v40 = vpop.f32.mrb[48].mxu1 }
 0xbfb   :  { %v2339_v49 = vrot.slane %v2291_v35, 4  ;;  %v2293_v58 = vpop.f32.mrb[49].mxu0  ;;  %v4717_v31 = vpop.f32.mrb[49].mxu1  ;;  %v2358_v35 = vadd.f32 %v6224_v18, %v2332_v40 }
 0xbfc   :  { %v2349_v27 = vrot.slane %v2293_v58, 4  ;;  %v2295_v15 = vpop.f32.mrb[50].mxu0  ;;  %v2335_v16 = vpop.f32.mrb[50].mxu1 }
 0xbfd   :  { %v2341_v26 = vadd.f32 %v2339_v49, %v6215_v47  ;;  %v2296_v36 = vpop.f32.mrb[51].mxu0  ;;  %v4718_v12 = vpop.f32.mrb[51].mxu1  ;;  %v2360_v58 = vrot.slane %v2358_v35, 4  ;;  %v2368_v49 = vrot.slane %v6274_v41, 6 }
 0xbfe   :  { %v2351_v17 = vadd.f32 %v2349_v27, %v6218_v48 }
 0xbff   :  { %v4226_v33 = vmul.f32 -1.442695, %v2341_v26 }
 0xc00   :  { %v4227_v21 = vmul.f32 -1.442695, %v2351_v17 }
 0xc01   :  { %5120 = vpow2.f32 %v4226_v33 }
 0xc02   :  { %5122 = vpow2.f32 %v4227_v21 }
 0xc0b   :  { %v5121_v23 = vpop.eup %5120 }
 0xc0c   :  { %v5123_v39 = vpop.eup %5122  ;;  %v2345_v43 = vadd.f32 1.0, %v5121_v23 }
 0xc0d   :  { %v2355_v42 = vadd.f32 1.0, %v5123_v39 }
 0xc0e   :  { %5124 = vrcp.f32 %v2345_v43 }
 0xc0f   :  { %5126 = vrcp.f32 %v2355_v42 }
 0xc18   :  { %v5125_v31 = vpop.eup %5124 }
 0xc19   :  { %v5127_v15 = vpop.eup %5126  ;;  %v2362_v16 = vmul.f32 %v5125_v31, %v2360_v58 }
 0xc1a   :  { %v2370_v36 = vmul.f32 %v5127_v15, %v2368_v49  ;;  %v2365_v26 = vsub.f32 1.0, %v5127_v15 }
 0xc1b   :  { %v2363_v27 = vadd.f32 %v2362_v16, %v6227_v20 }
 0xc1d   :  { %5128 = vtanh.f32 %v2363_v27 }
 0xc27   :  { %v5129_v12 = vpop.eup %5128 }
 0xc28   :  { %v2366_v17 = vmul.f32 %v5129_v12, %v2365_v26 }
 0xc2a   :  { %v6318_v33 = vadd.f32 %v2370_v36, %v2366_v17 }
 0xc2c   :  { %v2372_v21 = vpack.c.bf16 %v6318_v33, %v6318_v33 }
 0xc2e   :  { %v2374_v23 = vrot.slane %v2372_v21, 2 }
 0xc30   :  { %2409 = vmatmul.mubr.bf16.vlgmr.msra.gmra.mrb[52].mxu0 %v2374_v23  ;;  %4736 = vmatmul.mubr.bf16.vlgmr.msra.gmra.mrb[52].mxu1 %v2374_v23 }
 0xc31   :  { %2496 = vmatpush1.bf16.msra.mxu0 %v6084_v50  ;;  %4740 = vmatpush3.bf16.msra.mxu1 %v6086_v51 }
 0xc32   :  { %2497 = vmatprep.subr.bf16.mxu0 %v6089_v10  ;;  %4741 = vmatprep.subr.bf16.mxu1 %v6623_v28 }
 0xc33   :  { %2527 = vmatprep.mubr.bf16.mxu0 %v6622_v22  ;;  %4755 = vmatprep.mubr.msk.bf16.mxu1 %vm5372_vm0, %v6623_v28 }
 0xc35   :  { %2498 = vmatpush1.bf16.msra.mxu0 %v6092_v25  ;;  %4742 = vmatpush3.bf16.msra.mxu1 %v6095_v52 }
 0xc36   :  { %2499 = vmatprep.subr.bf16.mxu0 %v6098_v45  ;;  %4743 = vmatprep.subr.bf16.mxu1 %v6623_v28 }
 0xc39   :  { %2500 = vmatpush1.bf16.msra.mxu0 %v6105_v32  ;;  %4744 = vmatpush3.bf16.msra.mxu1 %v6108_v53 }
 0xc3a   :  { %2501 = vmatprep.subr.bf16.mxu0 %v6111_v54  ;;  %4745 = vmatprep.subr.bf16.mxu1 %v6623_v28 }
 0xc3d   :  { %2502 = vmatpush1.bf16.msra.mxu0 %v6115_v55  ;;  %4746 = vmatpush3.bf16.msra.mxu1 %v6118_v56 }
 0xc3e   :  { %2503 = vmatprep.subr.bf16.mxu0 %v6121_v44  ;;  %4747 = vmatprep.subr.bf16.mxu1 %v6623_v28 }
 0xc41   :  { %2504 = vmatpush1.bf16.msra.mxu0 %v6125_v59  ;;  %4748 = vmatpush3.bf16.msra.mxu1 %v6128_v29 }
 0xc42   :  { %2505 = vmatprep.subr.bf16.mxu0 %v6131_v61  ;;  %4749 = vmatprep.subr.bf16.mxu1 %v6623_v28 }
 0xc45   :  { %2506 = vmatpush1.bf16.msra.mxu0 %v6135_v24  ;;  %4750 = vmatpush3.bf16.msra.mxu1 %v6138_v57 }
 0xc46   :  { %2507 = vmatprep.subr.bf16.mxu0 %v6141_v60  ;;  %4751 = vmatprep.subr.bf16.mxu1 %v6623_v28 }
 0xc49   :  { %2508 = vmatpush1.bf16.msra.mxu0 %v6145_v11  ;;  %4752 = vmatpush3.bf16.msra.mxu1 %v6148_v37 }
 0xc4a   :  { %2509 = vmatprep.subr.bf16.mxu0 %v6151_v30  ;;  %4753 = vmatprep.subr.bf16.mxu1 %v6623_v28 }
 0xc4d   :  { %2510 = vmatpush1.bf16.msra.mxu0 %v6155_v34  ;;  %4754 = vmatpush3.bf16.msra.mxu1 %v6158_v8 }
 0xc4e   :  { %2602 = vmatprep.subr.bf16.mxu0 %v6070_v13  ;;  %4759 = vmatprep.subr.bf16.mxu1 %v6623_v28 }
 0xd03   :  { %v2410_v41 = vpop.f32.mrb[52].mxu0  ;;  %v2451_v40 = vpop.f32.mrb[52].mxu1 }
 0xd04   :  { %v2458_v39 = vrot.slane %v2410_v41, 2  ;;  %v2412_v43 = vpop.f32.mrb[53].mxu0  ;;  %v4737_v42 = vpop.f32.mrb[53].mxu1  ;;  %v2477_v41 = vadd.f32 %v6224_v18, %v2451_v40 }
 0xd05   :  { %v2468_v35 = vrot.slane %v2412_v43, 2  ;;  %v2414_v58 = vpop.f32.mrb[54].mxu0  ;;  %v2454_v31 = vpop.f32.mrb[54].mxu1 }
 0xd06   :  { %v2460_v49 = vadd.f32 %v2458_v39, %v6215_v47  ;;  %v2415_v15 = vpop.f32.mrb[55].mxu0  ;;  %v4738_v16 = vpop.f32.mrb[55].mxu1  ;;  %v2479_v43 = vrot.slane %v2477_v41, 2  ;;  %v2487_v47 = vrot.slane %v6318_v33, 6 }
 0xd07   :  { %v2470_v36 = vadd.f32 %v2468_v35, %v6218_v48 }
 0xd08   :  { %v4228_v27 = vmul.f32 -1.442695, %v2460_v49 }
 0xd09   :  { %v4229_v26 = vmul.f32 -1.442695, %v2470_v36 }
 0xd0a   :  { %5130 = vpow2.f32 %v4228_v27 }
 0xd0b   :  { %5132 = vpow2.f32 %v4229_v26 }
 0xd14   :  { %v5131_v12 = vpop.eup %5130 }
 0xd15   :  { %v5133_v17 = vpop.eup %5132  ;;  %v2464_v21 = vadd.f32 1.0, %v5131_v12 }
 0xd16   :  { %v2474_v23 = vadd.f32 1.0, %v5133_v17 }
 0xd17   :  { %5134 = vrcp.f32 %v2464_v21 }
 0xd18   :  { %5136 = vrcp.f32 %v2474_v23 }
 0xd21   :  { %v5135_v42 = vpop.eup %5134 }
 0xd22   :  { %v5137_v39 = vpop.eup %5136  ;;  %v2481_v58 = vmul.f32 %v5135_v42, %v2479_v43 }
 0xd23   :  { %v2489_v31 = vmul.f32 %v5137_v39, %v2487_v47  ;;  %v2484_v35 = vsub.f32 1.0, %v5137_v39 }
 0xd24   :  { %v2482_v48 = vadd.f32 %v2481_v58, %v6227_v20 }
 0xd26   :  { %5138 = vtanh.f32 %v2482_v48 }
 0xd30   :  { %v5139_v49 = vpop.eup %5138 }
 0xd31   :  { %v2485_v15 = vmul.f32 %v5139_v49, %v2484_v35 }
 0xd33   :  { %v6362_v16 = vadd.f32 %v2489_v31, %v2485_v15 }
 0xd35   :  { %v2491_v36 = vpack.c.bf16 %v6362_v16, %v6362_v16  ;;  %v2597_v15 = vrot.slane %v6362_v16, 6 }
 0xd37   :  { %v2493_v27 = vrot.slane %v2491_v36, 3 }
 0xd39   :  { %2528 = vmatmul.mubr.bf16.vlgmr.msra.gmra.mrb[56].mxu0 %v2493_v27  ;;  %4756 = vmatmul.mubr.bf16.vlgmr.msra.gmra.mrb[56].mxu1 %v2493_v27 }
 0xd3a   :  { %2603 = vmatpush1.bf16.msra.mxu0 %v6084_v50  ;;  %4760 = vmatpush3.bf16.msra.mxu1 %v6086_v51 }
 0xd3b   :  { %2604 = vmatprep.subr.bf16.mxu0 %v6089_v10  ;;  %4761 = vmatprep.subr.bf16.mxu1 %v6623_v28 }
 0xd3c   :  { %2634 = vmatprep.mubr.bf16.mxu0 %v6622_v22  ;;  %4775 = vmatprep.mubr.msk.bf16.mxu1 %vm5372_vm0, %v6623_v28 }
 0xd3e   :  { %2605 = vmatpush1.bf16.msra.mxu0 %v6092_v25  ;;  %4762 = vmatpush3.bf16.msra.mxu1 %v6095_v52 }
 0xd3f   :  { %2606 = vmatprep.subr.bf16.mxu0 %v6098_v45  ;;  %4763 = vmatprep.subr.bf16.mxu1 %v6623_v28 }
 0xd42   :  { %2607 = vmatpush1.bf16.msra.mxu0 %v6105_v32  ;;  %4764 = vmatpush3.bf16.msra.mxu1 %v6108_v53 }
 0xd43   :  { %2608 = vmatprep.subr.bf16.mxu0 %v6111_v54  ;;  %4765 = vmatprep.subr.bf16.mxu1 %v6623_v28 }
 0xd46   :  { %2609 = vmatpush1.bf16.msra.mxu0 %v6115_v55  ;;  %4766 = vmatpush3.bf16.msra.mxu1 %v6118_v56 }
 0xd47   :  { %2610 = vmatprep.subr.bf16.mxu0 %v6121_v44  ;;  %4767 = vmatprep.subr.bf16.mxu1 %v6623_v28 }
 0xd4a   :  { %2611 = vmatpush1.bf16.msra.mxu0 %v6125_v59  ;;  %4768 = vmatpush3.bf16.msra.mxu1 %v6128_v29 }
 0xd4b   :  { %2612 = vmatprep.subr.bf16.mxu0 %v6131_v61  ;;  %4769 = vmatprep.subr.bf16.mxu1 %v6623_v28 }
 0xd4e   :  { %2613 = vmatpush1.bf16.msra.mxu0 %v6135_v24  ;;  %4770 = vmatpush3.bf16.msra.mxu1 %v6138_v57 }
 0xd4f   :  { %2614 = vmatprep.subr.bf16.mxu0 %v6141_v60  ;;  %4771 = vmatprep.subr.bf16.mxu1 %v6623_v28 }
 0xd52   :  { %2615 = vmatpush1.bf16.msra.mxu0 %v6145_v11  ;;  %4772 = vmatpush3.bf16.msra.mxu1 %v6148_v37 }
 0xd53   :  { %2616 = vmatprep.subr.bf16.mxu0 %v6151_v30  ;;  %4773 = vmatprep.subr.bf16.mxu1 %v6623_v28 }
 0xd56   :  { %2617 = vmatpush1.bf16.msra.mxu0 %v6155_v34  ;;  %4774 = vmatpush3.bf16.msra.mxu1 %v6158_v8 }
 0xd57   :  { %2721 = vmatprep.subr.bf16.mxu0 %v6070_v13  ;;  %4779 = vmatprep.subr.bf16.mxu1 %v6623_v28 }
 0xe0c   :  { %v2529_v20 = vpop.f32.mrb[56].mxu0  ;;  %v2570_v33 = vpop.f32.mrb[56].mxu1 }
 0xe0d   :  { %v2576_v40 = vadd.f32 %v2529_v20, %v6209_v14  ;;  %v2531_v26 = vpop.f32.mrb[57].mxu0  ;;  %v4757_v12 = vpop.f32.mrb[57].mxu1  ;;  %v2590_v35 = vadd.f32 %v6224_v18, %v2570_v33 }
 0xe0e   :  { %v2583_v17 = vadd.f32 %v2531_v26, %v6213_v46  ;;  %v2533_v21 = vpop.f32.mrb[58].mxu0  ;;  %v2573_v23 = vpop.f32.mrb[58].mxu1 }
 0xe0f   :  { %v4230_v41 = vmul.f32 -1.442695, %v2576_v40  ;;  %v2534_v43 = vpop.f32.mrb[59].mxu0  ;;  %v4758_v42 = vpop.f32.mrb[59].mxu1 }
 0xe10   :  { %v4231_v47 = vmul.f32 -1.442695, %v2583_v17 }
 0xe11   :  { %5140 = vpow2.f32 %v4230_v41 }
 0xe12   :  { %5142 = vpow2.f32 %v4231_v47 }
 0xe1b   :  { %v5141_v39 = vpop.eup %5140 }
 0xe1c   :  { %v5143_v58 = vpop.eup %5142  ;;  %v2580_v31 = vadd.f32 1.0, %v5141_v39 }
 0xe1d   :  { %v2587_v48 = vadd.f32 1.0, %v5143_v58 }
 0xe1e   :  { %5144 = vrcp.f32 %v2580_v31 }
 0xe1f   :  { %5146 = vrcp.f32 %v2587_v48 }
 0xe28   :  { %v5145_v49 = vpop.eup %5144 }
 0xe29   :  { %v5147_v36 = vpop.eup %5146  ;;  %v2591_v27 = vmul.f32 %v5145_v49, %v2590_v35 }
 0xe2a   :  { %v2599_v20 = vmul.f32 %v5147_v36, %v2597_v15  ;;  %v2594_v26 = vsub.f32 1.0, %v5147_v36 }
 0xe2b   :  { %v2592_v40 = vadd.f32 %v2591_v27, %v6211_v38 }
 0xe2d   :  { %5148 = vtanh.f32 %v2592_v40 }
 0xe37   :  { %v5149_v12 = vpop.eup %5148 }
 0xe38   :  { %v2595_v17 = vmul.f32 %v5149_v12, %v2594_v26 }
 0xe3a   :  { %v6406_v21 = vadd.f32 %v2599_v20, %v2595_v17 }
 0xe3c   :  { %v2601_v23 = vpack.c.bf16 %v6406_v21, %v6406_v21 }
 0xe3e   :  { %2635 = vmatmul.mubr.bf16.vlgmr.msra.gmra.mrb[60].mxu0 %v2601_v23  ;;  %4776 = vmatmul.mubr.bf16.vlgmr.msra.gmra.mrb[60].mxu1 %v2601_v23  ;;  %v2713_v23 = vrot.slane %v6406_v21, 6 }
 0xe3f   :  { %2722 = vmatpush1.bf16.msra.mxu0 %v6084_v50  ;;  %4780 = vmatpush3.bf16.msra.mxu1 %v6086_v51 }
 0xe40   :  { %2723 = vmatprep.subr.bf16.mxu0 %v6089_v10  ;;  %4781 = vmatprep.subr.bf16.mxu1 %v6623_v28 }
 0xe41   :  { %2753 = vmatprep.mubr.bf16.mxu0 %v6622_v22  ;;  %4795 = vmatprep.mubr.msk.bf16.mxu1 %vm5372_vm0, %v6623_v28 }
 0xe43   :  { %2724 = vmatpush1.bf16.msra.mxu0 %v6092_v25  ;;  %4782 = vmatpush3.bf16.msra.mxu1 %v6095_v52 }
 0xe44   :  { %2725 = vmatprep.subr.bf16.mxu0 %v6098_v45  ;;  %4783 = vmatprep.subr.bf16.mxu1 %v6623_v28 }
 0xe47   :  { %2726 = vmatpush1.bf16.msra.mxu0 %v6105_v32  ;;  %4784 = vmatpush3.bf16.msra.mxu1 %v6108_v53 }
 0xe48   :  { %2727 = vmatprep.subr.bf16.mxu0 %v6111_v54  ;;  %4785 = vmatprep.subr.bf16.mxu1 %v6623_v28 }
 0xe4b   :  { %2728 = vmatpush1.bf16.msra.mxu0 %v6115_v55  ;;  %4786 = vmatpush3.bf16.msra.mxu1 %v6118_v56 }
 0xe4c   :  { %2729 = vmatprep.subr.bf16.mxu0 %v6121_v44  ;;  %4787 = vmatprep.subr.bf16.mxu1 %v6623_v28 }
 0xe4f   :  { %2730 = vmatpush1.bf16.msra.mxu0 %v6125_v59  ;;  %4788 = vmatpush3.bf16.msra.mxu1 %v6128_v29 }
 0xe50   :  { %2731 = vmatprep.subr.bf16.mxu0 %v6131_v61  ;;  %4789 = vmatprep.subr.bf16.mxu1 %v6623_v28 }
 0xe53   :  { %2732 = vmatpush1.bf16.msra.mxu0 %v6135_v24  ;;  %4790 = vmatpush3.bf16.msra.mxu1 %v6138_v57 }
 0xe54   :  { %2733 = vmatprep.subr.bf16.mxu0 %v6141_v60  ;;  %4791 = vmatprep.subr.bf16.mxu1 %v6623_v28 }
 0xe57   :  { %2734 = vmatpush1.bf16.msra.mxu0 %v6145_v11  ;;  %4792 = vmatpush3.bf16.msra.mxu1 %v6148_v37 }
 0xe58   :  { %2735 = vmatprep.subr.bf16.mxu0 %v6151_v30  ;;  %4793 = vmatprep.subr.bf16.mxu1 %v6623_v28 }
 0xe5b   :  { %2736 = vmatpush1.bf16.msra.mxu0 %v6155_v34  ;;  %4794 = vmatpush3.bf16.msra.mxu1 %v6158_v8 }
 0xe5c   :  { %2840 = vmatprep.subr.bf16.mxu0 %v6070_v13  ;;  %4799 = vmatprep.subr.bf16.mxu1 %v6623_v28 }
 0xf11   :  { %v2636_v16 = vpop.f32.mrb[60].mxu0  ;;  %v2677_v33 = vpop.f32.mrb[60].mxu1 }
 0xf12   :  { %v2684_v41 = vrot.slane %v2636_v16, 6  ;;  %v2638_v43 = vpop.f32.mrb[61].mxu0  ;;  %v4777_v42 = vpop.f32.mrb[61].mxu1  ;;  %v2703_v26 = vadd.f32 %v6224_v18, %v2677_v33 }
 0xf13   :  { %v2694_v47 = vrot.slane %v2638_v43, 6  ;;  %v2640_v39 = vpop.f32.mrb[62].mxu0  ;;  %v2680_v58 = vpop.f32.mrb[62].mxu1 }
 0xf14   :  { %v2686_v31 = vadd.f32 %v2684_v41, %v6209_v14  ;;  %v2641_v48 = vpop.f32.mrb[63].mxu0  ;;  %v4778_v35 = vpop.f32.mrb[63].mxu1  ;;  %v2705_v12 = vrot.slane %v2703_v26, 6 }
 0xf15   :  { %v2696_v49 = vadd.f32 %v2694_v47, %v6213_v46 }
 0xf16   :  { %v4232_v15 = vmul.f32 -1.442695, %v2686_v31 }
 0xf17   :  { %v4233_v36 = vmul.f32 -1.442695, %v2696_v49 }
 0xf18   :  { %5150 = vpow2.f32 %v4232_v15 }
 0xf19   :  { %5152 = vpow2.f32 %v4233_v36 }
 0xf22   :  { %v5151_v13 = vpop.eup %5150 }
 0xf23   :  { %v5153_v27 = vpop.eup %5152  ;;  %v2690_v20 = vadd.f32 1.0, %v5151_v13 }
 0xf24   :  { %v2700_v40 = vadd.f32 1.0, %v5153_v27 }
 0xf25   :  { %5154 = vrcp.f32 %v2690_v20 }
 0xf26   :  { %5156 = vrcp.f32 %v2700_v40 }
 0xf2f   :  { %v5155_v17 = vpop.eup %5154 }
 0xf30   :  { %v5157_v16 = vpop.eup %5156  ;;  %v2707_v41 = vmul.f32 %v5155_v17, %v2705_v12 }
 0xf31   :  { %v2715_v43 = vmul.f32 %v5157_v16, %v2713_v23  ;;  %v2710_v47 = vsub.f32 1.0, %v5157_v16 }
 0xf32   :  { %v2708_v42 = vadd.f32 %v2707_v41, %v6211_v38 }
 0xf34   :  { %5158 = vtanh.f32 %v2708_v42 }
 0xf3e   :  { %v5159_v39 = vpop.eup %5158 }
 0xf3f   :  { %v2711_v58 = vmul.f32 %v5159_v39, %v2710_v47 }
 0xf41   :  { %v6450_v31 = vadd.f32 %v2715_v43, %v2711_v58 }
 0xf43   :  { %v2717_v48 = vpack.c.bf16 %v6450_v31, %v6450_v31 }
 0xf45   :  { %v2719_v35 = vrot.slane %v2717_v48, 1 }
 0xf47   :  { %2754 = vmatmul.mubr.bf16.vlgmr.msra.gmra.mrb[64].mxu0 %v2719_v35  ;;  %4796 = vmatmul.mubr.bf16.vlgmr.msra.gmra.mrb[64].mxu1 %v2719_v35 }
 0xf48   :  { %2841 = vmatpush1.bf16.msra.mxu0 %v6084_v50  ;;  %4800 = vmatpush3.bf16.msra.mxu1 %v6086_v51 }
 0xf49   :  { %2842 = vmatprep.subr.bf16.mxu0 %v6089_v10  ;;  %4801 = vmatprep.subr.bf16.mxu1 %v6623_v28 }
 0xf4a   :  { %2872 = vmatprep.mubr.bf16.mxu0 %v6622_v22  ;;  %4815 = vmatprep.mubr.msk.bf16.mxu1 %vm5372_vm0, %v6623_v28 }
 0xf4c   :  { %2843 = vmatpush1.bf16.msra.mxu0 %v6092_v25  ;;  %4802 = vmatpush3.bf16.msra.mxu1 %v6095_v52 }
 0xf4d   :  { %2844 = vmatprep.subr.bf16.mxu0 %v6098_v45  ;;  %4803 = vmatprep.subr.bf16.mxu1 %v6623_v28 }
 0xf50   :  { %2845 = vmatpush1.bf16.msra.mxu0 %v6105_v32  ;;  %4804 = vmatpush3.bf16.msra.mxu1 %v6108_v53 }
 0xf51   :  { %2846 = vmatprep.subr.bf16.mxu0 %v6111_v54  ;;  %4805 = vmatprep.subr.bf16.mxu1 %v6623_v28 }
 0xf54   :  { %2847 = vmatpush1.bf16.msra.mxu0 %v6115_v55  ;;  %4806 = vmatpush3.bf16.msra.mxu1 %v6118_v56 }
 0xf55   :  { %2848 = vmatprep.subr.bf16.mxu0 %v6121_v44  ;;  %4807 = vmatprep.subr.bf16.mxu1 %v6623_v28 }
 0xf58   :  { %2849 = vmatpush1.bf16.msra.mxu0 %v6125_v59  ;;  %4808 = vmatpush3.bf16.msra.mxu1 %v6128_v29 }
 0xf59   :  { %2850 = vmatprep.subr.bf16.mxu0 %v6131_v61  ;;  %4809 = vmatprep.subr.bf16.mxu1 %v6623_v28 }
 0xf5c   :  { %2851 = vmatpush1.bf16.msra.mxu0 %v6135_v24  ;;  %4810 = vmatpush3.bf16.msra.mxu1 %v6138_v57 }
 0xf5d   :  { %2852 = vmatprep.subr.bf16.mxu0 %v6141_v60  ;;  %4811 = vmatprep.subr.bf16.mxu1 %v6623_v28 }
 0xf60   :  { %2853 = vmatpush1.bf16.msra.mxu0 %v6145_v11  ;;  %4812 = vmatpush3.bf16.msra.mxu1 %v6148_v37 }
 0xf61   :  { %2854 = vmatprep.subr.bf16.mxu0 %v6151_v30  ;;  %4813 = vmatprep.subr.bf16.mxu1 %v6623_v28 }
 0xf64   :  { %2855 = vmatpush1.bf16.msra.mxu0 %v6155_v34  ;;  %4814 = vmatpush3.bf16.msra.mxu1 %v6158_v8  ;;  %v2832_v34 = vrot.slane %v6450_v31, 6 }
0x101a   :  { %v2755_v50 = vpop.f32.mrb[64].mxu0  ;;  %v2796_v51 = vpop.f32.mrb[64].mxu1 }
0x101b   :  { %v2803_v10 = vrot.slane %v2755_v50, 4  ;;  %v2757_v25 = vpop.f32.mrb[65].mxu0  ;;  %v4797_v52 = vpop.f32.mrb[65].mxu1  ;;  %v2822_v11 = vadd.f32 %v6224_v18, %v2796_v51 }
0x101c   :  { %v2813_v45 = vrot.slane %v2757_v25, 4  ;;  %v2759_v32 = vpop.f32.mrb[66].mxu0  ;;  %v2799_v53 = vpop.f32.mrb[66].mxu1 }
0x101d   :  { %v2805_v54 = vadd.f32 %v2803_v10, %v6209_v14  ;;  %v2760_v55 = vpop.f32.mrb[67].mxu0  ;;  %v4798_v56 = vpop.f32.mrb[67].mxu1  ;;  %v2824_v37 = vrot.slane %v2822_v11, 4 }
0x101e   :  { %v2815_v44 = vadd.f32 %v2813_v45, %v6213_v46 }
0x101f   :  { %v4234_v59 = vmul.f32 -1.442695, %v2805_v54 }
0x1020   :  { %v4235_v29 = vmul.f32 -1.442695, %v2815_v44 }
0x1021   :  { %5160 = vpow2.f32 %v4234_v59 }
0x1022   :  { %5162 = vpow2.f32 %v4235_v29 }
0x102b   :  { %v5161_v61 = vpop.eup %5160 }
0x102c   :  { %v5163_v24 = vpop.eup %5162  ;;  %v2809_v57 = vadd.f32 1.0, %v5161_v61 }
0x102d   :  { %v2819_v60 = vadd.f32 1.0, %v5163_v24 }
0x102e   :  { %5164 = vrcp.f32 %v2809_v57 }
0x102f   :  { %5166 = vrcp.f32 %v2819_v60 }
0x1038   :  { %v5165_v30 = vpop.eup %5164 }
0x1039   :  { %v5167_v8 = vpop.eup %5166  ;;  %v2826_v21 = vmul.f32 %v5165_v30, %v2824_v37 }
0x103a   :  { %v2834_v33 = vmul.f32 %v5167_v8, %v2832_v34  ;;  %v2829_v15 = vsub.f32 1.0, %v5167_v8 }
0x103b   :  { %v2827_v49 = vadd.f32 %v2826_v21, %v6211_v38 }
0x103d   :  { %5168 = vtanh.f32 %v2827_v49 }
0x1047   :  { %v5169_v36 = vpop.eup %5168 }
0x1048   :  { %v2830_v13 = vmul.f32 %v5169_v36, %v2829_v15 }
0x104a   :  { %v2835_v27 = vadd.f32 %v2834_v33, %v2830_v13 }
0x104c   :  { %v2836_v20 = vpack.c.bf16 %v2835_v27, %v2835_v27  ;;  %v2951_v53 = vrot.slane %v2835_v27, 6 }
0x104e   :  { %v2838_v40 = vrot.slane %v2836_v20, 2 }
0x1050   :  { %2873 = vmatmul.mubr.bf16.vlgmr.msra.gmra.mrb[68].mxu0 %v2838_v40  ;;  %4816 = vmatmul.mubr.bf16.vlgmr.msra.gmra.mrb[68].mxu1 %v2838_v40 }
0x1123   :  { %v2874_v26 = vpop.f32.mrb[68].mxu0  ;;  %v2915_v12 = vpop.f32.mrb[68].mxu1 }
0x1124   :  { %v2922_v17 = vrot.slane %v2874_v26, 2  ;;  %v2876_v23 = vpop.f32.mrb[69].mxu0  ;;  %v4817_v16 = vpop.f32.mrb[69].mxu1  ;;  %v2941_v52 = vadd.f32 %v6224_v18, %v2915_v12 }
0x1125   :  { %v2932_v41 = vrot.slane %v2876_v23, 2  ;;  %v2878_v43 = vpop.f32.mrb[70].mxu0  ;;  %v2918_v42 = vpop.f32.mrb[70].mxu1 }
0x1126   :  { %v2924_v47 = vadd.f32 %v2922_v17, %v6209_v14  ;;  %v2879_v39 = vpop.f32.mrb[71].mxu0  ;;  %v4818_v58 = vpop.f32.mrb[71].mxu1  ;;  %v2943_v45 = vrot.slane %v2941_v52, 2 }
0x1127   :  { %v2934_v31 = vadd.f32 %v2932_v41, %v6213_v46 }
0x1128   :  { %v4236_v48 = vmul.f32 -1.442695, %v2924_v47 }
0x1129   :  { %v4237_v35 = vmul.f32 -1.442695, %v2934_v31 }
0x112a   :  { %5170 = vpow2.f32 %v4236_v48 }
0x112b   :  { %5172 = vpow2.f32 %v4237_v35 }
0x1134   :  { %v5171_v50 = vpop.eup %5170 }
0x1135   :  { %v5173_v51 = vpop.eup %5172  ;;  %v2928_v10 = vadd.f32 1.0, %v5171_v50 }
0x1136   :  { %v2938_v25 = vadd.f32 1.0, %v5173_v51 }
0x1137   :  { %5174 = vrcp.f32 %v2928_v10 }
0x1138   :  { %5176 = vrcp.f32 %v2938_v25 }
0x1141   :  { %v5175_v32 = vpop.eup %5174 }
0x1142   :  { %v5177_v14 = vpop.eup %5176  ;;  %v2945_v54 = vmul.f32 %v5175_v32, %v2943_v45 }
0x1143   :  { %v2953_v55 = vmul.f32 %v5177_v14, %v2951_v53  ;;  %v2948_v56 = vsub.f32 1.0, %v5177_v14 }
0x1144   :  { %v2946_v46 = vadd.f32 %v2945_v54, %v6211_v38 }
0x1146   :  { %5178 = vtanh.f32 %v2946_v46 }
0x1150   :  { %v5179_v44 = vpop.eup %5178 }
0x1151   :  { %v2949_v59 = vmul.f32 %v5179_v44, %v2948_v56 }
0x1153   :  { %v6496_v29 = vadd.f32 %v2953_v55, %v2949_v59 }
0x1154   :  { %5339 = dma.done.wait [#allocation6], 8192 }
0x1155   :  { %5340 = vsyncadd [#allocation6], 4294959104 }
0x1156   :  { %5341 = dma.done.wait [#allocation6 + $0x1], 32768 }
0x1157   :  { %5342 = vsyncadd [#allocation6 + $0x1], 4294934528 }
0x1158   :  { %5343 = dma.done.wait [#allocation6 + $0x2], 4096 }
0x1159   :  { %5344 = vsyncadd [#allocation6 + $0x2], 4294963200 }
0x115a   :  { %5345 = dma.done.wait [#allocation6 + $0x3], 1024 }
0x115b   :  { %5346 = vsyncadd [#allocation6 + $0x3], 4294966272  ;;  %3112 = vmatprep.mubr.bf16.mxu0 %v6622_v22  ;;  %3153 = vmatprep.mubr.bf16.mxu1 %v6622_v22  ;;  %v2972_v18 = vld [vmem:[#allocation2 + $0x8] sm:$0xff]  ;;  %v2971_v38 = vld [vmem:[#allocation2] sm:$0xff]  ;;  %v2970_v42 = vpack.c.bf16 %v6496_v29, %v6496_v29  ;;  %s5373_s13 = smov [#allocation15]   ;;  %vm4050_vm4 = vcmask 99328  }
0x115c   :  { %v2980_v61 = vld [vmem:[#allocation2 + $0x48] sm:$0xff]  ;;  %3080 = vmatprep.subr.bf16.mxu0 %v2972_v18  ;;  %v2979_v24 = vld [vmem:[#allocation2 + $0x40] sm:$0xff]  ;;  %v2974_v60 = vld [vmem:[#allocation2 + $0x18] sm:$0xff]  ;;  %s4058_s2 = sshll.u32 %s5373_s13, 4  ;;  %s4059_s2 = int_to_ptr.vmem [resolvable:$true] %s4058_s2 }
0x115d   :  { %3081 = vmatpush1.bf16.msra.mxu0 %v2971_v38  ;;  %v2988_v57 = vld [vmem:[#allocation2 + $0x88] sm:$0xff]  ;;  %v2973_v11 = vld [vmem:[#allocation2 + $0x10] sm:$0xff]  ;;  %3121 = vmatprep.subr.bf16.mxu1 %v2974_v60  ;;  %v2982_v37 = vld [vmem:[#allocation2 + $0x58] sm:$0xff]  ;;  %v6502_v48 = vrot.slane %v2970_v42, 3  ;;  %p5316_p13 = scmp.lt.s32.totalorder %s4059_s2, %s4059_s2 }
0x115e   :  { %3082 = vmatprep.subr.bf16.mxu0 %v2980_v61  ;;  %v2987_v30 = vld [vmem:[#allocation2 + $0x80] sm:$0xff]  ;;  %3122 = vmatpush1.bf16.msra.mxu1 %v2973_v11  ;;  %v2996_v34 = vld [vmem:[#allocation2 + $0xc8] sm:$0xff]  ;;  %v2981_v8 = vld [vmem:[#allocation2 + $0x50] sm:$0xff] }
0x115f   :  { %3123 = vmatprep.subr.bf16.mxu1 %v2982_v37  ;;  %v2990_v21 = vld [vmem:[#allocation2 + $0x98] sm:$0xff]  ;;  %v2995_v33 = vld [vmem:[#allocation2 + $0xc0] sm:$0xff]  ;;  %v3004_v49 = vld [vmem:[#allocation2 + $0x108] sm:$0xff] }
0x1160   :  { %v2989_v15 = vld [vmem:[#allocation2 + $0x90] sm:$0xff]  ;;  %v2998_v36 = vld [vmem:[#allocation2 + $0xd8] sm:$0xff]  ;;  %v3003_v13 = vld [vmem:[#allocation2 + $0x100] sm:$0xff] }
0x1161   :  { %3083 = vmatpush1.bf16.msra.mxu0 %v2979_v24  ;;  %v3012_v27 = vld [vmem:[#allocation2 + $0x148] sm:$0xff]  ;;  %v2997_v20 = vld [vmem:[#allocation2 + $0xd0] sm:$0xff]  ;;  %v3006_v40 = vld [vmem:[#allocation2 + $0x118] sm:$0xff] }
0x1162   :  { %3084 = vmatprep.subr.bf16.mxu0 %v2988_v57  ;;  %3124 = vmatpush1.bf16.msra.mxu1 %v2981_v8  ;;  %v3011_v26 = vld [vmem:[#allocation2 + $0x140] sm:$0xff]  ;;  %v3020_v12 = vld [vmem:[#allocation2 + $0x188] sm:$0xff]  ;;  %v3005_v17 = vld [vmem:[#allocation2 + $0x110] sm:$0xff] }
0x1163   :  { %3125 = vmatprep.subr.bf16.mxu1 %v2990_v21  ;;  %v3014_v23 = vld [vmem:[#allocation2 + $0x158] sm:$0xff]  ;;  %v3019_v16 = vld [vmem:[#allocation2 + $0x180] sm:$0xff]  ;;  %v3028_v41 = vld [vmem:[#allocation2 + $0x1c8] sm:$0xff] }
0x1164   :  { %v3013_v43 = vld [vmem:[#allocation2 + $0x150] sm:$0xff]  ;;  %v3022_v47 = vld [vmem:[#allocation2 + $0x198] sm:$0xff]  ;;  %v3027_v39 = vld [vmem:[#allocation2 + $0x1c0] sm:$0xff] }
0x1165   :  { %3085 = vmatpush1.bf16.msra.mxu0 %v2987_v30  ;;  %v3021_v58 = vld [vmem:[#allocation2 + $0x190] sm:$0xff]  ;;  %v2976_v31 = vld [vmem:[#allocation2 + $0x28] sm:$0xff]  ;;  %v3030_v35 = vld [vmem:[#allocation2 + $0x1d8] sm:$0xff] }
0x1166   :  { %3086 = vmatprep.subr.bf16.mxu0 %v2996_v34  ;;  %3126 = vmatpush1.bf16.msra.mxu1 %v2989_v15  ;;  %v2975_v50 = vld [vmem:[#allocation2 + $0x20] sm:$0xff]  ;;  %v3029_v51 = vld [vmem:[#allocation2 + $0x1d0] sm:$0xff]  ;;  %v2984_v10 = vld [vmem:[#allocation2 + $0x68] sm:$0xff] }
0x1167   :  { %3127 = vmatprep.subr.bf16.mxu1 %v2998_v36  ;;  %v2978_v25 = vld [vmem:[#allocation2 + $0x38] sm:$0xff]  ;;  %v2983_v52 = vld [vmem:[#allocation2 + $0x60] sm:$0xff]  ;;  %v2992_v45 = vld [vmem:[#allocation2 + $0xa8] sm:$0xff] }
0x1168   :  { %v2977_v32 = vld [vmem:[#allocation2 + $0x30] sm:$0xff]  ;;  %v2986_v53 = vld [vmem:[#allocation2 + $0x78] sm:$0xff]  ;;  %v2991_v14 = vld [vmem:[#allocation2 + $0xa0] sm:$0xff] }
0x1169   :  { %3087 = vmatpush1.bf16.msra.mxu0 %v2995_v33  ;;  %v3000_v54 = vld [vmem:[#allocation2 + $0xe8] sm:$0xff]  ;;  %v2985_v55 = vld [vmem:[#allocation2 + $0x70] sm:$0xff]  ;;  %v2994_v46 = vld [vmem:[#allocation2 + $0xb8] sm:$0xff] }
0x116a   :  { %3088 = vmatprep.subr.bf16.mxu0 %v3004_v49  ;;  %3128 = vmatpush1.bf16.msra.mxu1 %v2997_v20  ;;  %v2999_v56 = vld [vmem:[#allocation2 + $0xe0] sm:$0xff]  ;;  %v3008_v44 = vld [vmem:[#allocation2 + $0x128] sm:$0xff]  ;;  %v2993_v59 = vld [vmem:[#allocation2 + $0xb0] sm:$0xff] }
0x116b   :  { %3129 = vmatprep.subr.bf16.mxu1 %v3006_v40  ;;  %v3002_v29 = vld [vmem:[#allocation2 + $0xf8] sm:$0xff]  ;;  %v3007_v18 = vld [vmem:[#allocation2 + $0x120] sm:$0xff]  ;;  %v3016_v38 = vld [vmem:[#allocation2 + $0x168] sm:$0xff] }
0x116c   :  { %v3001_v61 = vld [vmem:[#allocation2 + $0xf0] sm:$0xff]  ;;  %v3010_v24 = vld [vmem:[#allocation2 + $0x138] sm:$0xff]  ;;  %v3024_v57 = vld [vmem:[#allocation2 + $0x1a8] sm:$0xff] }
0x116d   :  { %3089 = vmatpush1.bf16.msra.mxu0 %v3003_v13  ;;  %v3009_v60 = vld [vmem:[#allocation2 + $0x130] sm:$0xff]  ;;  %v3018_v11 = vld [vmem:[#allocation2 + $0x178] sm:$0xff]  ;;  %v3023_v37 = vld [vmem:[#allocation2 + $0x1a0] sm:$0xff] }
0x116e   :  { %3090 = vmatprep.subr.bf16.mxu0 %v3012_v27  ;;  %3130 = vmatpush1.bf16.msra.mxu1 %v3005_v17  ;;  %v3032_v30 = vld [vmem:[#allocation2 + $0x1e8] sm:$0xff]  ;;  %v3017_v34 = vld [vmem:[#allocation2 + $0x170] sm:$0xff]  ;;  %v3026_v8 = vld [vmem:[#allocation2 + $0x1b8] sm:$0xff] }
0x116f   :  { %3131 = vmatprep.subr.bf16.mxu1 %v3014_v23  ;;  %v3031_v21 = vld [vmem:[#allocation2 + $0x1e0] sm:$0xff]  ;;  %v3025_v33 = vld [vmem:[#allocation2 + $0x1b0] sm:$0xff]  ;;  %v3261_v49 = vld [vmem:[#allocation3 + $0x8] sm:$0xff] }
0x1170   :  { %v3034_v15 = vld [vmem:[#allocation2 + $0x1f8] sm:$0xff]  ;;  %v3260_v36 = vld [vmem:[#allocation3] sm:$0xff]  ;;  %v3033_v13 = vld [vmem:[#allocation2 + $0x1f0] sm:$0xff] }
0x1171   :  { %3091 = vmatpush1.bf16.msra.mxu0 %v3011_v26  ;;  %v3265_v27 = vld [vmem:[#allocation3 + $0x28] sm:$0xff]  ;;  %v3263_v20 = vld [vmem:[#allocation3 + $0x18] sm:$0xff]  ;;  %v3264_v40 = vld [vmem:[#allocation3 + $0x20] sm:$0xff] }
0x1172   :  { %3092 = vmatprep.subr.bf16.mxu0 %v3020_v12  ;;  %3132 = vmatpush1.bf16.msra.mxu1 %v3013_v43  ;;  %v3262_v26 = vld [vmem:[#allocation3 + $0x10] sm:$0xff]  ;;  %v3269_v12 = vld [vmem:[#allocation3 + $0x48] sm:$0xff]  ;;  %v3267_v17 = vld [vmem:[#allocation3 + $0x38] sm:$0xff] }
0x1173   :  { %3133 = vmatprep.subr.bf16.mxu1 %v3022_v47  ;;  %v3268_v23 = vld [vmem:[#allocation3 + $0x40] sm:$0xff]  ;;  %v3271_v43 = vld [vmem:[#allocation3 + $0x58] sm:$0xff]  ;;  %v3270_v47 = vld [vmem:[#allocation3 + $0x50] sm:$0xff] }
0x1174   :  { %v3272_v42 = vld [vmem:[#allocation3 + $0x60] sm:$0xff] }
0x1175   :  { %3093 = vmatpush1.bf16.msra.mxu0 %v3019_v16  ;;  %v3266_v16 = vld [vmem:[#allocation3 + $0x30] sm:$0xff] }
0x1176   :  { %3094 = vmatprep.subr.bf16.mxu0 %v3028_v41  ;;  %3134 = vmatpush1.bf16.msra.mxu1 %v3021_v58  ;;  %v3273_v41 = vld [vmem:[#allocation3 + $0x68] sm:$0xff]  ;;  %v3275_v58 = vld [vmem:[#allocation3 + $0x78] sm:$0xff] }
0x1177   :  { %3135 = vmatprep.subr.bf16.mxu1 %v3030_v35  ;;  %v3281_v35 = vld [vmem:[#allocation3 + $0xa8] sm:$0xff] }
0x1179   :  { %3095 = vmatpush1.bf16.msra.mxu0 %v3027_v39  ;;  %v3277_v39 = vld [vmem:[#allocation3 + $0x88] sm:$0xff] }
0x117a   :  { %3162 = vmatprep.subr.bf16.mxu0 %v2976_v31  ;;  %3136 = vmatpush1.bf16.msra.mxu1 %v3029_v51  ;;  %v3276_v31 = vld [vmem:[#allocation3 + $0x80] sm:$0xff] }
0x117b   :  { %3203 = vmatprep.subr.bf16.mxu1 %v2978_v25  ;;  %v3280_v51 = vld [vmem:[#allocation3 + $0xa0] sm:$0xff]  ;;  %v3285_v25 = vld [vmem:[#allocation3 + $0xc8] sm:$0xff] }
0x117c   :  { %3113 = vmatmul.mubr.bf16.vlgmr.msra.gmra.mrb[72].mxu0 %v6502_v48 }
0x117d   :  { %3163 = vmatpush1.bf16.msra.mxu0 %v2975_v50  ;;  %3194 = vmatprep.mubr.bf16.mxu0 %v6622_v22  ;;  %v3279_v50 = vld [vmem:[#allocation3 + $0x98] sm:$0xff] }
0x117e   :  { %3164 = vmatprep.subr.bf16.mxu0 %v2984_v10  ;;  %3154 = vmatmul.mubr.bf16.vlgmr.msra.gmra.mrb[72].mxu1 %v6502_v48  ;;  %v3278_v10 = vld [vmem:[#allocation3 + $0x90] sm:$0xff] }
0x117f   :  { %3204 = vmatpush1.bf16.msra.mxu1 %v2977_v32  ;;  %3235 = vmatprep.mubr.bf16.mxu1 %v6622_v22  ;;  %v3015_v22 = vld [vmem:[#allocation2 + $0x160] sm:$0xff]  ;;  %v3282_v32 = vld [vmem:[#allocation3 + $0xb0] sm:$0xff] }
0x1180   :  { %3205 = vmatprep.subr.bf16.mxu1 %v2986_v53  ;;  %v3289_v53 = vld [vmem:[#allocation3 + $0xe8] sm:$0xff] }
0x1181   :  { %3165 = vmatpush1.bf16.msra.mxu0 %v2983_v52  ;;  %v3283_v52 = vld [vmem:[#allocation3 + $0xb8] sm:$0xff] }
0x1182   :  { %3166 = vmatprep.subr.bf16.mxu0 %v2992_v45  ;;  %v3284_v45 = vld [vmem:[#allocation3 + $0xc0] sm:$0xff] }
0x1183   :  { %3206 = vmatpush1.bf16.msra.mxu1 %v2985_v55  ;;  %v3286_v55 = vld [vmem:[#allocation3 + $0xd0] sm:$0xff] }
0x1184   :  { %3207 = vmatprep.subr.bf16.mxu1 %v2994_v46  ;;  %v3293_v46 = vld [vmem:[#allocation3 + $0x108] sm:$0xff] }
0x1185   :  { %3167 = vmatpush1.bf16.msra.mxu0 %v2991_v14  ;;  %v3287_v14 = vld [vmem:[#allocation3 + $0xd8] sm:$0xff] }
0x1186   :  { %3168 = vmatprep.subr.bf16.mxu0 %v3000_v54  ;;  %v3288_v54 = vld [vmem:[#allocation3 + $0xe0] sm:$0xff] }
0x1187   :  { %3208 = vmatpush1.bf16.msra.mxu1 %v2993_v59  ;;  %v3290_v59 = vld [vmem:[#allocation3 + $0xf0] sm:$0xff] }
0x1188   :  { %3209 = vmatprep.subr.bf16.mxu1 %v3002_v29  ;;  %v3297_v29 = vld [vmem:[#allocation3 + $0x128] sm:$0xff] }
0x1189   :  { %3169 = vmatpush1.bf16.msra.mxu0 %v2999_v56  ;;  %v3291_v56 = vld [vmem:[#allocation3 + $0xf8] sm:$0xff] }
0x118a   :  { %3170 = vmatprep.subr.bf16.mxu0 %v3008_v44  ;;  %v3292_v44 = vld [vmem:[#allocation3 + $0x100] sm:$0xff] }
0x118b   :  { %3210 = vmatpush1.bf16.msra.mxu1 %v3001_v61  ;;  %v3294_v61 = vld [vmem:[#allocation3 + $0x110] sm:$0xff] }
0x118c   :  { %3211 = vmatprep.subr.bf16.mxu1 %v3010_v24  ;;  %v3301_v24 = vld [vmem:[#allocation3 + $0x148] sm:$0xff] }
0x118d   :  { %3171 = vmatpush1.bf16.msra.mxu0 %v3007_v18  ;;  %v3295_v18 = vld [vmem:[#allocation3 + $0x118] sm:$0xff] }
0x118e   :  { %3172 = vmatprep.subr.bf16.mxu0 %v3016_v38  ;;  %v3296_v38 = vld [vmem:[#allocation3 + $0x120] sm:$0xff] }
0x118f   :  { %3212 = vmatpush1.bf16.msra.mxu1 %v3009_v60  ;;  %v3298_v60 = vld [vmem:[#allocation3 + $0x130] sm:$0xff] }
0x1190   :  { %3213 = vmatprep.subr.bf16.mxu1 %v3018_v11  ;;  %v3305_v11 = vld [vmem:[#allocation3 + $0x168] sm:$0xff] }
0x1191   :  { %3173 = vmatpush1.bf16.msra.mxu0 %v3015_v22  ;;  %v3299_v22 = vld [vmem:[#allocation3 + $0x138] sm:$0xff] }
0x1192   :  { %3174 = vmatprep.subr.bf16.mxu0 %v3024_v57  ;;  %v3300_v57 = vld [vmem:[#allocation3 + $0x140] sm:$0xff] }
0x1193   :  { %3214 = vmatpush1.bf16.msra.mxu1 %v3017_v34  ;;  %v3302_v34 = vld [vmem:[#allocation3 + $0x150] sm:$0xff] }
0x1194   :  { %3215 = vmatprep.subr.bf16.mxu1 %v3026_v8  ;;  %v3309_v8 = vld [vmem:[#allocation3 + $0x188] sm:$0xff] }
0x1195   :  { %3175 = vmatpush1.bf16.msra.mxu0 %v3023_v37  ;;  %v3303_v37 = vld [vmem:[#allocation3 + $0x158] sm:$0xff] }
0x1196   :  { %3176 = vmatprep.subr.bf16.mxu0 %v3032_v30  ;;  %v3304_v30 = vld [vmem:[#allocation3 + $0x160] sm:$0xff] }
0x1197   :  { %3216 = vmatpush1.bf16.msra.mxu1 %v3025_v33  ;;  %v3308_v33 = vld [vmem:[#allocation3 + $0x180] sm:$0xff] }
0x1198   :  { %3217 = vmatprep.subr.bf16.mxu1 %v3034_v15  ;;  %v3313_v15 = vld [vmem:[#allocation3 + $0x1a8] sm:$0xff] }
0x1199   :  { %3177 = vmatpush1.bf16.msra.mxu0 %v3031_v21  ;;  %v3307_v21 = vld [vmem:[#allocation3 + $0x178] sm:$0xff] }
0x119a   :  { %3538 = vmatprep.subr.bf16.mxu0 %v3261_v49  ;;  %v3306_v49 = vld [vmem:[#allocation3 + $0x170] sm:$0xff] }
0x119b   :  { %3218 = vmatpush1.bf16.msra.mxu1 %v3033_v13  ;;  %v3312_v13 = vld [vmem:[#allocation3 + $0x1a0] sm:$0xff] }
0x119c   :  { %3195 = vmatmul.mubr.bf16.vlgmr.msra.gmra.mrb[76].mxu0 %v6502_v48  ;;  %3702 = vmatprep.subr.bf16.mxu1 %v3263_v20  ;;  %v3317_v20 = vld [vmem:[#allocation3 + $0x1c8] sm:$0xff] }
0x119d   :  { %3539 = vmatpush1.bf16.msra.mxu0 %v3260_v36  ;;  %v3311_v36 = vld [vmem:[#allocation3 + $0x198] sm:$0xff] }
0x119e   :  { %3540 = vmatprep.subr.bf16.mxu0 %v3265_v27  ;;  %3236 = vmatmul.mubr.bf16.vlgmr.msra.gmra.mrb[76].mxu1 %v6502_v48  ;;  %v3274_v48 = vld [vmem:[#allocation3 + $0x70] sm:$0xff] }
0x119f   :  { %3703 = vmatpush1.bf16.msra.mxu1 %v3262_v26  ;;  %v3310_v27 = vld [vmem:[#allocation3 + $0x190] sm:$0xff]  ;;  %v3316_v26 = vld [vmem:[#allocation3 + $0x1c0] sm:$0xff] }
0x11a0   :  { %3704 = vmatprep.subr.bf16.mxu1 %v3267_v17  ;;  %v3321_v17 = vld [vmem:[#allocation3 + $0x1e8] sm:$0xff] }
0x11a1   :  { %3541 = vmatpush1.bf16.msra.mxu0 %v3264_v40  ;;  %v3315_v40 = vld [vmem:[#allocation3 + $0x1b8] sm:$0xff] }
0x11a2   :  { %3542 = vmatprep.subr.bf16.mxu0 %v3269_v12  ;;  %v3314_v12 = vld [vmem:[#allocation3 + $0x1b0] sm:$0xff] }
0x11a3   :  { %3705 = vmatpush1.bf16.msra.mxu1 %v3266_v16  ;;  %v3320_v16 = vld [vmem:[#allocation3 + $0x1e0] sm:$0xff] }
0x11a4   :  { %3706 = vmatprep.subr.bf16.mxu1 %v3271_v43  ;;  %v3325_v43 = vld [vmem:[#allocation3 + $0x208] sm:$0xff] }
0x11a5   :  { %3543 = vmatpush1.bf16.msra.mxu0 %v3268_v23  ;;  %v3319_v23 = vld [vmem:[#allocation3 + $0x1d8] sm:$0xff] }
0x11a6   :  { %3544 = vmatprep.subr.bf16.mxu0 %v3273_v41  ;;  %v3318_v41 = vld [vmem:[#allocation3 + $0x1d0] sm:$0xff] }
0x11a7   :  { %3707 = vmatpush1.bf16.msra.mxu1 %v3270_v47  ;;  %v3322_v47 = vld [vmem:[#allocation3 + $0x1f0] sm:$0xff] }
0x11a8   :  { %3708 = vmatprep.subr.bf16.mxu1 %v3275_v58  ;;  %v6513_v58 = vld [vmem:[%s6601_s9] sm:$0xff] }
0x11a9   :  { %3545 = vmatpush1.bf16.msra.mxu0 %v3272_v42  ;;  %v3323_v42 = vld [vmem:[#allocation3 + $0x1f8] sm:$0xff] }
0x11aa   :  { %3546 = vmatprep.subr.bf16.mxu0 %v3277_v39  ;;  %v3327_v39 = vld [vmem:[#allocation3 + $0x218] sm:$0xff] }
0x11ab   :  { %3709 = vmatpush1.bf16.msra.mxu1 %v3274_v48  ;;  %v3044_v48 = vrot.slane %v6513_v58, %v5748_v9 }
0x11ac   :  { %3710 = vmatprep.subr.bf16.mxu1 %v3279_v50 }
0x11ad   :  { %3547 = vmatpush1.bf16.msra.mxu0 %v3276_v31  ;;  %v3040_v31 = vrot.slane %v6513_v58, %v5742_v63 }
0x11ae   :  { %3548 = vmatprep.subr.bf16.mxu0 %v3281_v35  ;;  %v3051_v35 = vsub.s32 3, %v5739_v62 }
0x11af   :  { %3711 = vmatpush1.bf16.msra.mxu1 %v3278_v10 }
0x11b0   :  { %3712 = vmatprep.subr.bf16.mxu1 %v3283_v52 }
0x11b1   :  { %3549 = vmatpush1.bf16.msra.mxu0 %v3280_v51 }
0x11b2   :  { %3550 = vmatprep.subr.bf16.mxu0 %v3285_v25 }
0x11b3   :  { %3713 = vmatpush1.bf16.msra.mxu1 %v3282_v32 }
0x11b4   :  { %3714 = vmatprep.subr.bf16.mxu1 %v3287_v14 }
0x11b5   :  { %3551 = vmatpush1.bf16.msra.mxu0 %v3284_v45 }
0x11b6   :  { %3552 = vmatprep.subr.bf16.mxu0 %v3289_v53  ;;  %v3052_v53 = vrot.slane %v6513_v58, %v3051_v35 }
0x11b7   :  { %3715 = vmatpush1.bf16.msra.mxu1 %v3286_v55 }
0x11b8   :  { %3716 = vmatprep.subr.bf16.mxu1 %v3291_v56 }
0x11b9   :  { %3553 = vmatpush1.bf16.msra.mxu0 %v3288_v54 }
0x11ba   :  { %3554 = vmatprep.subr.bf16.mxu0 %v3293_v46 }
0x11bb   :  { %3717 = vmatpush1.bf16.msra.mxu1 %v3290_v59  ;;  %v3326_v59 = vld [vmem:[#allocation3 + $0x210] sm:$0xff] }
0x11bc   :  { %3718 = vmatprep.subr.bf16.mxu1 %v3295_v18 }
0x11bd   :  { %3555 = vmatpush1.bf16.msra.mxu0 %v3292_v44  ;;  %v3324_v44 = vld [vmem:[#allocation3 + $0x200] sm:$0xff] }
0x11be   :  { %3556 = vmatprep.subr.bf16.mxu0 %v3297_v29 }
0x11bf   :  { %3719 = vmatpush1.bf16.msra.mxu1 %v3294_v61  ;;  %v3331_v61 = vld [vmem:[#allocation3 + $0x238] sm:$0xff] }
0x11c0   :  { %3720 = vmatprep.subr.bf16.mxu1 %v3299_v22 }
0x11c1   :  { %3557 = vmatpush1.bf16.msra.mxu0 %v3296_v38  ;;  %v3329_v38 = vld [vmem:[#allocation3 + $0x228] sm:$0xff] }
0x11c2   :  { %3558 = vmatprep.subr.bf16.mxu0 %v3301_v24 }
0x11c3   :  { %3721 = vmatpush1.bf16.msra.mxu1 %v3298_v60  ;;  %v3330_v60 = vld [vmem:[#allocation3 + $0x230] sm:$0xff] }
0x11c4   :  { %3722 = vmatprep.subr.bf16.mxu1 %v3303_v37  ;;  %v3333_v37 = vld [vmem:[#allocation3 + $0x248] sm:$0xff] }
0x11c5   :  { %3559 = vmatpush1.bf16.msra.mxu0 %v3300_v57  ;;  %v3328_v57 = vld [vmem:[#allocation3 + $0x220] sm:$0xff] }
0x11c6   :  { %3560 = vmatprep.subr.bf16.mxu0 %v3305_v11 }
0x11c7   :  { %3723 = vmatpush1.bf16.msra.mxu1 %v3302_v34  ;;  %v3332_v34 = vld [vmem:[#allocation3 + $0x240] sm:$0xff] }
0x11c8   :  { %3724 = vmatprep.subr.bf16.mxu1 %v3307_v21  ;;  %v3337_v21 = vld [vmem:[#allocation3 + $0x268] sm:$0xff] }
0x11c9   :  { %3561 = vmatpush1.bf16.msra.mxu0 %v3304_v30  ;;  %v3335_v30 = vld [vmem:[#allocation3 + $0x258] sm:$0xff] }
0x11ca   :  { %3562 = vmatprep.subr.bf16.mxu0 %v3309_v8  ;;  %v3334_v8 = vld [vmem:[#allocation3 + $0x250] sm:$0xff] }
0x11cb   :  { %3725 = vmatpush1.bf16.msra.mxu1 %v3306_v49  ;;  %v3336_v49 = vld [vmem:[#allocation3 + $0x260] sm:$0xff] }
0x11cc   :  { %3726 = vmatprep.subr.bf16.mxu1 %v3311_v36  ;;  %v3341_v36 = vld [vmem:[#allocation3 + $0x288] sm:$0xff] }
0x11cd   :  { %3563 = vmatpush1.bf16.msra.mxu0 %v3308_v33  ;;  %v3339_v33 = vld [vmem:[#allocation3 + $0x278] sm:$0xff] }
0x11ce   :  { %3564 = vmatprep.subr.bf16.mxu0 %v3313_v15  ;;  %v3338_v15 = vld [vmem:[#allocation3 + $0x270] sm:$0xff] }
0x11cf   :  { %3727 = vmatpush1.bf16.msra.mxu1 %v3310_v27  ;;  %v3340_v27 = vld [vmem:[#allocation3 + $0x280] sm:$0xff] }
0x11d0   :  { %3728 = vmatprep.subr.bf16.mxu1 %v3315_v40  ;;  %v3345_v40 = vld [vmem:[#allocation3 + $0x2a8] sm:$0xff] }
0x11d1   :  { %3565 = vmatpush1.bf16.msra.mxu0 %v3312_v13  ;;  %v3343_v13 = vld [vmem:[#allocation3 + $0x298] sm:$0xff] }
0x11d2   :  { %3566 = vmatprep.subr.bf16.mxu0 %v3317_v20  ;;  %v3342_v20 = vld [vmem:[#allocation3 + $0x290] sm:$0xff] }
0x11d3   :  { %3729 = vmatpush1.bf16.msra.mxu1 %v3314_v12  ;;  %v3344_v12 = vld [vmem:[#allocation3 + $0x2a0] sm:$0xff] }
0x11d4   :  { %3730 = vmatprep.subr.bf16.mxu1 %v3319_v23  ;;  %v3349_v23 = vld [vmem:[#allocation3 + $0x2c8] sm:$0xff] }
0x11d5   :  { %3567 = vmatpush1.bf16.msra.mxu0 %v3316_v26  ;;  %v3347_v26 = vld [vmem:[#allocation3 + $0x2b8] sm:$0xff] }
0x11d6   :  { %3568 = vmatprep.subr.bf16.mxu0 %v3321_v17  ;;  %v3346_v17 = vld [vmem:[#allocation3 + $0x2b0] sm:$0xff] }
0x11d7   :  { %3731 = vmatpush1.bf16.msra.mxu1 %v3318_v41  ;;  %v3348_v41 = vld [vmem:[#allocation3 + $0x2c0] sm:$0xff] }
0x11d8   :  { %3732 = vmatprep.subr.bf16.mxu1 %v3323_v42  ;;  %v3353_v42 = vld [vmem:[#allocation3 + $0x2e8] sm:$0xff] }
0x11d9   :  { %3569 = vmatpush1.bf16.msra.mxu0 %v3320_v16  ;;  %v3351_v16 = vld [vmem:[#allocation3 + $0x2d8] sm:$0xff] }
0x11da   :  { %3579 = vmatprep.subr.bf16.mxu0 %v3325_v43  ;;  %v3350_v43 = vld [vmem:[#allocation3 + $0x2d0] sm:$0xff] }
0x11db   :  { %3733 = vmatpush1.bf16.msra.mxu1 %v3322_v47  ;;  %v3355_v47 = vld [vmem:[#allocation3 + $0x2f8] sm:$0xff] }
0x11dc   :  { %3743 = vmatprep.subr.bf16.mxu1 %v3327_v39 }
0x124f   :  { %v3114_v50 = vpop.f32.mrb[72].mxu0 }
0x1250   :  { %v3115_v51 = vadd.f32 %v3114_v50, %v3040_v31  ;;  %v3116_v10 = vpop.f32.mrb[73].mxu0  ;;  %v3352_v50 = vld [vmem:[#allocation3 + $0x2e0] sm:$0xff] }
0x1251   :  { %v3117_v25 = vadd.f32 %v3116_v10, %v3044_v48  ;;  %v3118_v52 = vpop.f32.mrb[74].mxu0  ;;  %v6523_v54 = vpop.f32.mrb[72].mxu1 }
0x1252   :  { %v3244_v45 = vmax.f32 %v3115_v51, 0.0  ;;  %v3119_v32 = vpop.f32.mrb[75].mxu0  ;;  %v3157_v46 = vpop.f32.mrb[73].mxu1  ;;  %v3354_v51 = vld [vmem:[#allocation3 + $0x2f0] sm:$0xff]  ;;  %v3359_v52 = vld [vmem:[#allocation3 + $0x318] sm:$0xff] }
0x1253   :  { %v3245_v14 = vmax.f32 %v3117_v25, 0.0  ;;  %v3158_v29 = vadd.f32 %v3157_v46, %v3052_v53  ;;  %v3159_v18 = vpop.f32.mrb[74].mxu1  ;;  %v3357_v25 = vld [vmem:[#allocation3 + $0x308] sm:$0xff]  ;;  %v3356_v53 = vld [vmem:[#allocation3 + $0x300] sm:$0xff] }
0x1254   :  { %v3252_v56 = vpack.c.bf16 %v3244_v45, %v3244_v45  ;;  %v3160_v24 = vpop.f32.mrb[75].mxu1  ;;  %v3361_v46 = vld [vmem:[#allocation3 + $0x328] sm:$0xff] }
0x1255   :  { %v3253_v55 = vpack.c.bf16 %v3245_v14, %v3245_v14  ;;  %v3247_v22 = vmax.f32 %v3158_v29, 0.0  ;;  %v3358_v14 = vld [vmem:[#allocation3 + $0x310] sm:$0xff]  ;;  %v3365_v18 = vld [vmem:[#allocation3 + $0x348] sm:$0xff] }
0x1256   :  { %v3362_v29 = vld [vmem:[#allocation3 + $0x330] sm:$0xff] }
0x1257   :  { %3570 = vmatprep.mubr.bf16.mxu0 %v3253_v55  ;;  %3734 = vmatprep.mubr.bf16.mxu1 %v3253_v55  ;;  %v3255_v11 = vpack.c.bf16 %v3247_v22, %v3247_v22  ;;  %v3366_v24 = vld [vmem:[#allocation3 + $0x350] sm:$0xff]  ;;  %v3369_v22 = vld [vmem:[#allocation3 + $0x368] sm:$0xff] }
0x1258   :  { %3571 = vmatmul.mubr.bf16.vlgmr.msra.gmra.mrb[80].mxu0 %v3252_v56  ;;  %3735 = vmatmul.mubr.bf16.vlgmr.msra.gmra.mrb[80].mxu1 %v3252_v56  ;;  %v3363_v56 = vld [vmem:[#allocation3 + $0x338] sm:$0xff] }
0x1259   :  { %3580 = vmatpush1.bf16.msra.mxu0 %v3324_v44  ;;  %3744 = vmatpush1.bf16.msra.mxu1 %v3326_v59  ;;  %v3360_v59 = vld [vmem:[#allocation3 + $0x320] sm:$0xff] }
0x125a   :  { %3581 = vmatprep.subr.bf16.mxu0 %v3329_v38  ;;  %3745 = vmatprep.subr.bf16.mxu1 %v3331_v61  ;;  %v3367_v38 = vld [vmem:[#allocation3 + $0x358] sm:$0xff]  ;;  %v3364_v61 = vld [vmem:[#allocation3 + $0x340] sm:$0xff] }
0x125b   :  { %3611 = vmatprep.mubr.bf16.mxu0 %v3255_v11  ;;  %3775 = vmatprep.mubr.bf16.mxu1 %v3255_v11  ;;  %v3370_v11 = vld [vmem:[#allocation3 + $0x370] sm:$0xff] }
0x125d   :  { %3582 = vmatpush1.bf16.msra.mxu0 %v3328_v57  ;;  %3746 = vmatpush1.bf16.msra.mxu1 %v3330_v60  ;;  %v3371_v57 = vld [vmem:[#allocation3 + $0x378] sm:$0xff]  ;;  %v3368_v60 = vld [vmem:[#allocation3 + $0x360] sm:$0xff] }
0x125e   :  { %3583 = vmatprep.subr.bf16.mxu0 %v3333_v37  ;;  %3747 = vmatprep.subr.bf16.mxu1 %v3335_v30  ;;  %v3373_v37 = vld [vmem:[#allocation3 + $0x388] sm:$0xff]  ;;  %v3375_v30 = vld [vmem:[#allocation3 + $0x398] sm:$0xff] }
0x1261   :  { %3584 = vmatpush1.bf16.msra.mxu0 %v3332_v34  ;;  %3748 = vmatpush1.bf16.msra.mxu1 %v3334_v8  ;;  %v3372_v34 = vld [vmem:[#allocation3 + $0x380] sm:$0xff]  ;;  %v3374_v8 = vld [vmem:[#allocation3 + $0x390] sm:$0xff] }
0x1262   :  { %3585 = vmatprep.subr.bf16.mxu0 %v3337_v21  ;;  %3749 = vmatprep.subr.bf16.mxu1 %v3339_v33  ;;  %v3377_v21 = vld [vmem:[#allocation3 + $0x3a8] sm:$0xff]  ;;  %v3379_v33 = vld [vmem:[#allocation3 + $0x3b8] sm:$0xff] }
0x1265   :  { %3586 = vmatpush1.bf16.msra.mxu0 %v3336_v49  ;;  %3750 = vmatpush1.bf16.msra.mxu1 %v3338_v15  ;;  %v3059_v49 = vsub.s32 5, %v5739_v62  ;;  %v3048_v15 = vrot.slane %v6513_v58, %v5755_v19 }
0x1266   :  { %3587 = vmatprep.subr.bf16.mxu0 %v3341_v36  ;;  %3751 = vmatprep.subr.bf16.mxu1 %v3343_v13  ;;  %v3376_v36 = vld [vmem:[#allocation3 + $0x3a0] sm:$0xff]  ;;  %v3378_v13 = vld [vmem:[#allocation3 + $0x3b0] sm:$0xff] }
0x1269   :  { %3588 = vmatpush1.bf16.msra.mxu0 %v3340_v27  ;;  %3752 = vmatpush1.bf16.msra.mxu1 %v3342_v20  ;;  %v3381_v27 = vld [vmem:[#allocation3 + $0x3c8] sm:$0xff]  ;;  %v3383_v20 = vld [vmem:[#allocation3 + $0x3d8] sm:$0xff] }
0x126a   :  { %3589 = vmatprep.subr.bf16.mxu0 %v3345_v40  ;;  %3753 = vmatprep.subr.bf16.mxu1 %v3347_v26  ;;  %v3060_v40 = vrot.slane %v6513_v58, %v3059_v49  ;;  %v3156_v26 = vadd.f32 %v6523_v54, %v3048_v15  ;;  %v3414_v49 = vld [vmem:[#allocation3 + $0x4d0] sm:$0xff]  ;;  %v3417_v15 = vld [vmem:[#allocation3 + $0x4e8] sm:$0xff] }
0x126d   :  { %3590 = vmatpush1.bf16.msra.mxu0 %v3344_v12  ;;  %3754 = vmatpush1.bf16.msra.mxu1 %v3346_v17  ;;  %v3380_v12 = vld [vmem:[#allocation3 + $0x3c0] sm:$0xff]  ;;  %v3382_v17 = vld [vmem:[#allocation3 + $0x3d0] sm:$0xff] }
0x126e   :  { %3591 = vmatprep.subr.bf16.mxu0 %v3349_v23  ;;  %3755 = vmatprep.subr.bf16.mxu1 %v3351_v16  ;;  %v3385_v23 = vld [vmem:[#allocation3 + $0x3e8] sm:$0xff]  ;;  %v3387_v16 = vld [vmem:[#allocation3 + $0x3f8] sm:$0xff] }
0x126f   :  { %v6525_v39 = vpop.f32.mrb[76].mxu0 }
0x1270   :  { %v6527_v31 = vpop.f32.mrb[77].mxu0 }
0x1271   :  { %3592 = vmatpush1.bf16.msra.mxu0 %v3348_v41  ;;  %3756 = vmatpush1.bf16.msra.mxu1 %v3350_v43  ;;  %v3200_v48 = vpop.f32.mrb[78].mxu0  ;;  %v6529_v45 = vpop.f32.mrb[76].mxu1  ;;  %v3199_v41 = vadd.f32 %v6527_v31, %v3060_v40  ;;  %v3246_v43 = vmax.f32 %v3156_v26, 0.0  ;;  %v3423_v40 = vld [vmem:[#allocation3 + $0x518] sm:$0xff]  ;;  %v3420_v26 = vld [vmem:[#allocation3 + $0x500] sm:$0xff] }
0x1272   :  { %3593 = vmatprep.subr.bf16.mxu0 %v3353_v42  ;;  %3757 = vmatprep.subr.bf16.mxu1 %v3355_v47  ;;  %v3201_v10 = vpop.f32.mrb[79].mxu0  ;;  %v6531_v32 = vpop.f32.mrb[77].mxu1  ;;  %v3384_v42 = vld [vmem:[#allocation3 + $0x3e0] sm:$0xff]  ;;  %v3386_v47 = vld [vmem:[#allocation3 + $0x3f0] sm:$0xff]  ;;  %v3389_v48 = vld [vmem:[#allocation3 + $0x408] sm:$0xff] }
0x1273   :  { %v3241_v55 = vpop.f32.mrb[78].mxu1  ;;  %v3249_v54 = vmax.f32 %v3199_v41, 0.0  ;;  %v3388_v10 = vld [vmem:[#allocation3 + $0x400] sm:$0xff]  ;;  %v3426_v41 = vld [vmem:[#allocation3 + $0x530] sm:$0xff] }
0x1274   :  { %v3242_v44 = vpop.f32.mrb[79].mxu1  ;;  %v3394_v55 = vld [vmem:[#allocation3 + $0x430] sm:$0xff] }
0x1275   :  { %3594 = vmatpush1.bf16.msra.mxu0 %v3352_v50  ;;  %3758 = vmatpush1.bf16.msra.mxu1 %v3354_v51  ;;  %v3391_v50 = vld [vmem:[#allocation3 + $0x418] sm:$0xff]  ;;  %v3254_v51 = vpack.c.bf16 %v3246_v43, %v3246_v43  ;;  %v3257_v31 = vpack.c.bf16 %v3249_v54, %v3249_v54  ;;  %v3396_v44 = vld [vmem:[#allocation3 + $0x440] sm:$0xff]  ;;  %v3429_v43 = vld [vmem:[#allocation3 + $0x548] sm:$0xff] }
0x1276   :  { %3595 = vmatprep.subr.bf16.mxu0 %v3357_v25  ;;  %3759 = vmatprep.subr.bf16.mxu1 %v3359_v52  ;;  %v3390_v25 = vld [vmem:[#allocation3 + $0x410] sm:$0xff]  ;;  %v3393_v52 = vld [vmem:[#allocation3 + $0x428] sm:$0xff]  ;;  %v3435_v54 = vld [vmem:[#allocation3 + $0x578] sm:$0xff] }
0x1279   :  { %3596 = vmatpush1.bf16.msra.mxu0 %v3356_v53  ;;  %3760 = vmatpush1.bf16.msra.mxu1 %v3358_v14  ;;  %v3395_v53 = vld [vmem:[#allocation3 + $0x438] sm:$0xff]  ;;  %v3392_v14 = vld [vmem:[#allocation3 + $0x420] sm:$0xff] }
0x127a   :  { %3597 = vmatprep.subr.bf16.mxu0 %v3361_v46  ;;  %3761 = vmatprep.subr.bf16.mxu1 %v3363_v56  ;;  %v3397_v46 = vld [vmem:[#allocation3 + $0x448] sm:$0xff]  ;;  %v3399_v56 = vld [vmem:[#allocation3 + $0x458] sm:$0xff] }
0x127d   :  { %3598 = vmatpush1.bf16.msra.mxu0 %v3360_v59  ;;  %3762 = vmatpush1.bf16.msra.mxu1 %v3362_v29  ;;  %v3398_v59 = vld [vmem:[#allocation3 + $0x450] sm:$0xff]  ;;  %v3401_v29 = vld [vmem:[#allocation3 + $0x468] sm:$0xff] }
0x127e   :  { %3599 = vmatprep.subr.bf16.mxu0 %v3365_v18  ;;  %3763 = vmatprep.subr.bf16.mxu1 %v3367_v38  ;;  %v3403_v18 = vld [vmem:[#allocation3 + $0x478] sm:$0xff]  ;;  %v3400_v38 = vld [vmem:[#allocation3 + $0x460] sm:$0xff] }
0x1281   :  { %3600 = vmatpush1.bf16.msra.mxu0 %v3364_v61  ;;  %3764 = vmatpush1.bf16.msra.mxu1 %v3366_v24  ;;  %v3402_v61 = vld [vmem:[#allocation3 + $0x470] sm:$0xff]  ;;  %v3405_v24 = vld [vmem:[#allocation3 + $0x488] sm:$0xff] }
0x1282   :  { %3601 = vmatprep.subr.bf16.mxu0 %v3369_v22  ;;  %3765 = vmatprep.subr.bf16.mxu1 %v3371_v57  ;;  %v3407_v22 = vld [vmem:[#allocation3 + $0x498] sm:$0xff]  ;;  %v3404_v57 = vld [vmem:[#allocation3 + $0x480] sm:$0xff] }
0x1285   :  { %3602 = vmatpush1.bf16.msra.mxu0 %v3368_v60  ;;  %3766 = vmatpush1.bf16.msra.mxu1 %v3370_v11  ;;  %v3406_v60 = vld [vmem:[#allocation3 + $0x490] sm:$0xff]  ;;  %v3409_v11 = vld [vmem:[#allocation3 + $0x4a8] sm:$0xff] }
0x1286   :  { %3603 = vmatprep.subr.bf16.mxu0 %v3373_v37  ;;  %3767 = vmatprep.subr.bf16.mxu1 %v3375_v30  ;;  %v3411_v37 = vld [vmem:[#allocation3 + $0x4b8] sm:$0xff]  ;;  %v3408_v30 = vld [vmem:[#allocation3 + $0x4a0] sm:$0xff] }
0x1289   :  { %3604 = vmatpush1.bf16.msra.mxu0 %v3372_v34  ;;  %3768 = vmatpush1.bf16.msra.mxu1 %v3374_v8  ;;  %v3410_v34 = vld [vmem:[#allocation3 + $0x4b0] sm:$0xff]  ;;  %v3413_v8 = vld [vmem:[#allocation3 + $0x4c8] sm:$0xff] }
0x128a   :  { %3605 = vmatprep.subr.bf16.mxu0 %v3377_v21  ;;  %3769 = vmatprep.subr.bf16.mxu1 %v3379_v33  ;;  %v3415_v21 = vld [vmem:[#allocation3 + $0x4d8] sm:$0xff]  ;;  %v3412_v33 = vld [vmem:[#allocation3 + $0x4c0] sm:$0xff] }
0x128d   :  { %3606 = vmatpush1.bf16.msra.mxu0 %v3376_v36  ;;  %3770 = vmatpush1.bf16.msra.mxu1 %v3378_v13  ;;  %v3419_v36 = vld [vmem:[#allocation3 + $0x4f8] sm:$0xff]  ;;  %v3416_v13 = vld [vmem:[#allocation3 + $0x4e0] sm:$0xff] }
0x128e   :  { %3607 = vmatprep.subr.bf16.mxu0 %v3381_v27  ;;  %3771 = vmatprep.subr.bf16.mxu1 %v3383_v20  ;;  %v3418_v27 = vld [vmem:[#allocation3 + $0x4f0] sm:$0xff]  ;;  %v3421_v20 = vld [vmem:[#allocation3 + $0x508] sm:$0xff] }
0x1291   :  { %3608 = vmatpush1.bf16.msra.mxu0 %v3380_v12  ;;  %3772 = vmatpush1.bf16.msra.mxu1 %v3382_v17  ;;  %v3422_v12 = vld [vmem:[#allocation3 + $0x510] sm:$0xff]  ;;  %v3425_v17 = vld [vmem:[#allocation3 + $0x528] sm:$0xff] }
0x1292   :  { %3609 = vmatprep.subr.bf16.mxu0 %v3385_v23  ;;  %3773 = vmatprep.subr.bf16.mxu1 %v3387_v16  ;;  %v3427_v23 = vld [vmem:[#allocation3 + $0x538] sm:$0xff]  ;;  %v3424_v16 = vld [vmem:[#allocation3 + $0x520] sm:$0xff] }
0x1295   :  { %3610 = vmatpush1.bf16.msra.mxu0 %v3384_v42  ;;  %3774 = vmatpush1.bf16.msra.mxu1 %v3386_v47  ;;  %v3431_v42 = vld [vmem:[#allocation3 + $0x558] sm:$0xff]  ;;  %v3428_v47 = vld [vmem:[#allocation3 + $0x540] sm:$0xff] }
0x1296   :  { %3620 = vmatprep.subr.bf16.mxu0 %v3389_v48  ;;  %3784 = vmatprep.subr.bf16.mxu1 %v3391_v50  ;;  %v3430_v48 = vld [vmem:[#allocation3 + $0x550] sm:$0xff]  ;;  %v3433_v50 = vld [vmem:[#allocation3 + $0x568] sm:$0xff] }
0x1298   :  { %3612 = vmatmul.mubr.bf16.vlgmr.msra.gmra.mrb[80].mxu0 %v3254_v51  ;;  %3776 = vmatmul.mubr.bf16.vlgmr.msra.gmra.mrb[80].mxu1 %v3254_v51  ;;  %v3432_v51 = vld [vmem:[#allocation3 + $0x560] sm:$0xff] }
0x1299   :  { %3621 = vmatpush1.bf16.msra.mxu0 %v3388_v10  ;;  %3785 = vmatpush1.bf16.msra.mxu1 %v3390_v25  ;;  %v3434_v10 = vld [vmem:[#allocation3 + $0x570] sm:$0xff]  ;;  %v3437_v25 = vld [vmem:[#allocation3 + $0x588] sm:$0xff] }
0x129a   :  { %3622 = vmatprep.subr.bf16.mxu0 %v3393_v52  ;;  %3786 = vmatprep.subr.bf16.mxu1 %v3395_v53  ;;  %v3439_v52 = vld [vmem:[#allocation3 + $0x598] sm:$0xff]  ;;  %v3055_v53 = vsub.s32 4, %v5739_v62 }
0x129b   :  { %3652 = vmatprep.mubr.bf16.mxu0 %v3257_v31  ;;  %3816 = vmatprep.mubr.bf16.mxu1 %v3257_v31  ;;  %v3436_v31 = vld [vmem:[#allocation3 + $0x580] sm:$0xff] }
0x129d   :  { %3623 = vmatpush1.bf16.msra.mxu0 %v3392_v14  ;;  %3787 = vmatpush1.bf16.msra.mxu1 %v3394_v55  ;;  %v3438_v14 = vld [vmem:[#allocation3 + $0x590] sm:$0xff]  ;;  %v3441_v55 = vld [vmem:[#allocation3 + $0x5a8] sm:$0xff] }
0x129e   :  { %3624 = vmatprep.subr.bf16.mxu0 %v3397_v46  ;;  %3788 = vmatprep.subr.bf16.mxu1 %v3399_v56  ;;  %v3443_v46 = vld [vmem:[#allocation3 + $0x5b8] sm:$0xff]  ;;  %v3067_v56 = vsub.s32 7, %v5739_v62 }
0x12a1   :  { %3625 = vmatpush1.bf16.msra.mxu0 %v3396_v44  ;;  %3789 = vmatpush1.bf16.msra.mxu1 %v3398_v59  ;;  %v3056_v44 = vrot.slane %v6513_v58, %v3055_v53  ;;  %v3440_v59 = vld [vmem:[#allocation3 + $0x5a0] sm:$0xff]  ;;  %v3477_v53 = vld [vmem:[#allocation3 + $0x6c8] sm:$0xff] }
0x12a2   :  { %3626 = vmatprep.subr.bf16.mxu0 %v3401_v29  ;;  %3790 = vmatprep.subr.bf16.mxu1 %v3403_v18  ;;  %v3442_v29 = vld [vmem:[#allocation3 + $0x5b0] sm:$0xff]  ;;  %v3445_v18 = vld [vmem:[#allocation3 + $0x5c8] sm:$0xff] }
0x12a5   :  { %3627 = vmatpush1.bf16.msra.mxu0 %v3400_v38  ;;  %3791 = vmatpush1.bf16.msra.mxu1 %v3402_v61  ;;  %v3447_v38 = vld [vmem:[#allocation3 + $0x5d8] sm:$0xff]  ;;  %v3068_v61 = vrot.slane %v6513_v58, %v3067_v56 }
0x12a6   :  { %3628 = vmatprep.subr.bf16.mxu0 %v3405_v24  ;;  %3792 = vmatprep.subr.bf16.mxu1 %v3407_v22  ;;  %v3197_v24 = vadd.f32 %v6525_v39, %v3056_v44  ;;  %v3444_v22 = vld [vmem:[#allocation3 + $0x5c0] sm:$0xff]  ;;  %v3483_v56 = vld [vmem:[#allocation3 + $0x6f8] sm:$0xff] }
0x12a7   :  { %v3480_v44 = vld [vmem:[#allocation3 + $0x6e0] sm:$0xff] }
0x12a9   :  { %3629 = vmatpush1.bf16.msra.mxu0 %v3404_v57  ;;  %3793 = vmatpush1.bf16.msra.mxu1 %v3406_v60  ;;  %v3446_v57 = vld [vmem:[#allocation3 + $0x5d0] sm:$0xff]  ;;  %v3449_v60 = vld [vmem:[#allocation3 + $0x5e8] sm:$0xff] }
0x12aa   :  { %3630 = vmatprep.subr.bf16.mxu0 %v3409_v11  ;;  %3794 = vmatprep.subr.bf16.mxu1 %v3411_v37  ;;  %v3451_v11 = vld [vmem:[#allocation3 + $0x5f8] sm:$0xff]  ;;  %v3240_v37 = vadd.f32 %v6531_v32, %v3068_v61  ;;  %v3486_v61 = vld [vmem:[#allocation3 + $0x710] sm:$0xff] }
0x12ac   :  { %v3251_v39 = vmax.f32 %v3240_v37, 0.0  ;;  %v3495_v37 = vld [vmem:[#allocation3 + $0x758] sm:$0xff] }
0x12ad   :  { %3631 = vmatpush1.bf16.msra.mxu0 %v3408_v30  ;;  %3795 = vmatpush1.bf16.msra.mxu1 %v3410_v34  ;;  %v3248_v30 = vmax.f32 %v3197_v24, 0.0  ;;  %v3448_v34 = vld [vmem:[#allocation3 + $0x5e0] sm:$0xff]  ;;  %v3489_v24 = vld [vmem:[#allocation3 + $0x728] sm:$0xff] }
0x12ae   :  { %3632 = vmatprep.subr.bf16.mxu0 %v3413_v8  ;;  %3796 = vmatprep.subr.bf16.mxu1 %v3415_v21  ;;  %v3450_v8 = vld [vmem:[#allocation3 + $0x5f0] sm:$0xff]  ;;  %v3453_v21 = vld [vmem:[#allocation3 + $0x608] sm:$0xff]  ;;  %v3259_v32 = vpack.c.bf16 %v3251_v39, %v3251_v39 }
0x12af   :  { %v3498_v39 = vld [vmem:[#allocation3 + $0x770] sm:$0xff] }
0x12b1   :  { %3633 = vmatpush1.bf16.msra.mxu0 %v3412_v33  ;;  %3797 = vmatpush1.bf16.msra.mxu1 %v3414_v49  ;;  %v3455_v33 = vld [vmem:[#allocation3 + $0x618] sm:$0xff]  ;;  %v3256_v49 = vpack.c.bf16 %v3248_v30, %v3248_v30  ;;  %v3492_v30 = vld [vmem:[#allocation3 + $0x740] sm:$0xff] }
0x12b2   :  { %3634 = vmatprep.subr.bf16.mxu0 %v3417_v15  ;;  %3798 = vmatprep.subr.bf16.mxu1 %v3419_v36  ;;  %v3452_v15 = vld [vmem:[#allocation3 + $0x600] sm:$0xff]  ;;  %v3454_v36 = vld [vmem:[#allocation3 + $0x610] sm:$0xff] }
0x12b5   :  { %3635 = vmatpush1.bf16.msra.mxu0 %v3416_v13  ;;  %3799 = vmatpush1.bf16.msra.mxu1 %v3418_v27  ;;  %v3457_v13 = vld [vmem:[#allocation3 + $0x628] sm:$0xff]  ;;  %v3459_v27 = vld [vmem:[#allocation3 + $0x638] sm:$0xff] }
0x12b6   :  { %3636 = vmatprep.subr.bf16.mxu0 %v3421_v20  ;;  %3800 = vmatprep.subr.bf16.mxu1 %v3423_v40  ;;  %v3456_v20 = vld [vmem:[#allocation3 + $0x620] sm:$0xff]  ;;  %v3458_v40 = vld [vmem:[#allocation3 + $0x630] sm:$0xff] }
0x12b9   :  { %3637 = vmatpush1.bf16.msra.mxu0 %v3420_v26  ;;  %3801 = vmatpush1.bf16.msra.mxu1 %v3422_v12  ;;  %v3461_v26 = vld [vmem:[#allocation3 + $0x648] sm:$0xff]  ;;  %v3463_v12 = vld [vmem:[#allocation3 + $0x658] sm:$0xff] }
0x12ba   :  { %3638 = vmatprep.subr.bf16.mxu0 %v3425_v17  ;;  %3802 = vmatprep.subr.bf16.mxu1 %v3427_v23  ;;  %v3460_v17 = vld [vmem:[#allocation3 + $0x640] sm:$0xff]  ;;  %v3462_v23 = vld [vmem:[#allocation3 + $0x650] sm:$0xff] }
0x12bd   :  { %3639 = vmatpush1.bf16.msra.mxu0 %v3424_v16  ;;  %3803 = vmatpush1.bf16.msra.mxu1 %v3426_v41  ;;  %v3465_v16 = vld [vmem:[#allocation3 + $0x668] sm:$0xff]  ;;  %v3467_v41 = vld [vmem:[#allocation3 + $0x678] sm:$0xff] }
0x12be   :  { %3640 = vmatprep.subr.bf16.mxu0 %v3429_v43  ;;  %3804 = vmatprep.subr.bf16.mxu1 %v3431_v42  ;;  %v3464_v43 = vld [vmem:[#allocation3 + $0x660] sm:$0xff]  ;;  %v3466_v42 = vld [vmem:[#allocation3 + $0x670] sm:$0xff] }
0x12c1   :  { %3641 = vmatpush1.bf16.msra.mxu0 %v3428_v47  ;;  %3805 = vmatpush1.bf16.msra.mxu1 %v3430_v48  ;;  %v3469_v47 = vld [vmem:[#allocation3 + $0x688] sm:$0xff]  ;;  %v3471_v48 = vld [vmem:[#allocation3 + $0x698] sm:$0xff] }
0x12c2   :  { %3642 = vmatprep.subr.bf16.mxu0 %v3433_v50  ;;  %3806 = vmatprep.subr.bf16.mxu1 %v3435_v54  ;;  %v3468_v50 = vld [vmem:[#allocation3 + $0x680] sm:$0xff]  ;;  %v3470_v54 = vld [vmem:[#allocation3 + $0x690] sm:$0xff] }
0x12c5   :  { %3643 = vmatpush1.bf16.msra.mxu0 %v3432_v51  ;;  %3807 = vmatpush1.bf16.msra.mxu1 %v3434_v10  ;;  %v3473_v51 = vld [vmem:[#allocation3 + $0x6a8] sm:$0xff]  ;;  %v3475_v10 = vld [vmem:[#allocation3 + $0x6b8] sm:$0xff] }
0x12c6   :  { %3644 = vmatprep.subr.bf16.mxu0 %v3437_v25  ;;  %3808 = vmatprep.subr.bf16.mxu1 %v3439_v52  ;;  %v3472_v25 = vld [vmem:[#allocation3 + $0x6a0] sm:$0xff]  ;;  %v3474_v52 = vld [vmem:[#allocation3 + $0x6b0] sm:$0xff] }
0x12c9   :  { %3645 = vmatpush1.bf16.msra.mxu0 %v3436_v31  ;;  %3809 = vmatpush1.bf16.msra.mxu1 %v3438_v14  ;;  %v3479_v31 = vld [vmem:[#allocation3 + $0x6d8] sm:$0xff]  ;;  %v3476_v14 = vld [vmem:[#allocation3 + $0x6c0] sm:$0xff] }
0x12ca   :  { %3646 = vmatprep.subr.bf16.mxu0 %v3441_v55  ;;  %3810 = vmatprep.subr.bf16.mxu1 %v3443_v46  ;;  %v3478_v55 = vld [vmem:[#allocation3 + $0x6d0] sm:$0xff]  ;;  %v3481_v46 = vld [vmem:[#allocation3 + $0x6e8] sm:$0xff] }
0x12cd   :  { %3647 = vmatpush1.bf16.msra.mxu0 %v3440_v59  ;;  %3811 = vmatpush1.bf16.msra.mxu1 %v3442_v29  ;;  %v3482_v59 = vld [vmem:[#allocation3 + $0x6f0] sm:$0xff]  ;;  %v3485_v29 = vld [vmem:[#allocation3 + $0x708] sm:$0xff] }
0x12ce   :  { %3648 = vmatprep.subr.bf16.mxu0 %v3445_v18  ;;  %3812 = vmatprep.subr.bf16.mxu1 %v3447_v38  ;;  %v3487_v18 = vld [vmem:[#allocation3 + $0x718] sm:$0xff]  ;;  %v3484_v38 = vld [vmem:[#allocation3 + $0x700] sm:$0xff] }
0x12d1   :  { %3649 = vmatpush1.bf16.msra.mxu0 %v3444_v22  ;;  %3813 = vmatpush1.bf16.msra.mxu1 %v3446_v57  ;;  %v3491_v22 = vld [vmem:[#allocation3 + $0x738] sm:$0xff]  ;;  %v3488_v57 = vld [vmem:[#allocation3 + $0x720] sm:$0xff] }
0x12d2   :  { %3650 = vmatprep.subr.bf16.mxu0 %v3449_v60  ;;  %3814 = vmatprep.subr.bf16.mxu1 %v3451_v11  ;;  %v3490_v60 = vld [vmem:[#allocation3 + $0x730] sm:$0xff]  ;;  %v3493_v11 = vld [vmem:[#allocation3 + $0x748] sm:$0xff] }
0x12d5   :  { %3651 = vmatpush1.bf16.msra.mxu0 %v3448_v34  ;;  %3815 = vmatpush1.bf16.msra.mxu1 %v3450_v8  ;;  %v3494_v34 = vld [vmem:[#allocation3 + $0x750] sm:$0xff]  ;;  %v3497_v8 = vld [vmem:[#allocation3 + $0x768] sm:$0xff] }
0x12d6   :  { %3661 = vmatprep.subr.bf16.mxu0 %v3453_v21  ;;  %3825 = vmatprep.subr.bf16.mxu1 %v3455_v33  ;;  %v3499_v21 = vld [vmem:[#allocation3 + $0x778] sm:$0xff]  ;;  %v3496_v33 = vld [vmem:[#allocation3 + $0x760] sm:$0xff] }
0x12d8   :  { %3653 = vmatmul.mubr.bf16.vlgmr.msra.gmra.mrb[80].mxu0 %v3256_v49  ;;  %3817 = vmatmul.mubr.bf16.vlgmr.msra.gmra.mrb[80].mxu1 %v3256_v49  ;;  %v3501_v49 = vld [vmem:[#allocation3 + $0x788] sm:$0xff] }
0x12d9   :  { %3662 = vmatpush1.bf16.msra.mxu0 %v3452_v15  ;;  %3826 = vmatpush1.bf16.msra.mxu1 %v3454_v36  ;;  %v3503_v15 = vld [vmem:[#allocation3 + $0x798] sm:$0xff]  ;;  %v3063_v36 = vsub.s32 6, %v5739_v62 }
0x12da   :  { %3663 = vmatprep.subr.bf16.mxu0 %v3457_v13  ;;  %3827 = vmatprep.subr.bf16.mxu1 %v3459_v27  ;;  %v3500_v13 = vld [vmem:[#allocation3 + $0x780] sm:$0xff]  ;;  %v3502_v27 = vld [vmem:[#allocation3 + $0x790] sm:$0xff] }
0x12db   :  { %3693 = vmatprep.mubr.bf16.mxu0 %v3259_v32  ;;  %3857 = vmatprep.mubr.bf16.mxu1 %v3259_v32  ;;  %v3505_v32 = vld [vmem:[#allocation3 + $0x7a8] sm:$0xff] }
0x12dd   :  { %3664 = vmatpush1.bf16.msra.mxu0 %v3456_v20  ;;  %3828 = vmatpush1.bf16.msra.mxu1 %v3458_v40  ;;  %v3507_v20 = vld [vmem:[#allocation3 + $0x7b8] sm:$0xff]  ;;  %v3064_v40 = vrot.slane %v6513_v58, %v3063_v36  ;;  %v3512_v58 = vld [vmem:[#allocation3 + $0x7e0] sm:$0xff] }
0x12de   :  { %3665 = vmatprep.subr.bf16.mxu0 %v3461_v26  ;;  %3829 = vmatprep.subr.bf16.mxu1 %v3463_v12  ;;  %v3504_v26 = vld [vmem:[#allocation3 + $0x7a0] sm:$0xff]  ;;  %v3506_v12 = vld [vmem:[#allocation3 + $0x7b0] sm:$0xff]  ;;  %v3897_v36 = vld [vmem:[#allocation4 + $0xb8] sm:$0xff] }
0x12e1   :  { %3666 = vmatpush1.bf16.msra.mxu0 %v3460_v17  ;;  %3830 = vmatpush1.bf16.msra.mxu1 %v3462_v23  ;;  %v3509_v17 = vld [vmem:[#allocation3 + $0x7c8] sm:$0xff]  ;;  %v3511_v23 = vld [vmem:[#allocation3 + $0x7d8] sm:$0xff] }
0x12e2   :  { %3667 = vmatprep.subr.bf16.mxu0 %v3465_v16  ;;  %3831 = vmatprep.subr.bf16.mxu1 %v3467_v41  ;;  %v3238_v16 = vadd.f32 %v6529_v45, %v3064_v40  ;;  %v3508_v41 = vld [vmem:[#allocation3 + $0x7c0] sm:$0xff] }
0x12e3   :  { %v3874_v45 = vld [vmem:[#allocation4] sm:$0xff] }
0x12e5   :  { %3668 = vmatpush1.bf16.msra.mxu0 %v3464_v43  ;;  %3832 = vmatpush1.bf16.msra.mxu1 %v3466_v42  ;;  %v3510_v43 = vld [vmem:[#allocation3 + $0x7d0] sm:$0xff]  ;;  %v3513_v42 = vld [vmem:[#allocation3 + $0x7e8] sm:$0xff] }
0x12e6   :  { %3669 = vmatprep.subr.bf16.mxu0 %v3469_v47  ;;  %3833 = vmatprep.subr.bf16.mxu1 %v3471_v48  ;;  %v3515_v47 = vld [vmem:[#allocation3 + $0x7f8] sm:$0xff]  ;;  %v3250_v48 = vmax.f32 %v3238_v16, 0.0 }
0x12e9   :  { %3670 = vmatpush1.bf16.msra.mxu0 %v3468_v50  ;;  %3834 = vmatpush1.bf16.msra.mxu1 %v3470_v54  ;;  %v3514_v50 = vld [vmem:[#allocation3 + $0x7f0] sm:$0xff]  ;;  %v3882_v54 = vld [vmem:[#allocation4 + $0x40] sm:$0xff] }
0x12ea   :  { %3671 = vmatprep.subr.bf16.mxu0 %v3473_v51  ;;  %3835 = vmatprep.subr.bf16.mxu1 %v3475_v10  ;;  %v3898_v51 = vld [vmem:[#allocation4 + $0xc0] sm:$0xff]  ;;  %v3258_v10 = vpack.c.bf16 %v3250_v48, %v3250_v48 }
0x12ed   :  { %3672 = vmatpush1.bf16.msra.mxu0 %v3472_v25  ;;  %3836 = vmatpush1.bf16.msra.mxu1 %v3474_v52  ;;  %v3890_v25 = vld [vmem:[#allocation4 + $0x80] sm:$0xff]  ;;  %v3883_v52 = vld [vmem:[#allocation4 + $0x48] sm:$0xff] }
0x12ee   :  { %3673 = vmatprep.subr.bf16.mxu0 %v3477_v53  ;;  %3837 = vmatprep.subr.bf16.mxu1 %v3479_v31  ;;  %v3899_v53 = vld [vmem:[#allocation4 + $0xc8] sm:$0xff] }
0x12ef   :  { %v3875_v31 = vld [vmem:[#allocation4 + $0x8] sm:$0xff] }
0x12f1   :  { %3674 = vmatpush1.bf16.msra.mxu0 %v3476_v14  ;;  %3838 = vmatpush1.bf16.msra.mxu1 %v3478_v55  ;;  %v3891_v14 = vld [vmem:[#allocation4 + $0x88] sm:$0xff]  ;;  %v3884_v55 = vld [vmem:[#allocation4 + $0x50] sm:$0xff] }
0x12f2   :  { %3675 = vmatprep.subr.bf16.mxu0 %v3481_v46  ;;  %3839 = vmatprep.subr.bf16.mxu1 %v3483_v56  ;;  %v3900_v46 = vld [vmem:[#allocation4 + $0xd0] sm:$0xff] }
0x12f3   :  { %v3876_v56 = vld [vmem:[#allocation4 + $0x10] sm:$0xff] }
0x12f5   :  { %3676 = vmatpush1.bf16.msra.mxu0 %v3480_v44  ;;  %3840 = vmatpush1.bf16.msra.mxu1 %v3482_v59  ;;  %v3892_v44 = vld [vmem:[#allocation4 + $0x90] sm:$0xff]  ;;  %v3885_v59 = vld [vmem:[#allocation4 + $0x58] sm:$0xff] }
0x12f6   :  { %3677 = vmatprep.subr.bf16.mxu0 %v3485_v29  ;;  %3841 = vmatprep.subr.bf16.mxu1 %v3487_v18  ;;  %v3901_v29 = vld [vmem:[#allocation4 + $0xd8] sm:$0xff] }
0x12f7   :  { %v3877_v18 = vld [vmem:[#allocation4 + $0x18] sm:$0xff] }
0x12f9   :  { %3678 = vmatpush1.bf16.msra.mxu0 %v3484_v38  ;;  %3842 = vmatpush1.bf16.msra.mxu1 %v3486_v61  ;;  %v3893_v38 = vld [vmem:[#allocation4 + $0x98] sm:$0xff]  ;;  %v3886_v61 = vld [vmem:[#allocation4 + $0x60] sm:$0xff] }
0x12fa   :  { %3679 = vmatprep.subr.bf16.mxu0 %v3489_v24  ;;  %3843 = vmatprep.subr.bf16.mxu1 %v3491_v22  ;;  %v3902_v24 = vld [vmem:[#allocation4 + $0xe0] sm:$0xff] }
0x12fb   :  { %v3878_v22 = vld [vmem:[#allocation4 + $0x20] sm:$0xff] }
0x12fd   :  { %3680 = vmatpush1.bf16.msra.mxu0 %v3488_v57  ;;  %3844 = vmatpush1.bf16.msra.mxu1 %v3490_v60  ;;  %v3894_v57 = vld [vmem:[#allocation4 + $0xa0] sm:$0xff]  ;;  %v3887_v60 = vld [vmem:[#allocation4 + $0x68] sm:$0xff] }
0x12fe   :  { %3681 = vmatprep.subr.bf16.mxu0 %v3493_v11  ;;  %3845 = vmatprep.subr.bf16.mxu1 %v3495_v37  ;;  %v3903_v11 = vld [vmem:[#allocation4 + $0xe8] sm:$0xff] }
0x12ff   :  { %v3879_v37 = vld [vmem:[#allocation4 + $0x28] sm:$0xff] }
0x1301   :  { %3682 = vmatpush1.bf16.msra.mxu0 %v3492_v30  ;;  %3846 = vmatpush1.bf16.msra.mxu1 %v3494_v34  ;;  %v3895_v30 = vld [vmem:[#allocation4 + $0xa8] sm:$0xff]  ;;  %v3888_v34 = vld [vmem:[#allocation4 + $0x70] sm:$0xff] }
0x1302   :  { %3683 = vmatprep.subr.bf16.mxu0 %v3497_v8  ;;  %3847 = vmatprep.subr.bf16.mxu1 %v3499_v21  ;;  %v3904_v8 = vld [vmem:[#allocation4 + $0xf0] sm:$0xff] }
0x1303   :  { %v3880_v21 = vld [vmem:[#allocation4 + $0x30] sm:$0xff] }
0x1305   :  { %3684 = vmatpush1.bf16.msra.mxu0 %v3496_v33  ;;  %3848 = vmatpush1.bf16.msra.mxu1 %v3498_v39  ;;  %v3896_v33 = vld [vmem:[#allocation4 + $0xb0] sm:$0xff]  ;;  %v3889_v39 = vld [vmem:[#allocation4 + $0x78] sm:$0xff] }
0x1306   :  { %3685 = vmatprep.subr.bf16.mxu0 %v3501_v49  ;;  %3849 = vmatprep.subr.bf16.mxu1 %v3503_v15  ;;  %v3905_v49 = vld [vmem:[#allocation4 + $0xf8] sm:$0xff] }
0x1307   :  { %v3881_v15 = vld [vmem:[#allocation4 + $0x38] sm:$0xff] }
0x1309   :  { %3686 = vmatpush1.bf16.msra.mxu0 %v3500_v13  ;;  %3850 = vmatpush1.bf16.msra.mxu1 %v3502_v27  ;;  %v3516_v13 = vld [vmem:[%s6602_s10] sm:$0xf] }
0x130a   :  { %3687 = vmatprep.subr.bf16.mxu0 %v3505_v32  ;;  %3851 = vmatprep.subr.bf16.mxu1 %v3507_v20  ;;  %v3521_v27 = vrot.slane %v3516_v13, %v5742_v63  ;;  %v3529_v32 = vrot.slane %v3516_v13, %v5755_v19  ;;  %v3525_v20 = vrot.slane %v3516_v13, %v5748_v9 }
0x130b   :  { %v3533_v40 = vrot.slane %v3516_v13, %v3051_v35 }
0x130d   :  { %3688 = vmatpush1.bf16.msra.mxu0 %v3504_v26  ;;  %3852 = vmatpush1.bf16.msra.mxu1 %v3506_v12 }
0x130e   :  { %3689 = vmatprep.subr.bf16.mxu0 %v3509_v17  ;;  %3853 = vmatprep.subr.bf16.mxu1 %v3511_v23 }
0x1311   :  { %3690 = vmatpush1.bf16.msra.mxu0 %v3508_v41  ;;  %3854 = vmatpush1.bf16.msra.mxu1 %v3510_v43 }
0x1312   :  { %3691 = vmatprep.subr.bf16.mxu0 %v3513_v42  ;;  %3855 = vmatprep.subr.bf16.mxu1 %v3515_v47 }
0x1315   :  { %3692 = vmatpush1.bf16.msra.mxu0 %v3512_v58  ;;  %3856 = vmatpush1.bf16.msra.mxu1 %v3514_v50 }
0x1316   :  { %4406 = vmatprep.subr.bf16.mxu0 %v3882_v54  ;;  %4428 = vmatprep.subr.bf16.mxu1 %v3898_v51 }
0x1318   :  { %3694 = vmatmul.mubr.bf16.vlgmr.msra.gmra.mrb[80].mxu0 %v3258_v10  ;;  %3858 = vmatmul.mubr.bf16.vlgmr.msra.gmra.mrb[80].mxu1 %v3258_v10 }
0x1319   :  { %4407 = vmatpush3.bf16.msra.mxu0 %v3874_v45  ;;  %4429 = vmatpush3.bf16.msra.mxu1 %v3890_v25 }
0x131a   :  { %4408 = vmatprep.subr.bf16.mxu0 %v3883_v52  ;;  %4430 = vmatprep.subr.bf16.mxu1 %v3899_v53 }
0x131d   :  { %4409 = vmatpush3.bf16.msra.mxu0 %v3875_v31  ;;  %4431 = vmatpush3.bf16.msra.mxu1 %v3891_v14 }
0x131e   :  { %4410 = vmatprep.subr.bf16.mxu0 %v3884_v55  ;;  %4432 = vmatprep.subr.bf16.mxu1 %v3900_v46 }
0x1321   :  { %4411 = vmatpush3.bf16.msra.mxu0 %v3876_v56  ;;  %4433 = vmatpush3.bf16.msra.mxu1 %v3892_v44 }
0x1322   :  { %4412 = vmatprep.subr.bf16.mxu0 %v3885_v59  ;;  %4434 = vmatprep.subr.bf16.mxu1 %v3901_v29 }
0x1325   :  { %4413 = vmatpush3.bf16.msra.mxu0 %v3877_v18  ;;  %4435 = vmatpush3.bf16.msra.mxu1 %v3893_v38 }
0x1326   :  { %4414 = vmatprep.subr.bf16.mxu0 %v3886_v61  ;;  %4436 = vmatprep.subr.bf16.mxu1 %v3902_v24 }
0x1329   :  { %4415 = vmatpush3.bf16.msra.mxu0 %v3878_v22  ;;  %4437 = vmatpush3.bf16.msra.mxu1 %v3894_v57 }
0x132a   :  { %4416 = vmatprep.subr.bf16.mxu0 %v3887_v60  ;;  %4438 = vmatprep.subr.bf16.mxu1 %v3903_v11 }
0x132d   :  { %4417 = vmatpush3.bf16.msra.mxu0 %v3879_v37  ;;  %4439 = vmatpush3.bf16.msra.mxu1 %v3895_v30 }
0x132e   :  { %4418 = vmatprep.subr.bf16.mxu0 %v3888_v34  ;;  %4440 = vmatprep.subr.bf16.mxu1 %v3904_v8 }
0x1331   :  { %4419 = vmatpush3.bf16.msra.mxu0 %v3880_v21  ;;  %4441 = vmatpush3.bf16.msra.mxu1 %v3896_v33 }
0x1332   :  { %4420 = vmatprep.subr.bf16.mxu0 %v3889_v39  ;;  %4442 = vmatprep.subr.bf16.mxu1 %v3905_v49 }
0x1335   :  { %4421 = vmatpush3.bf16.msra.mxu0 %v3881_v15  ;;  %4443 = vmatpush3.bf16.msra.mxu1 %v3897_v36 }
0x1336   :  { %4819 = vmatprep.subr.bf16.mxu0 %v6623_v28 }
0x13eb   :  { %v3695_v26 = vpop.f32.mrb[80].mxu0  ;;  %v3859_v12 = vpop.f32.mrb[80].mxu1 }
0x13ec   :  { %v4839_v17 = vadd.f32 %v3695_v26, %v3521_v27  ;;  %v4841_v23 = vadd.f32 %v3859_v12, %v3529_v32  ;;  %v3697_v16 = vpop.f32.mrb[81].mxu0  ;;  %v3861_v41 = vpop.f32.mrb[81].mxu1 }
0x13ed   :  { %v4840_v43 = vadd.f32 %v3697_v16, %v3525_v20  ;;  %v4842_v42 = vadd.f32 %v3861_v41, %v3533_v40  ;;  %v3699_v47 = vpop.f32.mrb[82].mxu0  ;;  %v3863_v48 = vpop.f32.mrb[82].mxu1 }
0x13ee   :  { %v3866_v58 = vmax.f32 %v4839_v17, 0.0  ;;  %v3868_v50 = vmax.f32 %v4841_v23, 0.0  ;;  %v3700_v63 = vpop.f32.mrb[83].mxu0  ;;  %v3864_v54 = vpop.f32.mrb[83].mxu1 }
0x13ef   :  { %v3867_v19 = vmax.f32 %v4840_v43, 0.0  ;;  %v3869_v51 = vmax.f32 %v4842_v42, 0.0 }
0x13f0   :  { %v3870_v62 = vpack.c.bf16 %v3866_v58, %v3866_v58  ;;  %v3872_v35 = vpack.c.bf16 %v3868_v50, %v3868_v50 }
0x13f1   :  { %v3871_v9 = vpack.c.bf16 %v3867_v19, %v3867_v19  ;;  %v3873_v10 = vpack.c.bf16 %v3869_v51, %v3869_v51 }
0x13f3   :  { %3945 = vmatprep.mubr.bf16.mxu0 %v3871_v9  ;;  %3985 = vmatprep.mubr.bf16.mxu1 %v3873_v10 }
0x13f4   :  { %3946 = vmatmul.mubr.bf16.vlgmr.msra.gmra.mrb[84].mxu0 %v3870_v62  ;;  %3986 = vmatmul.mubr.bf16.vlgmr.msra.gmra.mrb[84].mxu1 %v3872_v35 }
0x13f5   :  { %4820 = vmatpush3.bf16.msra.mxu0 %v5563_v0  ;;  %4835 = vmatprep.mubr.msk.bf16.mxu0 %vm5372_vm0, %v6623_v28 }
0x13f6   :  { %4821 = vmatprep.subr.bf16.mxu0 %v6623_v28 }
0x13f9   :  { %4822 = vmatpush3.bf16.msra.mxu0 %v5568_v1 }
0x13fa   :  { %4823 = vmatprep.subr.bf16.mxu0 %v6623_v28 }
0x13fd   :  { %4824 = vmatpush3.bf16.msra.mxu0 %v5573_v2  ;;  %v4238_v2 = vld [vmem:[%s6603_s11] ss:$0 sm:$0xff]  ;;  %s5311_s11 = scalar_lea.vmem %s4059_s2, 32 }
0x13fe   :  { %4825 = vmatprep.subr.bf16.mxu0 %v6623_v28  ;;  %p5312_p12 = scmp.ne.s32.totalorder %s4059_s2, %s5311_s11  ;;  %p5317_p0 = scmp.lt.s32.totalorder %s5311_s11, %s5311_s11 }
0x1400   :  { %p5318_p1 = por %p5317_p0, %p5316_p13 }
0x1401   :  { %4826 = vmatpush3.bf16.msra.mxu0 %v5578_v3 }
0x1402   :  { %4827 = vmatprep.subr.bf16.mxu0 %v6623_v28  ;;  %p5319_p2 = pnand %p5318_p1, %p5312_p12 }
0x1405   :  { %4828 = vmatpush3.bf16.msra.mxu0 %v5583_v4 }
0x1406   :  { %4829 = vmatprep.subr.bf16.mxu0 %v6623_v28 }
0x1409   :  { %4830 = vmatpush3.bf16.msra.mxu0 %v5588_v5 }
0x140a   :  { %4831 = vmatprep.subr.bf16.mxu0 %v6623_v28 }
0x140d   :  { %4832 = vmatpush3.bf16.msra.mxu0 %v5593_v6 }
0x140e   :  { %4833 = vmatprep.subr.bf16.mxu0 %v6623_v28 }
0x1411   :  { %4834 = vmatpush3.bf16.msra.mxu0 %v5598_v7  ;;  %v4239_v7 = vld [vmem:[%s6604_s12] ss:$0 sm:$0xff] }
0x14c7   :  { %v4422_v0 = vpop.f32.mrb[84].mxu0  ;;  %v4444_v1 = vpop.f32.mrb[84].mxu1 }
0x14c8   :  { %v4423_v3 = vpop.f32.mrb[85].mxu0  ;;  %v4445_v4 = vpop.f32.mrb[85].mxu1 }
0x14c9   :  { %v4424_v45 = vadd.f32 %v4423_v3, %v4422_v0  ;;  %v4446_v25 = vadd.f32 %v4445_v4, %v4444_v1  ;;  %v4425_v52 = vpop.f32.mrb[86].mxu0  ;;  %v4447_v5 = vpop.f32.mrb[86].mxu1 }
0x14ca   :  { %v4426_v53 = vpop.f32.mrb[87].mxu0  ;;  %v4448_v31 = vpop.f32.mrb[87].mxu1 }
0x14cb   :  { %v3948_v14 = vadd.f32 %v4424_v45, %v4238_v2 }
0x14cd   :  { %v3988_v6 = vadd.f32 %v4446_v25, %v3948_v14 }
0x14cf   :  { %v3993_v55 = vmax.f32 %v3988_v6, 0.0 }
0x14d1   :  { %v3994_v28 = vpack.c.bf16 %v3993_v55, %v3993_v55 }
0x14d3   :  { %4836 = vmatmul.mubr.bf16.vlgmr.msra.gmra.mrb[88].mxu0 %v3994_v28 }
0x15a6   :  { %v4044_v46 = vpop.f32.mrb[88].mxu0 }
0x15a7   :  { %v4045_v56 = vadd.f32 %v4239_v7, %v4044_v46  ;;  %v4837_v44 = vpop.f32.mrb[89].mxu0 }
0x15a8   :  { %v4047_v59 = vpop.f32.mrb[90].mxu0 }
0x15a9   :  { %v4838_v29 = vpop.f32.mrb[91].mxu0  ;;  %4051 = vst.msk [vmem:[#allocation15] sm:$0x3] %vm4050_vm4, %v4045_v56 }
0x15aa   :  { %5322 = shalt.err (!%p5319_p2)
}
0x15ab   :  { %s6624_s12 = sld [smem:[#allocation35_spill]] }
0x15b1   :  { %s5323_s26 = scalar_lea.hbm %s6624_s12, 32 }
0x15b2   :  { %p5324_p3 = scmp.ne.s32.totalorder %s6624_s12, %s5323_s26  ;;  %p5327_p4 = scmp.lt.u32.totalorder %s5323_s26, %s6624_s12 }
0x15b4   :  { %p5329_p5 = pnand %p5327_p4, %p5324_p3 }
0x15b6   :  { %5332 = shalt.err (!%p5329_p5)
}
0x15b7   :  { %4061 = dma.vmem_to_hbm [thread:$0]  %s4059_s2, 32, %s6624_s12, [#allocation9]  }
0x15b8   :  { %5347 = dma.done.wait [#allocation9], 32  }
0x15b9   :  { %5348 = vsyncadd [#allocation9], 4294967264 }
0x15ba   :  { %4065 = vsyncpa [#allocation8], 1 }
0x15bb   :  { %4066 = vsyncpa [#allocation11], 1 }
0x15bc   :  { %4067 = vsyncpa [#allocation14], 1 }
0x15bd   :  { %4068 = vsyncpa [#allocation9], 1 }
0x15be   :  { %4069 = vsyncmov [#allocation6] }
0x15c1   :  { %s4070_s14 = vpop.sfrf %4069 }
0x15c2   :  { %p4240_p6 = scmp.ne.s32.totalorder %s4070_s14, 0 }
0x15c4   :  { %4074 = shalt.err (%p4240_p6)  }
0x15c5   :  { %4076 = vsyncmov [#allocation6 + $0x1] }
0x15c8   :  { %s4077_s22 = vpop.sfrf %4076 }
0x15c9   :  { %p4241_p7 = scmp.ne.s32.totalorder %s4077_s22, 0 }
0x15cb   :  { %4081 = shalt.err (%p4241_p7)  }
0x15cc   :  { %4083 = vsyncmov [#allocation6 + $0x2] }
0x15cf   :  { %s4084_s3 = vpop.sfrf %4083 }
0x15d0   :  { %p4242_p8 = scmp.ne.s32.totalorder %s4084_s3, 0 }
0x15d2   :  { %4088 = shalt.err (%p4242_p8)  }
0x15d3   :  { %4090 = vsyncmov [#allocation6 + $0x3] }
0x15d6   :  { %s4091_s30 = vpop.sfrf %4090 }
0x15d7   :  { %p4243_p9 = scmp.ne.s32.totalorder %s4091_s30, 0 }
0x15d9   :  { %4095 = shalt.err (%p4243_p9)  }

</bundles_post_ra>
